<compile_context>
chip_gen: v6e
topology: v6e:2x2x1
jax: 0.10.0
libtpu: 0.0.40
codegen_flags: <defaults>
</compile_context>

<pallas_src>
import jax
import jax.numpy as jnp
from jax.experimental import pallas as pl
from jax.experimental.pallas import tpu as pltpu

IN_FEATS = 12288
H1, H2, OUT = 84, 50, 2
PAD = 128          # lane-aligned padded width for hidden/output dims
NEG_BIAS = -1e30   # finite "minus infinity" for padded logit lanes


def _round_up(v, m):
    return ((v + m - 1) // m) * m


def _mlp_softmax_kernel(x_ref, w1_ref, b1_ref, w2_ref, b2_ref, w3_ref, b3_ref,
                        o_ref):
    x = x_ref[...]                                             # (TN, 12288) bf16

    # Layer 1: Linear(12288 -> 84, padded to 128) + ReLU   (bf16 MXU, f32 acc)
    h1 = jnp.dot(x, w1_ref[...], preferred_element_type=jnp.float32)
    h1 = jnp.maximum(h1 + b1_ref[...], 0.0)                    # padded lanes stay 0

    # Layer 2: Linear(84 -> 50, padded to 128) + ReLU
    h2 = jnp.dot(h1.astype(jnp.bfloat16), w2_ref[...],
                 preferred_element_type=jnp.float32)
    h2 = jnp.maximum(h2 + b2_ref[...], 0.0)

    # Layer 3: Linear(50 -> 2, padded to 128). Padded lanes get bias -1e30,
    # so they vanish in the softmax with no explicit masking.
    logits = jnp.dot(h2.astype(jnp.bfloat16), w3_ref[...],
                     preferred_element_type=jnp.float32)
    logits = logits + b3_ref[...]

    # Softmax over last dim (f32).
    m = jnp.max(logits, axis=-1, keepdims=True)
    e = jnp.exp(logits - m)
    s = jnp.sum(e, axis=-1, keepdims=True)
    o_ref[...] = e * pl.reciprocal(s, approx=True)


def prepare_params(params):
    """One-time prep: pad to 128 lanes, cast weights to bf16, bake -1e30 mask
    into b3's unused lanes. Run once at init, NOT per forward call."""
    w1, b1, w2, b2, w3, b3 = params
    w1p = jnp.zeros((IN_FEATS, PAD), jnp.bfloat16).at[:, :H1].set(
        w1.astype(jnp.bfloat16))
    b1p = jnp.zeros((1, PAD), jnp.float32).at[:, :H1].set(b1)
    w2p = jnp.zeros((PAD, PAD), jnp.bfloat16).at[:H1, :H2].set(
        w2.astype(jnp.bfloat16))
    b2p = jnp.zeros((1, PAD), jnp.float32).at[:, :H2].set(b2)
    w3p = jnp.zeros((PAD, PAD), jnp.bfloat16).at[:H2, :OUT].set(
        w3.astype(jnp.bfloat16))
    b3p = jnp.full((1, PAD), NEG_BIAS, jnp.float32).at[:, :OUT].set(b3)
    return (w1p, b1p, w2p, b2p, w3p, b3p)


def simplenet_forward(x, prepped_params, tile_n=256):
    """x: any shape whose flatten is (N, 12288) (e.g. (N, 3, 64, 64)).
    prepped_params: output of prepare_params. Returns (N, 2) softmax probs."""
    w1p, b1p, w2p, b2p, w3p, b3p = prepped_params

    x_flat = x.reshape(-1, IN_FEATS).astype(jnp.bfloat16)
    n = x_flat.shape[0]

    # Batch tile: keep last-two-dims (8,128)-aligned; don't exceed the batch.
    tn = min(tile_n, _round_up(n, 8))
    pn = _round_up(n, tn)
    if pn != n:
        x_flat = jnp.pad(x_flat, ((0, pn - n), (0, 0)))

    out_padded = pl.pallas_call(
        _mlp_softmax_kernel,
        out_shape=jax.ShapeDtypeStruct((pn, PAD), jnp.float32),
        grid=(pn // tn,),
        in_specs=[
            pl.BlockSpec((tn, IN_FEATS), lambda i: (i, 0)),   # x tile (pipelined)
            pl.BlockSpec((IN_FEATS, PAD), lambda i: (0, 0)),  # w1 (resident)
            pl.BlockSpec((1, PAD), lambda i: (0, 0)),         # b1
            pl.BlockSpec((PAD, PAD), lambda i: (0, 0)),       # w2
            pl.BlockSpec((1, PAD), lambda i: (0, 0)),         # b2
            pl.BlockSpec((PAD, PAD), lambda i: (0, 0)),       # w3
            pl.BlockSpec((1, PAD), lambda i: (0, 0)),         # b3 (masked lanes)
        ],
        out_specs=pl.BlockSpec((tn, PAD), lambda i: (i, 0)),
        compiler_params=pltpu.CompilerParams(
            dimension_semantics=("parallel",),   # 2nd TC on v7x; no-op elsewhere
            vmem_limit_bytes=48 << 20,           # headroom on v7x's 64 MiB VMEM
        ),
    )(x_flat, w1p, b1p, w2p, b2p, w3p, b3p)

    return out_padded[:n, :OUT]


def init_params(key):
    """Deterministic init mirroring nn.Linear's default U(-1/sqrt(fan_in), +)."""
    def linear(key, fan_in, fan_out):
        kw, kb = jax.random.split(key)
        bound = 1.0 / jnp.sqrt(jnp.float32(fan_in))
        w = jax.random.uniform(kw, (fan_in, fan_out), jnp.float32, -bound, bound)
        b = jax.random.uniform(kb, (fan_out,), jnp.float32, -bound, bound)
        return w, b

    k1, k2, k3 = jax.random.split(key, 3)
    w1, b1 = linear(k1, IN_FEATS, H1)
    w2, b2 = linear(k2, H1, H2)
    w3, b3 = linear(k3, H2, OUT)
    return (w1, b1, w2, b2, w3, b3)


def reference_forward(x, params):
    """Pure-JAX f32 reference of the intended PyTorch forward."""
    w1, b1, w2, b2, w3, b3 = params
    xf = x.reshape(-1, IN_FEATS)
    h1 = jnp.maximum(xf @ w1 + b1, 0.0)
    h2 = jnp.maximum(h1 @ w2 + b2, 0.0)
    logits = h2 @ w3 + b3
    return jax.nn.softmax(logits, axis=-1)


if __name__ == "__main__":
    key = jax.random.PRNGKey(0)
    k_x, k_p = jax.random.split(key)

    # NCHW input whose flatten matches 12288 features: (2, 3, 64, 64).
    x = jax.random.normal(k_x, (2, 3, 64, 64), jnp.float32)

    params = init_params(k_p)
    prepped = prepare_params(params)   # one-time padding / bf16 cast

    out = simplenet_forward(x, prepped)
    jax.block_until_ready(out)

    assert out.shape == (2, OUT)
    row_sums = jnp.sum(out, axis=-1)
    assert bool(jnp.allclose(row_sums, 1.0, atol=1e-2))

    ref = reference_forward(x, params)
    assert bool(jnp.allclose(out, ref, atol=5e-2))   # bf16-weight tolerance

    print("KERNEL_OK")
</pallas_src>

<mosaic_0001>
module attributes {stable_mosaic.version = 11 : i64} {
  func.func @_mlp_softmax_kernel(%arg0: i32, %arg1: memref<8x12288xbf16, #tpu.memory_space<vmem>>, %arg2: memref<12288x128xbf16, #tpu.memory_space<vmem>>, %arg3: memref<1x128xf32, #tpu.memory_space<vmem>>, %arg4: memref<128x128xbf16, #tpu.memory_space<vmem>>, %arg5: memref<1x128xf32, #tpu.memory_space<vmem>>, %arg6: memref<128x128xbf16, #tpu.memory_space<vmem>>, %arg7: memref<1x128xf32, #tpu.memory_space<vmem>>, %arg8: memref<8x128xf32, #tpu.memory_space<vmem>>) attributes {dimension_semantics = [#tpu.dimension_semantics<parallel>], iteration_bounds = array<i64: 1>, scalar_prefetch = 0 : i64, scratch_operands = 0 : i64, tpu.core_type = #tpu.core_type<tc>, window_params = [{transform_indices = @transform_0, window_bounds = array<i64: 8, 12288>}, {pipeline_mode = #tpu.pipeline_mode<synchronous>, transform_indices = @transform_1, window_bounds = array<i64: 12288, 128>}, {pipeline_mode = #tpu.pipeline_mode<synchronous>, transform_indices = @transform_2, window_bounds = array<i64: 1, 128>}, {pipeline_mode = #tpu.pipeline_mode<synchronous>, transform_indices = @transform_3, window_bounds = array<i64: 128, 128>}, {pipeline_mode = #tpu.pipeline_mode<synchronous>, transform_indices = @transform_4, window_bounds = array<i64: 1, 128>}, {pipeline_mode = #tpu.pipeline_mode<synchronous>, transform_indices = @transform_5, window_bounds = array<i64: 128, 128>}, {pipeline_mode = #tpu.pipeline_mode<synchronous>, transform_indices = @transform_6, window_bounds = array<i64: 1, 128>}, {transform_indices = @transform_7, window_bounds = array<i64: 8, 128>}]} {
    %c0 = arith.constant 0 : index
    %c0_0 = arith.constant 0 : index
    %0 = vector.load %arg1[%c0, %c0_0] : memref<8x12288xbf16, #tpu.memory_space<vmem>>, vector<8x12288xbf16>
    %c0_1 = arith.constant 0 : index
    %c0_2 = arith.constant 0 : index
    %1 = vector.load %arg2[%c0_1, %c0_2] : memref<12288x128xbf16, #tpu.memory_space<vmem>>, vector<12288x128xbf16>
    %cst = arith.constant dense<0.000000e+00> : vector<8x128xf32>
    %2 = tpu.matmul %0, %1, %cst {dimension_numbers = #tpu.dot_dimension_numbers<[1], [0], [0], [1], [0, 0, 1, 1], [], []>} : vector<8x12288xbf16>, vector<12288x128xbf16>, vector<8x128xf32> -> vector<8x128xf32>
    %c0_3 = arith.constant 0 : index
    %c0_4 = arith.constant 0 : index
    %3 = vector.load %arg3[%c0_3, %c0_4] : memref<1x128xf32, #tpu.memory_space<vmem>>, vector<1x128xf32>
    %4 = vector.broadcast %3 : vector<1x128xf32> to vector<8x128xf32>
    %5 = arith.addf %2, %4 : vector<8x128xf32>
    %cst_5 = arith.constant 0.000000e+00 : f32
    %6 = vector.broadcast %cst_5 : f32 to vector<8x128xf32>
    %7 = arith.maximumf %5, %6 : vector<8x128xf32>
    %8 = arith.truncf %7 : vector<8x128xf32> to vector<8x128xbf16>
    %c0_6 = arith.constant 0 : index
    %c0_7 = arith.constant 0 : index
    %9 = vector.load %arg4[%c0_6, %c0_7] : memref<128x128xbf16, #tpu.memory_space<vmem>>, vector<128x128xbf16>
    %cst_8 = arith.constant dense<0.000000e+00> : vector<8x128xf32>
    %10 = tpu.matmul %8, %9, %cst_8 {dimension_numbers = #tpu.dot_dimension_numbers<[1], [0], [0], [1], [0, 0, 1, 1], [], []>} : vector<8x128xbf16>, vector<128x128xbf16>, vector<8x128xf32> -> vector<8x128xf32>
    %c0_9 = arith.constant 0 : index
    %c0_10 = arith.constant 0 : index
    %11 = vector.load %arg5[%c0_9, %c0_10] : memref<1x128xf32, #tpu.memory_space<vmem>>, vector<1x128xf32>
    %12 = vector.broadcast %11 : vector<1x128xf32> to vector<8x128xf32>
    %13 = arith.addf %10, %12 : vector<8x128xf32>
    %cst_11 = arith.constant 0.000000e+00 : f32
    %14 = vector.broadcast %cst_11 : f32 to vector<8x128xf32>
    %15 = arith.maximumf %13, %14 : vector<8x128xf32>
    %16 = arith.truncf %15 : vector<8x128xf32> to vector<8x128xbf16>
    %c0_12 = arith.constant 0 : index
    %c0_13 = arith.constant 0 : index
    %17 = vector.load %arg6[%c0_12, %c0_13] : memref<128x128xbf16, #tpu.memory_space<vmem>>, vector<128x128xbf16>
    %cst_14 = arith.constant dense<0.000000e+00> : vector<8x128xf32>
    %18 = tpu.matmul %16, %17, %cst_14 {dimension_numbers = #tpu.dot_dimension_numbers<[1], [0], [0], [1], [0, 0, 1, 1], [], []>} : vector<8x128xbf16>, vector<128x128xbf16>, vector<8x128xf32> -> vector<8x128xf32>
    %c0_15 = arith.constant 0 : index
    %c0_16 = arith.constant 0 : index
    %19 = vector.load %arg7[%c0_15, %c0_16] : memref<1x128xf32, #tpu.memory_space<vmem>>, vector<1x128xf32>
    %20 = vector.broadcast %19 : vector<1x128xf32> to vector<8x128xf32>
    %21 = arith.addf %18, %20 : vector<8x128xf32>
    %cst_17 = arith.constant dense<0xFF800000> : vector<8xf32>
    %22 = vector.multi_reduction <maximumf>, %21, %cst_17 [1] : vector<8x128xf32> to vector<8xf32>
    %23 = vector.shape_cast %22 : vector<8xf32> to vector<8x1xf32>
    %24 = vector.broadcast %23 : vector<8x1xf32> to vector<8x128xf32>
    %25 = arith.subf %21, %24 : vector<8x128xf32>
    %26 = math.exp %25 : vector<8x128xf32>
    %cst_18 = arith.constant dense<0.000000e+00> : vector<8xf32>
    %27 = vector.multi_reduction <add>, %26, %cst_18 [1] : vector<8x128xf32> to vector<8xf32>
    %28 = vector.shape_cast %27 : vector<8xf32> to vector<8x1xf32>
    %29 = tpu.reciprocal %28 {approx = true} : vector<8x1xf32> -> vector<8x1xf32>
    %30 = vector.broadcast %29 : vector<8x1xf32> to vector<8x128xf32>
    %31 = arith.mulf %26, %30 : vector<8x128xf32>
    %c0_19 = arith.constant 0 : index
    %c0_20 = arith.constant 0 : index
    %32 = vector.load %arg8[%c0_19, %c0_20] : memref<8x128xf32, #tpu.memory_space<vmem>>, vector<8x128xf32>
    tpu.vector_store %arg8[%c0_19, %c0_20], %31 {strides = array<i32>} : memref<8x128xf32, #tpu.memory_space<vmem>>, vector<8x128xf32>,
    return
  }
  func.func @transform_0(%arg0: i32) -> (i32, i32) {
    %c0_i32 = arith.constant 0 : i32
    %c0_i32_0 = arith.constant 0 : i32
    return %arg0, %c0_i32 : i32, i32
  }
  func.func @transform_1(%arg0: i32) -> (i32, i32) {
    %c0_i32 = arith.constant 0 : i32
    %c0_i32_0 = arith.constant 0 : i32
    %c0_i32_1 = arith.constant 0 : i32
    return %c0_i32, %c0_i32_0 : i32, i32
  }
  func.func @transform_2(%arg0: i32) -> (i32, i32) {
    %c0_i32 = arith.constant 0 : i32
    %c0_i32_0 = arith.constant 0 : i32
    %c0_i32_1 = arith.constant 0 : i32
    return %c0_i32, %c0_i32_0 : i32, i32
  }
  func.func @transform_3(%arg0: i32) -> (i32, i32) {
    %c0_i32 = arith.constant 0 : i32
    %c0_i32_0 = arith.constant 0 : i32
    %c0_i32_1 = arith.constant 0 : i32
    return %c0_i32, %c0_i32_0 : i32, i32
  }
  func.func @transform_4(%arg0: i32) -> (i32, i32) {
    %c0_i32 = arith.constant 0 : i32
    %c0_i32_0 = arith.constant 0 : i32
    %c0_i32_1 = arith.constant 0 : i32
    return %c0_i32, %c0_i32_0 : i32, i32
  }
  func.func @transform_5(%arg0: i32) -> (i32, i32) {
    %c0_i32 = arith.constant 0 : i32
    %c0_i32_0 = arith.constant 0 : i32
    %c0_i32_1 = arith.constant 0 : i32
    return %c0_i32, %c0_i32_0 : i32, i32
  }
  func.func @transform_6(%arg0: i32) -> (i32, i32) {
    %c0_i32 = arith.constant 0 : i32
    %c0_i32_0 = arith.constant 0 : i32
    %c0_i32_1 = arith.constant 0 : i32
    return %c0_i32, %c0_i32_0 : i32, i32
  }
  func.func @transform_7(%arg0: i32) -> (i32, i32) {
    %c0_i32 = arith.constant 0 : i32
    %c0_i32_0 = arith.constant 0 : i32
    return %arg0, %c0_i32 : i32, i32
  }
}

</mosaic_0001>

<bundles_post_ra>
// kernel: tpu_custom_call.1
= control target key start
LH: loop header
LB: loop body
LE: loop exit
PB: predicated region body
PF: predicated region fallthrough
CT: control target
= control target key end

     0   :  { %12 = vsyncpa [#allocation3], 0  ;;  %s12032_s0 = inlined_call_operand.hbm [shape: bf16[8,12288], index: 0, kind: input, shape index: {}]   ;;  %s12033_s1 = inlined_call_operand.hbm [shape: bf16[12288,128], index: 1, kind: input, shape index: {}]   ;;  %s12034_s2 = inlined_call_operand.hbm [shape: f32[1,128], index: 2, kind: input, shape index: {}]   ;;  %s12035_s3 = inlined_call_operand.hbm [shape: bf16[128,128], index: 3, kind: input, shape index: {}]   ;;  %s12036_s4 = inlined_call_operand.hbm [shape: f32[1,128], index: 4, kind: input, shape index: {}]   ;;  %s12037_s5 = inlined_call_operand.hbm [shape: bf16[128,128], index: 5, kind: input, shape index: {}]   ;;  %s12038_s6 = inlined_call_operand.hbm [shape: f32[1,128], index: 6, kind: input, shape index: {}]   ;;  %s12039_s7 = inlined_call_operand.hbm [shape: f32[8,128], index: 7, kind: output, shape index: {}]  }
   0x1   :  { %13 = vsyncpa [#allocation6], 0 }
   0x2   :  { %14 = vsyncpa [#allocation9], 0 }
   0x3   :  { %15 = vsyncpa [#allocation12], 0 }
   0x4   :  { %16 = vsyncpa [#allocation4], 0  ;;  %s11887_s24 = smov [#allocation5]  }
   0x5   :  { %s32_s25 = sshll.u32 %s11887_s24, 4  ;;  %s33_s25 = int_to_ptr.vmem [resolvable:$true] %s32_s25 }
   0x6   :  { %s11725_s26 = scalar_lea.vmem %s33_s25, 98304  ;;  %p11730_p1 = scmp.lt.s32.totalorder %s33_s25, %s33_s25 }
   0x7   :  { %p11726_p0 = scmp.ne.s32.totalorder %s33_s25, %s11725_s26  ;;  %p11731_p2 = scmp.lt.s32.totalorder %s11725_s26, %s11725_s26 }
   0x9   :  { %p11732_p3 = por %p11731_p2, %p11730_p1 }
   0xb   :  { %p11733_p4 = pnand %p11732_p3, %p11726_p0 }
   0xd   :  { %11736 = shalt.err (!%p11733_p4)
}
   0xe   :  { %s11888_s27 = smov 64   ;;  %s11889_s28 = smov 4  }
   0xf   :  { %38 = dma.hbm_to_vmem [thread:$0]  %s12033_s1, 98304, %s33_s25, [#allocation6], %s11888_s27, %s11888_s27, %s11889_s28  }
  0x10   :  { %s11890_s8 = smov [#allocation8]   ;;  %s11891_s10 = smov [#allocation11]  }
  0x11   :  { %s54_s9 = sshll.u32 %s11890_s8, 4  ;;  %s76_s11 = sshll.u32 %s11891_s10, 4  ;;  %s55_s9 = int_to_ptr.vmem [resolvable:$true] %s54_s9  ;;  %s77_s11 = int_to_ptr.vmem [resolvable:$true] %s76_s11 }
  0x12   :  { %s11745_s12 = scalar_lea.vmem %s55_s9, 1024  ;;  %p11750_p6 = scmp.lt.s32.totalorder %s55_s9, %s55_s9 }
  0x13   :  { %p11746_p5 = scmp.ne.s32.totalorder %s55_s9, %s11745_s12  ;;  %p11751_p7 = scmp.lt.s32.totalorder %s11745_s12, %s11745_s12 }
  0x15   :  { %p11752_p8 = por %p11751_p7, %p11750_p6 }
  0x17   :  { %p11753_p9 = pnand %p11752_p8, %p11746_p5 }
  0x19   :  { %11756 = shalt.err (!%p11753_p9)
}
  0x1a   :  { %60 = dma.hbm_to_vmem [thread:$0]  %s12035_s3, 1024, %s55_s9, [#allocation9], %s11888_s27, %s11888_s27, %s11889_s28  }
  0x1b   :  { %s11765_s15 = scalar_lea.vmem %s77_s11, 1024  ;;  %p11770_p11 = scmp.lt.s32.totalorder %s77_s11, %s77_s11 }
  0x1c   :  { %p11766_p10 = scmp.ne.s32.totalorder %s77_s11, %s11765_s15  ;;  %p11771_p12 = scmp.lt.s32.totalorder %s11765_s15, %s11765_s15 }
  0x1e   :  { %p11772_p13 = por %p11771_p12, %p11770_p11 }
  0x20   :  { %p11773_p0 = pnand %p11772_p13, %p11766_p10 }
  0x22   :  { %11776 = shalt.err (!%p11773_p0)
}
  0x23   :  { %82 = dma.hbm_to_vmem [thread:$0]  %s12037_s5, 1024, %s77_s11, [#allocation12], %s11888_s27, %s11888_s27, %s11889_s28  }
  0x24   :  { %s11892_s17 = smov [#allocation2]   ;;  %s11893_s19 = smov [#allocation7]  }
  0x25   :  { %s23_s18 = sshll.u32 %s11892_s17, 4  ;;  %s45_s20 = sshll.u32 %s11893_s19, 4  ;;  %s24_s18 = int_to_ptr.vmem [resolvable:$true] %s23_s18  ;;  %s46_s20 = int_to_ptr.vmem [resolvable:$true] %s45_s20 }
  0x26   :  { %s11785_s21 = scalar_lea.vmem %s24_s18, 6144  ;;  %p11790_p2 = scmp.lt.s32.totalorder %s24_s18, %s24_s18 }
  0x27   :  { %p11786_p1 = scmp.ne.s32.totalorder %s24_s18, %s11785_s21  ;;  %p11791_p3 = scmp.lt.s32.totalorder %s11785_s21, %s11785_s21 }
  0x29   :  { %p11792_p4 = por %p11791_p3, %p11790_p2 }
  0x2b   :  { %p11793_p5 = pnand %p11792_p4, %p11786_p1 }
  0x2d   :  { %11796 = shalt.err (!%p11793_p5)
}
  0x2e   :  { %26 = dma.hbm_to_vmem [thread:$0]  %s12032_s0, 6144, %s24_s18, [#allocation3]  }
  0x2f   :  { %s11805_s23 = scalar_lea.vmem %s46_s20, 16  ;;  %s11809_s5 = scalar_lea.vmem %s46_s20, 32 }
  0x30   :  { %p11806_p6 = scmp.ne.s32.totalorder %s46_s20, %s11805_s23  ;;  %p11810_p7 = scmp.lt.s32.totalorder %s46_s20, %s46_s20 }
  0x31   :  { %p11811_p8 = scmp.lt.s32.totalorder %s11809_s5, %s11805_s23 }
  0x33   :  { %p11812_p9 = por %p11811_p8, %p11810_p7 }
  0x35   :  { %p11813_p10 = pnand %p11812_p9, %p11806_p6 }
  0x37   :  { %11816 = shalt.err (!%p11813_p10)
}
  0x38   :  { %48 = dma.hbm_to_vmem [thread:$0]  %s12034_s2, 16, %s46_s20, [#allocation6]  }
  0x39   :  { %s11894_s26 = smov [#allocation10]   ;;  %s11895_s28 = smov [#allocation13]  }
  0x3a   :  { %s67_s27 = sshll.u32 %s11894_s26, 4  ;;  %s89_s29 = sshll.u32 %s11895_s28, 4  ;;  %s68_s27 = int_to_ptr.vmem [resolvable:$true] %s67_s27  ;;  %s90_s29 = int_to_ptr.vmem [resolvable:$true] %s89_s29 }
  0x3b   :  { %s11825_s30 = scalar_lea.vmem %s68_s27, 16  ;;  %s11829_s0 = scalar_lea.vmem %s68_s27, 32 }
  0x3c   :  { %p11826_p11 = scmp.ne.s32.totalorder %s68_s27, %s11825_s30  ;;  %p11830_p12 = scmp.lt.s32.totalorder %s68_s27, %s68_s27 }
  0x3d   :  { %p11831_p13 = scmp.lt.s32.totalorder %s11829_s0, %s11825_s30 }
  0x3f   :  { %p11832_p0 = por %p11831_p13, %p11830_p12 }
  0x41   :  { %p11833_p1 = pnand %p11832_p0, %p11826_p11 }
  0x43   :  { %11836 = shalt.err (!%p11833_p1)
}
  0x44   :  { %70 = dma.hbm_to_vmem [thread:$0]  %s12036_s4, 16, %s68_s27, [#allocation9]  }
  0x45   :  { %s11845_s10 = scalar_lea.vmem %s90_s29, 16  ;;  %s11849_s2 = scalar_lea.vmem %s90_s29, 32 }
  0x46   :  { %p11846_p2 = scmp.ne.s32.totalorder %s90_s29, %s11845_s10  ;;  %p11850_p3 = scmp.lt.s32.totalorder %s90_s29, %s90_s29 }
  0x47   :  { %p11851_p4 = scmp.lt.s32.totalorder %s11849_s2, %s11845_s10 }
  0x49   :  { %p11852_p5 = por %p11851_p4, %p11850_p3 }
  0x4b   :  { %p11853_p6 = pnand %p11852_p5, %p11846_p2 }
  0x4d   :  { %11856 = shalt.err (!%p11853_p6)
}
  0x4e   :  { %92 = dma.hbm_to_vmem [thread:$0]  %s12038_s6, 16, %s90_s29, [#allocation12]  }
  0x4f   :  { %11877 = dma.done.wait [#allocation3], 6144  }
  0x50   :  { %11878 = vsyncadd [#allocation3], 4294961152 }
  0x51   :  { %11879 = dma.done.wait [#allocation6], 98320  }
  0x52   :  { %11880 = vsyncadd [#allocation6], 4294868976 }
  0x53   :  { %11881 = dma.done.wait [#allocation9], 1040  }
  0x54   :  { %11882 = vsyncadd [#allocation9], 4294966256 }
  0x55   :  { %11883 = dma.done.wait [#allocation12], 1040  }
  0x56   :  { %11884 = vsyncadd [#allocation12], 4294966256  ;;  %v10833_v0 = vld [vmem:[#allocation5 + $0x78] sm:$0xff]   ;;  %v10837_v4 = vld [vmem:[#allocation5 + $0x70] sm:$0xff]   ;;  %vm11897_vm0 = vmmov 0   ;;  %s11898_s4 = smov [#allocation14]  }
  0x57   :  { %v10834_v1 = vld [vmem:[#allocation5 + $0xf8] sm:$0xff]   ;;  %9707 = vmatprep.subr.bf16.mxu0 %v10833_v0  ;;  %v10838_v5 = vld [vmem:[#allocation5 + $0xf0] sm:$0xff]   ;;  %v10841_v8 = vld [vmem:[#allocation5 + $0x68] sm:$0xff]   ;;  %s8812_s6 = sshll.u32 %s11898_s4, 4  ;;  %s8813_s6 = int_to_ptr.vmem [resolvable:$true] %s8812_s6 }
  0x58   :  { %v10835_v2 = vld [vmem:[#allocation5 + $0x38] sm:$0xff]   ;;  %9729 = vmatprep.subr.bf16.mxu1 %v10834_v1  ;;  %v10839_v6 = vld [vmem:[#allocation5 + $0x30] sm:$0xff]   ;;  %v10842_v9 = vld [vmem:[#allocation5 + $0xe8] sm:$0xff]   ;;  %s11857_s13 = scalar_lea.vmem %s8813_s6, 128  ;;  %p11862_p8 = scmp.lt.s32.totalorder %s8813_s6, %s8813_s6 }
  0x59   :  { %v10836_v3 = vld [vmem:[#allocation5 + $0xb8] sm:$0xff]   ;;  %9708 = vmatpush3.bf16.msra.mxu0 %v10835_v2  ;;  %v10840_v7 = vld [vmem:[#allocation5 + $0xb0] sm:$0xff]   ;;  %v10843_v10 = vld [vmem:[#allocation5 + $0x28] sm:$0xff]   ;;  %p11858_p7 = scmp.ne.s32.totalorder %s8813_s6, %s11857_s13  ;;  %p11863_p9 = scmp.lt.s32.totalorder %s11857_s13, %s11857_s13 }
  0x5a   :  { %9730 = vmatpush3.bf16.msra.mxu1 %v10836_v3  ;;  %9709 = vmatprep.subr.bf16.mxu0 %v10837_v4  ;;  %v10844_v11 = vld [vmem:[#allocation5 + $0xa8] sm:$0xff]   ;;  %v10845_v12 = vld [vmem:[#allocation5 + $0x60] sm:$0xff]   ;;  %v10849_v16 = vld [vmem:[#allocation5 + $0x58] sm:$0xff]  }
  0x5b   :  { %9731 = vmatprep.subr.bf16.mxu1 %v10838_v5  ;;  %v10846_v13 = vld [vmem:[#allocation5 + $0xe0] sm:$0xff]   ;;  %v10850_v17 = vld [vmem:[#allocation5 + $0xd8] sm:$0xff]   ;;  %v10853_v20 = vld [vmem:[#allocation5 + $0x50] sm:$0xff]   ;;  %p11864_p10 = por %p11863_p9, %p11862_p8 }
  0x5c   :  { %v10847_v14 = vld [vmem:[#allocation5 + $0x20] sm:$0xff]   ;;  %v10851_v18 = vld [vmem:[#allocation5 + $0x18] sm:$0xff]   ;;  %v10854_v21 = vld [vmem:[#allocation5 + $0xd0] sm:$0xff]  }
  0x5d   :  { %9710 = vmatpush3.bf16.msra.mxu0 %v10839_v6  ;;  %v10848_v15 = vld [vmem:[#allocation5 + $0xa0] sm:$0xff]   ;;  %v10852_v19 = vld [vmem:[#allocation5 + $0x98] sm:$0xff]   ;;  %v10855_v22 = vld [vmem:[#allocation5 + $0x10] sm:$0xff]   ;;  %p11865_p11 = pnand %p11864_p10, %p11858_p7 }
  0x5e   :  { %9732 = vmatpush3.bf16.msra.mxu1 %v10840_v7  ;;  %9711 = vmatprep.subr.bf16.mxu0 %v10841_v8  ;;  %v10856_v23 = vld [vmem:[#allocation5 + $0x90] sm:$0xff]   ;;  %v10857_v24 = vld [vmem:[#allocation5 + $0x48] sm:$0xff]   ;;  %v10861_v28 = vld [vmem:[#allocation5 + $0x40] sm:$0xff]  }
  0x5f   :  { %9733 = vmatprep.subr.bf16.mxu1 %v10842_v9  ;;  %v10858_v25 = vld [vmem:[#allocation5 + $0xc8] sm:$0xff]   ;;  %v10862_v29 = vld [vmem:[#allocation5 + $0xc0] sm:$0xff]   ;;  %v10869_v38 = vld [vmem:[#allocation5 + $0x178] sm:$0xff]  }
  0x60   :  { %v10859_v26 = vld [vmem:[#allocation5 + $0x8] sm:$0xff]   ;;  %v10863_v30 = vld [vmem:[#allocation5] sm:$0xff]   ;;  %v10870_v39 = vld [vmem:[#allocation5 + $0x1f8] sm:$0xff]  }
  0x61   :  { %9712 = vmatpush3.bf16.msra.mxu0 %v10843_v10  ;;  %v10860_v27 = vld [vmem:[#allocation5 + $0x88] sm:$0xff]   ;;  %v10864_v31 = vld [vmem:[#allocation5 + $0x80] sm:$0xff]   ;;  %v10871_v40 = vld [vmem:[#allocation5 + $0x138] sm:$0xff]  }
  0x62   :  { %9734 = vmatpush3.bf16.msra.mxu1 %v10844_v11  ;;  %9713 = vmatprep.subr.bf16.mxu0 %v10845_v12  ;;  %v115_v32 = vld [vmem:[#allocation2] sm:$0xff]  ;;  %v116_v33 = vld [vmem:[#allocation2 + $0x8] sm:$0xff]  ;;  %v10872_v41 = vld [vmem:[#allocation5 + $0x1b8] sm:$0xff]  }
  0x63   :  { %9735 = vmatprep.subr.bf16.mxu1 %v10846_v13  ;;  %v8825_v34 = vcombine.low %v115_v32, %v115_v32  ;;  %v8826_v35 = vcombine.high %v115_v32, %v115_v32  ;;  %v8827_v36 = vcombine.low %v116_v33, %v116_v33  ;;  %v8828_v37 = vcombine.high %v116_v33, %v116_v33  ;;  %v10873_v42 = vld [vmem:[#allocation5 + $0x170] sm:$0xff]   ;;  %v10877_v46 = vld [vmem:[#allocation5 + $0x168] sm:$0xff]   ;;  %v10881_v50 = vld [vmem:[#allocation5 + $0x160] sm:$0xff]  }
  0x64   :  { %v10874_v43 = vld [vmem:[#allocation5 + $0x1f0] sm:$0xff]   ;;  %v10878_v47 = vld [vmem:[#allocation5 + $0x1e8] sm:$0xff]   ;;  %v10882_v51 = vld [vmem:[#allocation5 + $0x1e0] sm:$0xff]  }
  0x65   :  { %9714 = vmatpush3.bf16.msra.mxu0 %v10847_v14  ;;  %6682 = vmatprep.mubr.bf16.mxu0 %v8826_v35  ;;  %v10875_v44 = vld [vmem:[#allocation5 + $0x130] sm:$0xff]   ;;  %v10879_v48 = vld [vmem:[#allocation5 + $0x128] sm:$0xff]   ;;  %v10883_v52 = vld [vmem:[#allocation5 + $0x120] sm:$0xff]  }
  0x66   :  { %9736 = vmatpush3.bf16.msra.mxu1 %v10848_v15  ;;  %9715 = vmatprep.subr.bf16.mxu0 %v10849_v16  ;;  %v10876_v45 = vld [vmem:[#allocation5 + $0x1b0] sm:$0xff]   ;;  %v10880_v49 = vld [vmem:[#allocation5 + $0x1a8] sm:$0xff]   ;;  %v10884_v53 = vld [vmem:[#allocation5 + $0x1a0] sm:$0xff]  }
  0x67   :  { %9737 = vmatprep.subr.bf16.mxu1 %v10850_v17  ;;  %6722 = vmatprep.mubr.bf16.mxu1 %v8828_v37  ;;  %v10885_v54 = vld [vmem:[#allocation5 + $0x158] sm:$0xff]   ;;  %v10889_v58 = vld [vmem:[#allocation5 + $0x150] sm:$0xff]   ;;  %v10893_v62 = vld [vmem:[#allocation5 + $0x148] sm:$0xff]  }
  0x68   :  { %v10886_v55 = vld [vmem:[#allocation5 + $0x1d8] sm:$0xff]   ;;  %v10890_v59 = vld [vmem:[#allocation5 + $0x1d0] sm:$0xff]   ;;  %v10894_v63 = vld [vmem:[#allocation5 + $0x1c8] sm:$0xff]  }
  0x69   :  { %9716 = vmatpush3.bf16.msra.mxu0 %v10851_v18  ;;  %v10887_v56 = vld [vmem:[#allocation5 + $0x118] sm:$0xff]   ;;  %v10891_v60 = vld [vmem:[#allocation5 + $0x110] sm:$0xff]   ;;  %v10895_v0 = vld [vmem:[#allocation5 + $0x108] sm:$0xff]  }
  0x6a   :  { %9738 = vmatpush3.bf16.msra.mxu1 %v10852_v19  ;;  %9717 = vmatprep.subr.bf16.mxu0 %v10853_v20  ;;  %v10888_v57 = vld [vmem:[#allocation5 + $0x198] sm:$0xff]   ;;  %v10892_v61 = vld [vmem:[#allocation5 + $0x190] sm:$0xff]   ;;  %v10896_v1 = vld [vmem:[#allocation5 + $0x188] sm:$0xff]  }
  0x6b   :  { %9739 = vmatprep.subr.bf16.mxu1 %v10854_v21  ;;  %v10897_v2 = vld [vmem:[#allocation5 + $0x140] sm:$0xff]   ;;  %v117_v6 = vld [vmem:[#allocation2 + $0x10] sm:$0xff]  ;;  %v118_v9 = vld [vmem:[#allocation2 + $0x18] sm:$0xff] }
  0x6c   :  { %v10898_v3 = vld [vmem:[#allocation5 + $0x1c0] sm:$0xff]   ;;  %v8829_v7 = vcombine.low %v117_v6, %v117_v6  ;;  %v8830_v8 = vcombine.high %v117_v6, %v117_v6  ;;  %v8831_v10 = vcombine.low %v118_v9, %v118_v9  ;;  %v8832_v11 = vcombine.high %v118_v9, %v118_v9  ;;  %v10905_v12 = vld [vmem:[#allocation5 + $0x278] sm:$0xff]   ;;  %v10909_v16 = vld [vmem:[#allocation5 + $0x270] sm:$0xff]  }
  0x6d   :  { %9718 = vmatpush3.bf16.msra.mxu0 %v10855_v22  ;;  %v10899_v4 = vld [vmem:[#allocation5 + $0x100] sm:$0xff]   ;;  %v10906_v13 = vld [vmem:[#allocation5 + $0x2f8] sm:$0xff]   ;;  %v10910_v17 = vld [vmem:[#allocation5 + $0x2f0] sm:$0xff]  }
  0x6e   :  { %9740 = vmatpush3.bf16.msra.mxu1 %v10856_v23  ;;  %9719 = vmatprep.subr.bf16.mxu0 %v10857_v24  ;;  %v10900_v5 = vld [vmem:[#allocation5 + $0x180] sm:$0xff]   ;;  %v10907_v14 = vld [vmem:[#allocation5 + $0x238] sm:$0xff]   ;;  %v10911_v18 = vld [vmem:[#allocation5 + $0x230] sm:$0xff]  }
  0x6f   :  { %9741 = vmatprep.subr.bf16.mxu1 %v10858_v25  ;;  %v10908_v15 = vld [vmem:[#allocation5 + $0x2b8] sm:$0xff]   ;;  %v10912_v19 = vld [vmem:[#allocation5 + $0x2b0] sm:$0xff]   ;;  %v10913_v20 = vld [vmem:[#allocation5 + $0x268] sm:$0xff]  }
  0x70   :  { %v10914_v21 = vld [vmem:[#allocation5 + $0x2e8] sm:$0xff]   ;;  %v10917_v24 = vld [vmem:[#allocation5 + $0x260] sm:$0xff]   ;;  %v10925_v32 = vld [vmem:[#allocation5 + $0x250] sm:$0xff]  }
  0x71   :  { %9720 = vmatpush3.bf16.msra.mxu0 %v10859_v26  ;;  %v10915_v22 = vld [vmem:[#allocation5 + $0x228] sm:$0xff]   ;;  %v10918_v25 = vld [vmem:[#allocation5 + $0x2e0] sm:$0xff]   ;;  %v10926_v33 = vld [vmem:[#allocation5 + $0x2d0] sm:$0xff]  }
  0x72   :  { %9742 = vmatpush3.bf16.msra.mxu1 %v10860_v27  ;;  %9721 = vmatprep.subr.bf16.mxu0 %v10861_v28  ;;  %v10916_v23 = vld [vmem:[#allocation5 + $0x2a8] sm:$0xff]   ;;  %v10919_v26 = vld [vmem:[#allocation5 + $0x220] sm:$0xff]   ;;  %v10921_v28 = vld [vmem:[#allocation5 + $0x258] sm:$0xff]  }
  0x73   :  { %9743 = vmatprep.subr.bf16.mxu1 %v10862_v29  ;;  %v10920_v27 = vld [vmem:[#allocation5 + $0x2a0] sm:$0xff]   ;;  %v10922_v29 = vld [vmem:[#allocation5 + $0x2d8] sm:$0xff]   ;;  %v10928_v35 = vld [vmem:[#allocation5 + $0x290] sm:$0xff]  }
  0x74   :  { %v10930_v37 = vld [vmem:[#allocation5 + $0x2c8] sm:$0xff]   ;;  %v10961_v6 = vld [vmem:[#allocation5 + $0x350] sm:$0xff]  }
  0x75   :  { %9722 = vmatpush3.bf16.msra.mxu0 %v10863_v30  ;;  %v10923_v30 = vld [vmem:[#allocation5 + $0x218] sm:$0xff]   ;;  %v10964_v9 = vld [vmem:[#allocation5 + $0x390] sm:$0xff]  }
  0x76   :  { %9744 = vmatpush3.bf16.msra.mxu1 %v10864_v31  ;;  %9751 = vmatprep.subr.bf16.mxu0 %v10869_v38  ;;  %v10924_v31 = vld [vmem:[#allocation5 + $0x298] sm:$0xff]   ;;  %v10931_v38 = vld [vmem:[#allocation5 + $0x208] sm:$0xff]  }
  0x77   :  { %9773 = vmatprep.subr.bf16.mxu1 %v10870_v39  ;;  %v10932_v39 = vld [vmem:[#allocation5 + $0x288] sm:$0xff]  }
  0x78   :  { %6683 = vmatmul.mubr.bf16.vlgmr.msra.gmra.mxu0 %v8825_v34  ;;  %v10927_v34 = vld [vmem:[#allocation5 + $0x210] sm:$0xff]  }
  0x79   :  { %6723 = vmatmul.mubr.bf16.vlgmr.msra.gmra.mxu1 %v8827_v36  ;;  %9752 = vmatpush3.bf16.msra.mxu0 %v10871_v40  ;;  %v10929_v36 = vld [vmem:[#allocation5 + $0x248] sm:$0xff]   ;;  %v10933_v40 = vld [vmem:[#allocation5 + $0x240] sm:$0xff]  }
  0x7a   :  { %9774 = vmatpush3.bf16.msra.mxu1 %v10872_v41  ;;  %9753 = vmatprep.subr.bf16.mxu0 %v10873_v42  ;;  %v10934_v41 = vld [vmem:[#allocation5 + $0x2c0] sm:$0xff]  }
  0x7b   :  { %9775 = vmatprep.subr.bf16.mxu1 %v10874_v43  ;;  %6762 = vmatprep.mubr.bf16.mxu0 %v8830_v8  ;;  %v10935_v42 = vld [vmem:[#allocation5 + $0x200] sm:$0xff]   ;;  %v10963_v8 = vld [vmem:[#allocation5 + $0x310] sm:$0xff]  }
  0x7c   :  { %6802 = vmatprep.mubr.bf16.mxu1 %v8832_v11  ;;  %v10936_v43 = vld [vmem:[#allocation5 + $0x280] sm:$0xff]   ;;  %v10966_v11 = vld [vmem:[#allocation5 + $0x3c8] sm:$0xff]  }
  0x7d   :  { %9754 = vmatpush3.bf16.msra.mxu0 %v10875_v44  ;;  %v119_v44 = vld [vmem:[#allocation2 + $0x20] sm:$0xff] }
  0x7e   :  { %9776 = vmatpush3.bf16.msra.mxu1 %v10876_v45  ;;  %9755 = vmatprep.subr.bf16.mxu0 %v10877_v46  ;;  %v120_v45 = vld [vmem:[#allocation2 + $0x28] sm:$0xff]  ;;  %v8833_v46 = vcombine.low %v119_v44, %v119_v44 }
  0x7f   :  { %9777 = vmatprep.subr.bf16.mxu1 %v10878_v47  ;;  %v8834_v47 = vcombine.high %v119_v44, %v119_v44  ;;  %v10997_v44 = vld [vmem:[#allocation5 + $0x450] sm:$0xff]  }
  0x81   :  { %9756 = vmatpush3.bf16.msra.mxu0 %v10879_v48  ;;  %v8835_v48 = vcombine.low %v120_v45, %v120_v45 }
  0x82   :  { %9778 = vmatpush3.bf16.msra.mxu1 %v10880_v49  ;;  %9757 = vmatprep.subr.bf16.mxu0 %v10881_v50  ;;  %v8836_v49 = vcombine.high %v120_v45, %v120_v45  ;;  %v10941_v50 = vld [vmem:[#allocation5 + $0x378] sm:$0xff]   ;;  %v10998_v45 = vld [vmem:[#allocation5 + $0x4d0] sm:$0xff]  }
  0x83   :  { %9779 = vmatprep.subr.bf16.mxu1 %v10882_v51  ;;  %v10942_v51 = vld [vmem:[#allocation5 + $0x3f8] sm:$0xff]  }
  0x85   :  { %9758 = vmatpush3.bf16.msra.mxu0 %v10883_v52  ;;  %v10943_v52 = vld [vmem:[#allocation5 + $0x338] sm:$0xff]  }
  0x86   :  { %9780 = vmatpush3.bf16.msra.mxu1 %v10884_v53  ;;  %9759 = vmatprep.subr.bf16.mxu0 %v10885_v54  ;;  %v10944_v53 = vld [vmem:[#allocation5 + $0x3b8] sm:$0xff]   ;;  %v10945_v54 = vld [vmem:[#allocation5 + $0x370] sm:$0xff]  }
  0x87   :  { %9781 = vmatprep.subr.bf16.mxu1 %v10886_v55  ;;  %v10946_v55 = vld [vmem:[#allocation5 + $0x3f0] sm:$0xff]  }
  0x89   :  { %9760 = vmatpush3.bf16.msra.mxu0 %v10887_v56  ;;  %v10947_v56 = vld [vmem:[#allocation5 + $0x330] sm:$0xff]  }
  0x8a   :  { %9782 = vmatpush3.bf16.msra.mxu1 %v10888_v57  ;;  %9761 = vmatprep.subr.bf16.mxu0 %v10889_v58  ;;  %v10948_v57 = vld [vmem:[#allocation5 + $0x3b0] sm:$0xff]   ;;  %v10949_v58 = vld [vmem:[#allocation5 + $0x368] sm:$0xff]  }
  0x8b   :  { %9783 = vmatprep.subr.bf16.mxu1 %v10890_v59  ;;  %v10950_v59 = vld [vmem:[#allocation5 + $0x3e8] sm:$0xff]  }
  0x8d   :  { %9762 = vmatpush3.bf16.msra.mxu0 %v10891_v60  ;;  %v10951_v60 = vld [vmem:[#allocation5 + $0x328] sm:$0xff]  }
  0x8e   :  { %9784 = vmatpush3.bf16.msra.mxu1 %v10892_v61  ;;  %9763 = vmatprep.subr.bf16.mxu0 %v10893_v62  ;;  %v10952_v61 = vld [vmem:[#allocation5 + $0x3a8] sm:$0xff]   ;;  %v10953_v62 = vld [vmem:[#allocation5 + $0x360] sm:$0xff]  }
  0x8f   :  { %9785 = vmatprep.subr.bf16.mxu1 %v10894_v63  ;;  %v10954_v63 = vld [vmem:[#allocation5 + $0x3e0] sm:$0xff]  }
  0x91   :  { %9764 = vmatpush3.bf16.msra.mxu0 %v10895_v0  ;;  %v10955_v0 = vld [vmem:[#allocation5 + $0x320] sm:$0xff]  }
  0x92   :  { %9786 = vmatpush3.bf16.msra.mxu1 %v10896_v1  ;;  %9765 = vmatprep.subr.bf16.mxu0 %v10897_v2  ;;  %v10956_v1 = vld [vmem:[#allocation5 + $0x3a0] sm:$0xff]   ;;  %v10957_v2 = vld [vmem:[#allocation5 + $0x358] sm:$0xff]  }
  0x93   :  { %9787 = vmatprep.subr.bf16.mxu1 %v10898_v3  ;;  %v10958_v3 = vld [vmem:[#allocation5 + $0x3d8] sm:$0xff]  }
  0x95   :  { %9766 = vmatpush3.bf16.msra.mxu0 %v10899_v4  ;;  %v10959_v4 = vld [vmem:[#allocation5 + $0x318] sm:$0xff]  }
  0x96   :  { %9788 = vmatpush3.bf16.msra.mxu1 %v10900_v5  ;;  %9795 = vmatprep.subr.bf16.mxu0 %v10905_v12  ;;  %v10960_v5 = vld [vmem:[#allocation5 + $0x398] sm:$0xff]   ;;  %v10967_v12 = vld [vmem:[#allocation5 + $0x308] sm:$0xff]  }
  0x97   :  { %9817 = vmatprep.subr.bf16.mxu1 %v10906_v13  ;;  %v10968_v13 = vld [vmem:[#allocation5 + $0x388] sm:$0xff]  }
  0x98   :  { %6763 = vmatmul.mubr.bf16.vlgmr.msra.gmra.mxu0 %v8829_v7  ;;  %v10962_v7 = vld [vmem:[#allocation5 + $0x3d0] sm:$0xff]  }
  0x99   :  { %6803 = vmatmul.mubr.bf16.vlgmr.msra.gmra.mxu1 %v8831_v10  ;;  %9796 = vmatpush3.bf16.msra.mxu0 %v10907_v14  ;;  %v10965_v10 = vld [vmem:[#allocation5 + $0x348] sm:$0xff]   ;;  %v10969_v14 = vld [vmem:[#allocation5 + $0x340] sm:$0xff]  }
  0x9a   :  { %9818 = vmatpush3.bf16.msra.mxu1 %v10908_v15  ;;  %9797 = vmatprep.subr.bf16.mxu0 %v10909_v16  ;;  %v10970_v15 = vld [vmem:[#allocation5 + $0x3c0] sm:$0xff]  }
  0x9b   :  { %9819 = vmatprep.subr.bf16.mxu1 %v10910_v17  ;;  %6842 = vmatprep.mubr.bf16.mxu0 %v8834_v47  ;;  %v10971_v16 = vld [vmem:[#allocation5 + $0x300] sm:$0xff]   ;;  %v11000_v47 = vld [vmem:[#allocation5 + $0x490] sm:$0xff]  }
  0x9c   :  { %6882 = vmatprep.mubr.bf16.mxu1 %v8836_v49  ;;  %v10972_v17 = vld [vmem:[#allocation5 + $0x380] sm:$0xff]   ;;  %v11002_v49 = vld [vmem:[#allocation5 + $0x4c8] sm:$0xff]  }
  0x9d   :  { %9798 = vmatpush3.bf16.msra.mxu0 %v10911_v18  ;;  %v121_v18 = vld [vmem:[#allocation2 + $0x30] sm:$0xff] }
  0x9e   :  { %9820 = vmatpush3.bf16.msra.mxu1 %v10912_v19  ;;  %9799 = vmatprep.subr.bf16.mxu0 %v10913_v20  ;;  %v122_v19 = vld [vmem:[#allocation2 + $0x38] sm:$0xff]  ;;  %v8837_v20 = vcombine.low %v121_v18, %v121_v18 }
  0x9f   :  { %9821 = vmatprep.subr.bf16.mxu1 %v10914_v21  ;;  %v8838_v21 = vcombine.high %v121_v18, %v121_v18  ;;  %v11033_v18 = vld [vmem:[#allocation5 + $0x550] sm:$0xff]  }
  0xa1   :  { %9800 = vmatpush3.bf16.msra.mxu0 %v10915_v22  ;;  %v8839_v22 = vcombine.low %v122_v19, %v122_v19 }
  0xa2   :  { %9822 = vmatpush3.bf16.msra.mxu1 %v10916_v23  ;;  %9801 = vmatprep.subr.bf16.mxu0 %v10917_v24  ;;  %v10977_v23 = vld [vmem:[#allocation5 + $0x478] sm:$0xff]   ;;  %v8840_v24 = vcombine.high %v122_v19, %v122_v19  ;;  %v11034_v19 = vld [vmem:[#allocation5 + $0x5d0] sm:$0xff]  }
  0xa3   :  { %9823 = vmatprep.subr.bf16.mxu1 %v10918_v25  ;;  %v10978_v25 = vld [vmem:[#allocation5 + $0x4f8] sm:$0xff]  }
  0xa5   :  { %9802 = vmatpush3.bf16.msra.mxu0 %v10919_v26  ;;  %v10979_v26 = vld [vmem:[#allocation5 + $0x438] sm:$0xff]  }
  0xa6   :  { %9824 = vmatpush3.bf16.msra.mxu1 %v10920_v27  ;;  %9803 = vmatprep.subr.bf16.mxu0 %v10921_v28  ;;  %v10980_v27 = vld [vmem:[#allocation5 + $0x4b8] sm:$0xff]   ;;  %v10981_v28 = vld [vmem:[#allocation5 + $0x470] sm:$0xff]  }
  0xa7   :  { %9825 = vmatprep.subr.bf16.mxu1 %v10922_v29  ;;  %v10982_v29 = vld [vmem:[#allocation5 + $0x4f0] sm:$0xff]  }
  0xa9   :  { %9804 = vmatpush3.bf16.msra.mxu0 %v10923_v30  ;;  %v10983_v30 = vld [vmem:[#allocation5 + $0x430] sm:$0xff]  }
  0xaa   :  { %9826 = vmatpush3.bf16.msra.mxu1 %v10924_v31  ;;  %9805 = vmatprep.subr.bf16.mxu0 %v10925_v32  ;;  %v10984_v31 = vld [vmem:[#allocation5 + $0x4b0] sm:$0xff]   ;;  %v10985_v32 = vld [vmem:[#allocation5 + $0x468] sm:$0xff]  }
  0xab   :  { %9827 = vmatprep.subr.bf16.mxu1 %v10926_v33  ;;  %v10986_v33 = vld [vmem:[#allocation5 + $0x4e8] sm:$0xff]  }
  0xad   :  { %9806 = vmatpush3.bf16.msra.mxu0 %v10927_v34  ;;  %v10987_v34 = vld [vmem:[#allocation5 + $0x428] sm:$0xff]  }
  0xae   :  { %9828 = vmatpush3.bf16.msra.mxu1 %v10928_v35  ;;  %9807 = vmatprep.subr.bf16.mxu0 %v10929_v36  ;;  %v10988_v35 = vld [vmem:[#allocation5 + $0x4a8] sm:$0xff]   ;;  %v10989_v36 = vld [vmem:[#allocation5 + $0x460] sm:$0xff]  }
  0xaf   :  { %9829 = vmatprep.subr.bf16.mxu1 %v10930_v37  ;;  %v10990_v37 = vld [vmem:[#allocation5 + $0x4e0] sm:$0xff]  }
  0xb1   :  { %9808 = vmatpush3.bf16.msra.mxu0 %v10931_v38  ;;  %v10991_v38 = vld [vmem:[#allocation5 + $0x420] sm:$0xff]  }
  0xb2   :  { %9830 = vmatpush3.bf16.msra.mxu1 %v10932_v39  ;;  %9809 = vmatprep.subr.bf16.mxu0 %v10933_v40  ;;  %v10992_v39 = vld [vmem:[#allocation5 + $0x4a0] sm:$0xff]   ;;  %v10993_v40 = vld [vmem:[#allocation5 + $0x458] sm:$0xff]  }
  0xb3   :  { %9831 = vmatprep.subr.bf16.mxu1 %v10934_v41  ;;  %v10994_v41 = vld [vmem:[#allocation5 + $0x4d8] sm:$0xff]  }
  0xb5   :  { %9810 = vmatpush3.bf16.msra.mxu0 %v10935_v42  ;;  %v10995_v42 = vld [vmem:[#allocation5 + $0x418] sm:$0xff]  }
  0xb6   :  { %9832 = vmatpush3.bf16.msra.mxu1 %v10936_v43  ;;  %9839 = vmatprep.subr.bf16.mxu0 %v10941_v50  ;;  %v10996_v43 = vld [vmem:[#allocation5 + $0x498] sm:$0xff]   ;;  %v11003_v50 = vld [vmem:[#allocation5 + $0x408] sm:$0xff]  }
  0xb7   :  { %9861 = vmatprep.subr.bf16.mxu1 %v10942_v51  ;;  %v11004_v51 = vld [vmem:[#allocation5 + $0x488] sm:$0xff]  }
  0xb8   :  { %6843 = vmatmul.mubr.bf16.vlgmr.msra.gmra.mxu0 %v8833_v46  ;;  %v10999_v46 = vld [vmem:[#allocation5 + $0x410] sm:$0xff]  }
  0xb9   :  { %6883 = vmatmul.mubr.bf16.vlgmr.msra.gmra.mxu1 %v8835_v48  ;;  %9840 = vmatpush3.bf16.msra.mxu0 %v10943_v52  ;;  %v11001_v48 = vld [vmem:[#allocation5 + $0x448] sm:$0xff]   ;;  %v11005_v52 = vld [vmem:[#allocation5 + $0x440] sm:$0xff]  }
  0xba   :  { %9862 = vmatpush3.bf16.msra.mxu1 %v10944_v53  ;;  %9841 = vmatprep.subr.bf16.mxu0 %v10945_v54  ;;  %v11006_v53 = vld [vmem:[#allocation5 + $0x4c0] sm:$0xff]  }
  0xbb   :  { %9863 = vmatprep.subr.bf16.mxu1 %v10946_v55  ;;  %6922 = vmatprep.mubr.bf16.mxu0 %v8838_v21  ;;  %v11007_v54 = vld [vmem:[#allocation5 + $0x400] sm:$0xff]   ;;  %v11036_v21 = vld [vmem:[#allocation5 + $0x590] sm:$0xff]  }
  0xbc   :  { %6962 = vmatprep.mubr.bf16.mxu1 %v8840_v24  ;;  %v11008_v55 = vld [vmem:[#allocation5 + $0x480] sm:$0xff]   ;;  %v11039_v24 = vld [vmem:[#allocation5 + $0x508] sm:$0xff]  }
  0xbd   :  { %9842 = vmatpush3.bf16.msra.mxu0 %v10947_v56  ;;  %v123_v56 = vld [vmem:[#allocation2 + $0x40] sm:$0xff] }
  0xbe   :  { %9864 = vmatpush3.bf16.msra.mxu1 %v10948_v57  ;;  %9843 = vmatprep.subr.bf16.mxu0 %v10949_v58  ;;  %v8841_v57 = vcombine.low %v123_v56, %v123_v56  ;;  %v8842_v58 = vcombine.high %v123_v56, %v123_v56  ;;  %v11069_v56 = vld [vmem:[#allocation5 + $0x650] sm:$0xff]  }
  0xbf   :  { %9865 = vmatprep.subr.bf16.mxu1 %v10950_v59  ;;  %v124_v59 = vld [vmem:[#allocation2 + $0x48] sm:$0xff] }
  0xc1   :  { %9844 = vmatpush3.bf16.msra.mxu0 %v10951_v60  ;;  %v8843_v60 = vcombine.low %v124_v59, %v124_v59 }
  0xc2   :  { %9866 = vmatpush3.bf16.msra.mxu1 %v10952_v61  ;;  %9845 = vmatprep.subr.bf16.mxu0 %v10953_v62  ;;  %v8844_v61 = vcombine.high %v124_v59, %v124_v59  ;;  %v11013_v62 = vld [vmem:[#allocation5 + $0x578] sm:$0xff]   ;;  %v11072_v59 = vld [vmem:[#allocation5 + $0x690] sm:$0xff]  }
  0xc3   :  { %9867 = vmatprep.subr.bf16.mxu1 %v10954_v63  ;;  %v11014_v63 = vld [vmem:[#allocation5 + $0x5f8] sm:$0xff]  }
  0xc5   :  { %9846 = vmatpush3.bf16.msra.mxu0 %v10955_v0  ;;  %v11015_v0 = vld [vmem:[#allocation5 + $0x538] sm:$0xff]  }
  0xc6   :  { %9868 = vmatpush3.bf16.msra.mxu1 %v10956_v1  ;;  %9847 = vmatprep.subr.bf16.mxu0 %v10957_v2  ;;  %v11016_v1 = vld [vmem:[#allocation5 + $0x5b8] sm:$0xff]   ;;  %v11017_v2 = vld [vmem:[#allocation5 + $0x570] sm:$0xff]  }
  0xc7   :  { %9869 = vmatprep.subr.bf16.mxu1 %v10958_v3  ;;  %v11018_v3 = vld [vmem:[#allocation5 + $0x5f0] sm:$0xff]  }
  0xc9   :  { %9848 = vmatpush3.bf16.msra.mxu0 %v10959_v4  ;;  %v11019_v4 = vld [vmem:[#allocation5 + $0x530] sm:$0xff]  }
  0xca   :  { %9870 = vmatpush3.bf16.msra.mxu1 %v10960_v5  ;;  %9849 = vmatprep.subr.bf16.mxu0 %v10961_v6  ;;  %v11020_v5 = vld [vmem:[#allocation5 + $0x5b0] sm:$0xff]   ;;  %v11021_v6 = vld [vmem:[#allocation5 + $0x568] sm:$0xff]  }
  0xcb   :  { %9871 = vmatprep.subr.bf16.mxu1 %v10962_v7  ;;  %v11022_v7 = vld [vmem:[#allocation5 + $0x5e8] sm:$0xff]  }
  0xcd   :  { %9850 = vmatpush3.bf16.msra.mxu0 %v10963_v8  ;;  %v11023_v8 = vld [vmem:[#allocation5 + $0x528] sm:$0xff]  }
  0xce   :  { %9872 = vmatpush3.bf16.msra.mxu1 %v10964_v9  ;;  %9851 = vmatprep.subr.bf16.mxu0 %v10965_v10  ;;  %v11024_v9 = vld [vmem:[#allocation5 + $0x5a8] sm:$0xff]   ;;  %v11025_v10 = vld [vmem:[#allocation5 + $0x560] sm:$0xff]  }
  0xcf   :  { %9873 = vmatprep.subr.bf16.mxu1 %v10966_v11  ;;  %v11026_v11 = vld [vmem:[#allocation5 + $0x5e0] sm:$0xff]  }
  0xd1   :  { %9852 = vmatpush3.bf16.msra.mxu0 %v10967_v12  ;;  %v11027_v12 = vld [vmem:[#allocation5 + $0x520] sm:$0xff]  }
  0xd2   :  { %9874 = vmatpush3.bf16.msra.mxu1 %v10968_v13  ;;  %9853 = vmatprep.subr.bf16.mxu0 %v10969_v14  ;;  %v11028_v13 = vld [vmem:[#allocation5 + $0x5a0] sm:$0xff]   ;;  %v11029_v14 = vld [vmem:[#allocation5 + $0x558] sm:$0xff]  }
  0xd3   :  { %9875 = vmatprep.subr.bf16.mxu1 %v10970_v15  ;;  %v11030_v15 = vld [vmem:[#allocation5 + $0x5d8] sm:$0xff]  }
  0xd5   :  { %9854 = vmatpush3.bf16.msra.mxu0 %v10971_v16  ;;  %v11031_v16 = vld [vmem:[#allocation5 + $0x518] sm:$0xff]  }
  0xd6   :  { %9876 = vmatpush3.bf16.msra.mxu1 %v10972_v17  ;;  %9883 = vmatprep.subr.bf16.mxu0 %v10977_v23  ;;  %v11032_v17 = vld [vmem:[#allocation5 + $0x598] sm:$0xff]   ;;  %v11038_v23 = vld [vmem:[#allocation5 + $0x5c8] sm:$0xff]  }
  0xd7   :  { %9905 = vmatprep.subr.bf16.mxu1 %v10978_v25  ;;  %v11040_v25 = vld [vmem:[#allocation5 + $0x588] sm:$0xff]  }
  0xd8   :  { %6923 = vmatmul.mubr.bf16.vlgmr.msra.gmra.mxu0 %v8837_v20  ;;  %v11035_v20 = vld [vmem:[#allocation5 + $0x510] sm:$0xff]  }
  0xd9   :  { %6963 = vmatmul.mubr.bf16.vlgmr.msra.gmra.mxu1 %v8839_v22  ;;  %9884 = vmatpush3.bf16.msra.mxu0 %v10979_v26  ;;  %v11037_v22 = vld [vmem:[#allocation5 + $0x548] sm:$0xff]   ;;  %v11041_v26 = vld [vmem:[#allocation5 + $0x540] sm:$0xff]  }
  0xda   :  { %9906 = vmatpush3.bf16.msra.mxu1 %v10980_v27  ;;  %9885 = vmatprep.subr.bf16.mxu0 %v10981_v28  ;;  %v11042_v27 = vld [vmem:[#allocation5 + $0x5c0] sm:$0xff]  }
  0xdb   :  { %9907 = vmatprep.subr.bf16.mxu1 %v10982_v29  ;;  %7002 = vmatprep.mubr.bf16.mxu0 %v8842_v58  ;;  %v11043_v28 = vld [vmem:[#allocation5 + $0x500] sm:$0xff]   ;;  %v11071_v58 = vld [vmem:[#allocation5 + $0x610] sm:$0xff]  }
  0xdc   :  { %7042 = vmatprep.mubr.bf16.mxu1 %v8844_v61  ;;  %v11044_v29 = vld [vmem:[#allocation5 + $0x580] sm:$0xff]   ;;  %v11074_v61 = vld [vmem:[#allocation5 + $0x6c8] sm:$0xff]  }
  0xdd   :  { %9886 = vmatpush3.bf16.msra.mxu0 %v10983_v30  ;;  %v125_v30 = vld [vmem:[#allocation2 + $0x50] sm:$0xff] }
  0xde   :  { %9908 = vmatpush3.bf16.msra.mxu1 %v10984_v31  ;;  %9887 = vmatprep.subr.bf16.mxu0 %v10985_v32  ;;  %v126_v31 = vld [vmem:[#allocation2 + $0x58] sm:$0xff]  ;;  %v8845_v32 = vcombine.low %v125_v30, %v125_v30 }
  0xdf   :  { %9909 = vmatprep.subr.bf16.mxu1 %v10986_v33  ;;  %v8846_v33 = vcombine.high %v125_v30, %v125_v30  ;;  %v11092_v30 = vld [vmem:[#allocation5 + $0x7b0] sm:$0xff]  }
  0xe1   :  { %9888 = vmatpush3.bf16.msra.mxu0 %v10987_v34  ;;  %v8847_v34 = vcombine.low %v126_v31, %v126_v31 }
  0xe2   :  { %9910 = vmatpush3.bf16.msra.mxu1 %v10988_v35  ;;  %9889 = vmatprep.subr.bf16.mxu0 %v10989_v36  ;;  %v8848_v35 = vcombine.high %v126_v31, %v126_v31  ;;  %v11049_v36 = vld [vmem:[#allocation5 + $0x678] sm:$0xff]   ;;  %v11093_v31 = vld [vmem:[#allocation5 + $0x768] sm:$0xff]  }
  0xe3   :  { %9911 = vmatprep.subr.bf16.mxu1 %v10990_v37  ;;  %v11050_v37 = vld [vmem:[#allocation5 + $0x6f8] sm:$0xff]  }
  0xe5   :  { %9890 = vmatpush3.bf16.msra.mxu0 %v10991_v38  ;;  %v11051_v38 = vld [vmem:[#allocation5 + $0x638] sm:$0xff]  }
  0xe6   :  { %9912 = vmatpush3.bf16.msra.mxu1 %v10992_v39  ;;  %9891 = vmatprep.subr.bf16.mxu0 %v10993_v40  ;;  %v11052_v39 = vld [vmem:[#allocation5 + $0x6b8] sm:$0xff]   ;;  %v11053_v40 = vld [vmem:[#allocation5 + $0x670] sm:$0xff]  }
  0xe7   :  { %9913 = vmatprep.subr.bf16.mxu1 %v10994_v41  ;;  %v11054_v41 = vld [vmem:[#allocation5 + $0x6f0] sm:$0xff]  }
  0xe9   :  { %9892 = vmatpush3.bf16.msra.mxu0 %v10995_v42  ;;  %v11055_v42 = vld [vmem:[#allocation5 + $0x630] sm:$0xff]  }
  0xea   :  { %9914 = vmatpush3.bf16.msra.mxu1 %v10996_v43  ;;  %9893 = vmatprep.subr.bf16.mxu0 %v10997_v44  ;;  %v11056_v43 = vld [vmem:[#allocation5 + $0x6b0] sm:$0xff]   ;;  %v11057_v44 = vld [vmem:[#allocation5 + $0x668] sm:$0xff]  }
  0xeb   :  { %9915 = vmatprep.subr.bf16.mxu1 %v10998_v45  ;;  %v11058_v45 = vld [vmem:[#allocation5 + $0x6e8] sm:$0xff]  }
  0xed   :  { %9894 = vmatpush3.bf16.msra.mxu0 %v10999_v46  ;;  %v11059_v46 = vld [vmem:[#allocation5 + $0x628] sm:$0xff]  }
  0xee   :  { %9916 = vmatpush3.bf16.msra.mxu1 %v11000_v47  ;;  %9895 = vmatprep.subr.bf16.mxu0 %v11001_v48  ;;  %v11060_v47 = vld [vmem:[#allocation5 + $0x6a8] sm:$0xff]   ;;  %v11061_v48 = vld [vmem:[#allocation5 + $0x660] sm:$0xff]  }
  0xef   :  { %9917 = vmatprep.subr.bf16.mxu1 %v11002_v49  ;;  %v11062_v49 = vld [vmem:[#allocation5 + $0x6e0] sm:$0xff]  }
  0xf1   :  { %9896 = vmatpush3.bf16.msra.mxu0 %v11003_v50  ;;  %v11063_v50 = vld [vmem:[#allocation5 + $0x620] sm:$0xff]  }
  0xf2   :  { %9918 = vmatpush3.bf16.msra.mxu1 %v11004_v51  ;;  %9897 = vmatprep.subr.bf16.mxu0 %v11005_v52  ;;  %v11064_v51 = vld [vmem:[#allocation5 + $0x6a0] sm:$0xff]   ;;  %v11065_v52 = vld [vmem:[#allocation5 + $0x658] sm:$0xff]  }
  0xf3   :  { %9919 = vmatprep.subr.bf16.mxu1 %v11006_v53  ;;  %v11066_v53 = vld [vmem:[#allocation5 + $0x6d8] sm:$0xff]  }
  0xf5   :  { %9898 = vmatpush3.bf16.msra.mxu0 %v11007_v54  ;;  %v11067_v54 = vld [vmem:[#allocation5 + $0x618] sm:$0xff]  }
  0xf6   :  { %9920 = vmatpush3.bf16.msra.mxu1 %v11008_v55  ;;  %9927 = vmatprep.subr.bf16.mxu0 %v11013_v62  ;;  %v11068_v55 = vld [vmem:[#allocation5 + $0x698] sm:$0xff]   ;;  %v11075_v62 = vld [vmem:[#allocation5 + $0x608] sm:$0xff]  }
  0xf7   :  { %9949 = vmatprep.subr.bf16.mxu1 %v11014_v63  ;;  %v11076_v63 = vld [vmem:[#allocation5 + $0x688] sm:$0xff]  }
  0xf8   :  { %7003 = vmatmul.mubr.bf16.vlgmr.msra.gmra.mxu0 %v8841_v57  ;;  %v11070_v57 = vld [vmem:[#allocation5 + $0x6d0] sm:$0xff]  }
  0xf9   :  { %7043 = vmatmul.mubr.bf16.vlgmr.msra.gmra.mxu1 %v8843_v60  ;;  %9928 = vmatpush3.bf16.msra.mxu0 %v11015_v0  ;;  %v11073_v60 = vld [vmem:[#allocation5 + $0x648] sm:$0xff]   ;;  %v11077_v0 = vld [vmem:[#allocation5 + $0x640] sm:$0xff]  }
  0xfa   :  { %9950 = vmatpush3.bf16.msra.mxu1 %v11016_v1  ;;  %9929 = vmatprep.subr.bf16.mxu0 %v11017_v2  ;;  %v11078_v1 = vld [vmem:[#allocation5 + $0x6c0] sm:$0xff]  }
  0xfb   :  { %9951 = vmatprep.subr.bf16.mxu1 %v11018_v3  ;;  %7082 = vmatprep.mubr.bf16.mxu0 %v8846_v33  ;;  %v11079_v2 = vld [vmem:[#allocation5 + $0x600] sm:$0xff]   ;;  %v11095_v33 = vld [vmem:[#allocation5 + $0x728] sm:$0xff]  }
  0xfc   :  { %7122 = vmatprep.mubr.bf16.mxu1 %v8848_v35  ;;  %v11080_v3 = vld [vmem:[#allocation5 + $0x680] sm:$0xff]  }
  0xfd   :  { %9930 = vmatpush3.bf16.msra.mxu0 %v11019_v4  ;;  %v127_v4 = vld [vmem:[#allocation2 + $0x60] sm:$0xff] }
  0xfe   :  { %9952 = vmatpush3.bf16.msra.mxu1 %v11020_v5  ;;  %9931 = vmatprep.subr.bf16.mxu0 %v11021_v6  ;;  %v128_v5 = vld [vmem:[#allocation2 + $0x68] sm:$0xff]  ;;  %v11097_v35 = vld [vmem:[#allocation5 + $0x760] sm:$0xff]  }
  0xff   :  { %9953 = vmatprep.subr.bf16.mxu1 %v11022_v7 }
 0x101   :  { %9932 = vmatpush3.bf16.msra.mxu0 %v11023_v8  ;;  %v8849_v8 = vcombine.low %v127_v4, %v127_v4 }
 0x102   :  { %9954 = vmatpush3.bf16.msra.mxu1 %v11024_v9  ;;  %9933 = vmatprep.subr.bf16.mxu0 %v11025_v10  ;;  %v8850_v9 = vcombine.high %v127_v4, %v127_v4  ;;  %v8851_v10 = vcombine.low %v128_v5, %v128_v5 }
 0x103   :  { %9955 = vmatprep.subr.bf16.mxu1 %v11026_v11  ;;  %v11085_v11 = vld [vmem:[#allocation5 + $0x778] sm:$0xff]  }
 0x105   :  { %9934 = vmatpush3.bf16.msra.mxu0 %v11027_v12  ;;  %v8852_v12 = vcombine.high %v128_v5, %v128_v5 }
 0x106   :  { %9956 = vmatpush3.bf16.msra.mxu1 %v11028_v13  ;;  %9935 = vmatprep.subr.bf16.mxu0 %v11029_v14  ;;  %v11086_v13 = vld [vmem:[#allocation5 + $0x7f8] sm:$0xff]  }
 0x107   :  { %9957 = vmatprep.subr.bf16.mxu1 %v11030_v15 }
 0x109   :  { %9936 = vmatpush3.bf16.msra.mxu0 %v11031_v16  ;;  %v11087_v16 = vld [vmem:[#allocation5 + $0x738] sm:$0xff]  }
 0x10a   :  { %9958 = vmatpush3.bf16.msra.mxu1 %v11032_v17  ;;  %9937 = vmatprep.subr.bf16.mxu0 %v11033_v18 }
 0x10b   :  { %9959 = vmatprep.subr.bf16.mxu1 %v11034_v19  ;;  %v11088_v19 = vld [vmem:[#allocation5 + $0x7b8] sm:$0xff]  }
 0x10d   :  { %9938 = vmatpush3.bf16.msra.mxu0 %v11035_v20  ;;  %v8824_v20 = vld [vmem:[#allocation7] ss:$0 sm:$0xff] }
 0x10e   :  { %9960 = vmatpush3.bf16.msra.mxu1 %v11036_v21  ;;  %9939 = vmatprep.subr.bf16.mxu0 %v11037_v22 }
 0x10f   :  { %9961 = vmatprep.subr.bf16.mxu1 %v11038_v23 }
 0x111   :  { %9940 = vmatpush3.bf16.msra.mxu0 %v11039_v24  ;;  %v11089_v24 = vld [vmem:[#allocation5 + $0x770] sm:$0xff]  }
 0x112   :  { %9962 = vmatpush3.bf16.msra.mxu1 %v11040_v25  ;;  %9941 = vmatprep.subr.bf16.mxu0 %v11041_v26  ;;  %v11090_v25 = vld [vmem:[#allocation5 + $0x7f0] sm:$0xff]  }
 0x113   :  { %9963 = vmatprep.subr.bf16.mxu1 %v11042_v27 }
 0x115   :  { %9942 = vmatpush3.bf16.msra.mxu0 %v11043_v28 }
 0x116   :  { %9964 = vmatpush3.bf16.msra.mxu1 %v11044_v29  ;;  %9971 = vmatprep.subr.bf16.mxu0 %v11049_v36  ;;  %v11091_v29 = vld [vmem:[#allocation5 + $0x730] sm:$0xff]   ;;  %v11098_v36 = vld [vmem:[#allocation5 + $0x7e0] sm:$0xff]  }
 0x117   :  { %9993 = vmatprep.subr.bf16.mxu1 %v11050_v37  ;;  %v11099_v37 = vld [vmem:[#allocation5 + $0x720] sm:$0xff]  }
 0x118   :  { %7083 = vmatmul.mubr.bf16.vlgmr.msra.gmra.mxu0 %v8845_v32  ;;  %v11094_v32 = vld [vmem:[#allocation5 + $0x7e8] sm:$0xff]  }
 0x119   :  { %7123 = vmatmul.mubr.bf16.vlgmr.msra.gmra.mxu1 %v8847_v34  ;;  %9972 = vmatpush3.bf16.msra.mxu0 %v11051_v38  ;;  %v11096_v34 = vld [vmem:[#allocation5 + $0x7a8] sm:$0xff]   ;;  %v11100_v38 = vld [vmem:[#allocation5 + $0x7a0] sm:$0xff]  }
 0x11a   :  { %9994 = vmatpush3.bf16.msra.mxu1 %v11052_v39  ;;  %9973 = vmatprep.subr.bf16.mxu0 %v11053_v40  ;;  %v11101_v39 = vld [vmem:[#allocation5 + $0x758] sm:$0xff]  }
 0x11b   :  { %9995 = vmatprep.subr.bf16.mxu1 %v11054_v41  ;;  %7162 = vmatprep.mubr.bf16.mxu0 %v8850_v9  ;;  %v11102_v40 = vld [vmem:[#allocation5 + $0x7d8] sm:$0xff]  }
 0x11c   :  { %7202 = vmatprep.mubr.bf16.mxu1 %v8852_v12  ;;  %v11103_v41 = vld [vmem:[#allocation5 + $0x718] sm:$0xff]  }
 0x11d   :  { %9974 = vmatpush3.bf16.msra.mxu0 %v11055_v42  ;;  %v11104_v42 = vld [vmem:[#allocation5 + $0x798] sm:$0xff]  }
 0x11e   :  { %9996 = vmatpush3.bf16.msra.mxu1 %v11056_v43  ;;  %9975 = vmatprep.subr.bf16.mxu0 %v11057_v44  ;;  %v11105_v43 = vld [vmem:[#allocation5 + $0x750] sm:$0xff]  }
 0x11f   :  { %9997 = vmatprep.subr.bf16.mxu1 %v11058_v45  ;;  %v11106_v44 = vld [vmem:[#allocation5 + $0x7d0] sm:$0xff]  }
 0x120   :  { %v11107_v45 = vld [vmem:[#allocation5 + $0x710] sm:$0xff]  }
 0x121   :  { %9976 = vmatpush3.bf16.msra.mxu0 %v11059_v46  ;;  %v11108_v46 = vld [vmem:[#allocation5 + $0x790] sm:$0xff]  }
 0x122   :  { %9998 = vmatpush3.bf16.msra.mxu1 %v11060_v47  ;;  %9977 = vmatprep.subr.bf16.mxu0 %v11061_v48  ;;  %v11109_v47 = vld [vmem:[#allocation5 + $0x748] sm:$0xff]  }
 0x123   :  { %9999 = vmatprep.subr.bf16.mxu1 %v11062_v49  ;;  %v11110_v48 = vld [vmem:[#allocation5 + $0x7c8] sm:$0xff]  }
 0x124   :  { %v11111_v49 = vld [vmem:[#allocation5 + $0x708] sm:$0xff]  }
 0x125   :  { %9978 = vmatpush3.bf16.msra.mxu0 %v11063_v50  ;;  %v11112_v50 = vld [vmem:[#allocation5 + $0x788] sm:$0xff]  }
 0x126   :  { %10000 = vmatpush3.bf16.msra.mxu1 %v11064_v51  ;;  %9979 = vmatprep.subr.bf16.mxu0 %v11065_v52  ;;  %v11113_v51 = vld [vmem:[#allocation5 + $0x740] sm:$0xff]  }
 0x127   :  { %10001 = vmatprep.subr.bf16.mxu1 %v11066_v53  ;;  %v11114_v52 = vld [vmem:[#allocation5 + $0x7c0] sm:$0xff]  }
 0x128   :  { %v11115_v53 = vld [vmem:[#allocation5 + $0x700] sm:$0xff]  }
 0x129   :  { %9980 = vmatpush3.bf16.msra.mxu0 %v11067_v54  ;;  %v11116_v54 = vld [vmem:[#allocation5 + $0x780] sm:$0xff]  }
 0x12a   :  { %10002 = vmatpush3.bf16.msra.mxu1 %v11068_v55  ;;  %9981 = vmatprep.subr.bf16.mxu0 %v11069_v56  ;;  %v129_v55 = vld [vmem:[#allocation2 + $0x70] sm:$0xff]  ;;  %v130_v56 = vld [vmem:[#allocation2 + $0x78] sm:$0xff] }
 0x12b   :  { %10003 = vmatprep.subr.bf16.mxu1 %v11070_v57 }
 0x12d   :  { %9982 = vmatpush3.bf16.msra.mxu0 %v11071_v58 }
 0x12e   :  { %10004 = vmatpush3.bf16.msra.mxu1 %v11072_v59  ;;  %9983 = vmatprep.subr.bf16.mxu0 %v11073_v60  ;;  %v8853_v59 = vcombine.low %v129_v55, %v129_v55  ;;  %v8854_v60 = vcombine.high %v129_v55, %v129_v55 }
 0x12f   :  { %10005 = vmatprep.subr.bf16.mxu1 %v11074_v61  ;;  %v8855_v61 = vcombine.low %v130_v56, %v130_v56 }
 0x131   :  { %9984 = vmatpush3.bf16.msra.mxu0 %v11075_v62  ;;  %v11121_v62 = vld [vmem:[#allocation5 + $0x878] sm:$0xff]  }
 0x132   :  { %10006 = vmatpush3.bf16.msra.mxu1 %v11076_v63  ;;  %9985 = vmatprep.subr.bf16.mxu0 %v11077_v0  ;;  %v8856_v63 = vcombine.high %v130_v56, %v130_v56  ;;  %v11122_v0 = vld [vmem:[#allocation5 + $0x8f8] sm:$0xff]  }
 0x133   :  { %10007 = vmatprep.subr.bf16.mxu1 %v11078_v1 }
 0x135   :  { %9986 = vmatpush3.bf16.msra.mxu0 %v11079_v2 }
 0x136   :  { %10008 = vmatpush3.bf16.msra.mxu1 %v11080_v3  ;;  %10015 = vmatprep.subr.bf16.mxu0 %v11085_v11  ;;  %v11123_v3 = vld [vmem:[#allocation5 + $0x838] sm:$0xff]   ;;  %v11126_v11 = vld [vmem:[#allocation5 + $0x8f0] sm:$0xff]  }
 0x137   :  { %10037 = vmatprep.subr.bf16.mxu1 %v11086_v13 }
 0x138   :  { %v9723_v6 = vpop.f32.mrf.mxu0  ;;  %7163 = vmatmul.mubr.bf16.vlgmr.msra.gmra.mxu0 %v8849_v8 }
 0x139   :  { %v9745_v7 = vpop.f32.mrf.mxu1  ;;  %7203 = vmatmul.mubr.bf16.vlgmr.msra.gmra.mxu1 %v8851_v10  ;;  %10016 = vmatpush3.bf16.msra.mxu0 %v11087_v16  ;;  %v11125_v10 = vld [vmem:[#allocation5 + $0x870] sm:$0xff]  }
 0x13a   :  { %v9724_v14 = vpop.f32.mrf.mxu0  ;;  %10038 = vmatpush3.bf16.msra.mxu1 %v11088_v19  ;;  %10017 = vmatprep.subr.bf16.mxu0 %v11089_v24  ;;  %v11128_v16 = vld [vmem:[#allocation5 + $0x8b0] sm:$0xff]   ;;  %v11131_v19 = vld [vmem:[#allocation5 + $0x828] sm:$0xff]   ;;  %v11136_v24 = vld [vmem:[#allocation5 + $0x8a0] sm:$0xff]  }
 0x13b   :  { %v9746_v15 = vpop.f32.mrf.mxu1  ;;  %v9725_v17 = vadd.f32 %v9724_v14, %v9723_v6  ;;  %10039 = vmatprep.subr.bf16.mxu1 %v11090_v25  ;;  %7242 = vmatprep.mubr.bf16.mxu0 %v8854_v60  ;;  %v11124_v6 = vld [vmem:[#allocation5 + $0x8b8] sm:$0xff]   ;;  %v11161_v60 = vld [vmem:[#allocation5 + $0x970] sm:$0xff]  }
 0x13c   :  { %v9747_v18 = vadd.f32 %v9746_v15, %v9745_v7  ;;  %v9726_v21 = vpop.f32.mrf.mxu0  ;;  %7282 = vmatprep.mubr.bf16.mxu1 %v8856_v63  ;;  %v11127_v15 = vld [vmem:[#allocation5 + $0x830] sm:$0xff]   ;;  %v11137_v25 = vld [vmem:[#allocation5 + $0x858] sm:$0xff]  }
 0x13d   :  { %v9748_v22 = vpop.f32.mrf.mxu1  ;;  %v6685_v23 = vadd.f32 %v9725_v17, %v8824_v20  ;;  %10018 = vmatpush3.bf16.msra.mxu0 %v11091_v29  ;;  %v11129_v17 = vld [vmem:[#allocation5 + $0x868] sm:$0xff]   ;;  %v11133_v21 = vld [vmem:[#allocation5 + $0x860] sm:$0xff]   ;;  %v11141_v29 = vld [vmem:[#allocation5 + $0x850] sm:$0xff]  }
 0x13e   :  { %v9727_v26 = vpop.f32.mrf.mxu0  ;;  %10040 = vmatpush3.bf16.msra.mxu1 %v11092_v30  ;;  %10019 = vmatprep.subr.bf16.mxu0 %v11093_v31  ;;  %v11132_v20 = vld [vmem:[#allocation5 + $0x8a8] sm:$0xff]   ;;  %v11134_v22 = vld [vmem:[#allocation5 + $0x8e0] sm:$0xff]   ;;  %v11142_v30 = vld [vmem:[#allocation5 + $0x8d0] sm:$0xff]  }
 0x13f   :  { %v9749_v27 = vpop.f32.mrf.mxu1  ;;  %v11960_v28 = vadd.f32 %v9747_v18, %v6685_v23  ;;  %10041 = vmatprep.subr.bf16.mxu1 %v11094_v32  ;;  %v11130_v18 = vld [vmem:[#allocation5 + $0x8e8] sm:$0xff]   ;;  %v11135_v23 = vld [vmem:[#allocation5 + $0x820] sm:$0xff]   ;;  %v11138_v26 = vld [vmem:[#allocation5 + $0x8d8] sm:$0xff]  }
 0x140   :  { %v11139_v27 = vld [vmem:[#allocation5 + $0x818] sm:$0xff]   ;;  %v11143_v31 = vld [vmem:[#allocation5 + $0x810] sm:$0xff]  }
 0x141   :  { %10020 = vmatpush3.bf16.msra.mxu0 %v11095_v33  ;;  %v11144_v32 = vld [vmem:[#allocation5 + $0x890] sm:$0xff]   ;;  %v11145_v33 = vld [vmem:[#allocation5 + $0x848] sm:$0xff]  }
 0x142   :  { %10042 = vmatpush3.bf16.msra.mxu1 %v11096_v34  ;;  %10021 = vmatprep.subr.bf16.mxu0 %v11097_v35  ;;  %v11146_v34 = vld [vmem:[#allocation5 + $0x8c8] sm:$0xff]   ;;  %v11162_v63 = vld [vmem:[#allocation5 + $0x9f0] sm:$0xff]  }
 0x143   :  { %10043 = vmatprep.subr.bf16.mxu1 %v11098_v36  ;;  %v11147_v35 = vld [vmem:[#allocation5 + $0x808] sm:$0xff]  }
 0x144   :  { %v11148_v36 = vld [vmem:[#allocation5 + $0x888] sm:$0xff]  }
 0x145   :  { %10022 = vmatpush3.bf16.msra.mxu0 %v11099_v37  ;;  %v11149_v37 = vld [vmem:[#allocation5 + $0x840] sm:$0xff]  }
 0x146   :  { %10044 = vmatpush3.bf16.msra.mxu1 %v11100_v38  ;;  %10023 = vmatprep.subr.bf16.mxu0 %v11101_v39  ;;  %v11150_v38 = vld [vmem:[#allocation5 + $0x8c0] sm:$0xff]  }
 0x147   :  { %10045 = vmatprep.subr.bf16.mxu1 %v11102_v40  ;;  %v11151_v39 = vld [vmem:[#allocation5 + $0x800] sm:$0xff]  }
 0x148   :  { %v11152_v40 = vld [vmem:[#allocation5 + $0x880] sm:$0xff]  }
 0x149   :  { %10024 = vmatpush3.bf16.msra.mxu0 %v11103_v41  ;;  %v131_v41 = vld [vmem:[#allocation2 + $0x80] sm:$0xff] }
 0x14a   :  { %10046 = vmatpush3.bf16.msra.mxu1 %v11104_v42  ;;  %10025 = vmatprep.subr.bf16.mxu0 %v11105_v43  ;;  %v8857_v43 = vcombine.low %v131_v41, %v131_v41 }
 0x14b   :  { %10047 = vmatprep.subr.bf16.mxu1 %v11106_v44  ;;  %v8858_v44 = vcombine.high %v131_v41, %v131_v41  ;;  %v11196_v41 = vld [vmem:[#allocation5 + $0xab8] sm:$0xff]  }
 0x14d   :  { %10026 = vmatpush3.bf16.msra.mxu0 %v11107_v45  ;;  %v132_v45 = vld [vmem:[#allocation2 + $0x88] sm:$0xff] }
 0x14e   :  { %10048 = vmatpush3.bf16.msra.mxu1 %v11108_v46  ;;  %10027 = vmatprep.subr.bf16.mxu0 %v11109_v47  ;;  %v8859_v47 = vcombine.low %v132_v45, %v132_v45 }
 0x14f   :  { %10049 = vmatprep.subr.bf16.mxu1 %v11110_v48  ;;  %v8860_v48 = vcombine.high %v132_v45, %v132_v45 }
 0x151   :  { %10028 = vmatpush3.bf16.msra.mxu0 %v11111_v49  ;;  %v11157_v49 = vld [vmem:[#allocation5 + $0x978] sm:$0xff]  }
 0x152   :  { %10050 = vmatpush3.bf16.msra.mxu1 %v11112_v50  ;;  %10029 = vmatprep.subr.bf16.mxu0 %v11113_v51  ;;  %v11158_v51 = vld [vmem:[#allocation5 + $0x9f8] sm:$0xff]  }
 0x153   :  { %10051 = vmatprep.subr.bf16.mxu1 %v11114_v52 }
 0x155   :  { %10030 = vmatpush3.bf16.msra.mxu0 %v11115_v53 }
 0x156   :  { %10052 = vmatpush3.bf16.msra.mxu1 %v11116_v54  ;;  %10059 = vmatprep.subr.bf16.mxu0 %v11121_v62  ;;  %v11159_v54 = vld [vmem:[#allocation5 + $0x938] sm:$0xff]  }
 0x157   :  { %10081 = vmatprep.subr.bf16.mxu1 %v11122_v0 }
 0x158   :  { %v9767_v57 = vpop.f32.mrf.mxu0  ;;  %7243 = vmatmul.mubr.bf16.vlgmr.msra.gmra.mxu0 %v8853_v59 }
 0x159   :  { %v9789_v58 = vpop.f32.mrf.mxu1  ;;  %7283 = vmatmul.mubr.bf16.vlgmr.msra.gmra.mxu1 %v8855_v61  ;;  %10060 = vmatpush3.bf16.msra.mxu0 %v11123_v3  ;;  %v11165_v3 = vld [vmem:[#allocation5 + $0x968] sm:$0xff]  }
 0x15a   :  { %v9768_v1 = vpop.f32.mrf.mxu0  ;;  %10082 = vmatpush3.bf16.msra.mxu1 %v11124_v6  ;;  %10061 = vmatprep.subr.bf16.mxu0 %v11125_v10  ;;  %v11168_v6 = vld [vmem:[#allocation5 + $0x9a8] sm:$0xff]   ;;  %v11172_v10 = vld [vmem:[#allocation5 + $0x9a0] sm:$0xff]  }
 0x15b   :  { %v9790_v2 = vpop.f32.mrf.mxu1  ;;  %v9769_v4 = vadd.f32 %v9768_v1, %v9767_v57  ;;  %10083 = vmatprep.subr.bf16.mxu1 %v11126_v11  ;;  %7322 = vmatprep.mubr.bf16.mxu0 %v8858_v44  ;;  %v11160_v57 = vld [vmem:[#allocation5 + $0x9b8] sm:$0xff]   ;;  %v11163_v1 = vld [vmem:[#allocation5 + $0x930] sm:$0xff]  }
 0x15c   :  { %v9791_v5 = vadd.f32 %v9790_v2, %v9789_v58  ;;  %v9770_v7 = vpop.f32.mrf.mxu0  ;;  %7362 = vmatprep.mubr.bf16.mxu1 %v8860_v48  ;;  %v11164_v2 = vld [vmem:[#allocation5 + $0x9b0] sm:$0xff]   ;;  %v11173_v11 = vld [vmem:[#allocation5 + $0x958] sm:$0xff]  }
 0x15d   :  { %v9792_v8 = vpop.f32.mrf.mxu1  ;;  %v6765_v9 = vadd.f32 %v9769_v4, %v11960_v28  ;;  %10062 = vmatpush3.bf16.msra.mxu0 %v11127_v15  ;;  %v11140_v28 = vld [vmem:[#allocation5 + $0x898] sm:$0xff]   ;;  %v11166_v4 = vld [vmem:[#allocation5 + $0x9e8] sm:$0xff]   ;;  %v11169_v7 = vld [vmem:[#allocation5 + $0x960] sm:$0xff]  }
 0x15e   :  { %v9771_v12 = vpop.f32.mrf.mxu0  ;;  %10084 = vmatpush3.bf16.msra.mxu1 %v11128_v16  ;;  %10063 = vmatprep.subr.bf16.mxu0 %v11129_v17  ;;  %v11170_v8 = vld [vmem:[#allocation5 + $0x9e0] sm:$0xff]   ;;  %v11177_v15 = vld [vmem:[#allocation5 + $0x950] sm:$0xff]  }
 0x15f   :  { %v9793_v13 = vpop.f32.mrf.mxu1  ;;  %v11963_v14 = vadd.f32 %v9791_v5, %v6765_v9  ;;  %10085 = vmatprep.subr.bf16.mxu1 %v11130_v18  ;;  %v11167_v5 = vld [vmem:[#allocation5 + $0x928] sm:$0xff]   ;;  %v11171_v9 = vld [vmem:[#allocation5 + $0x920] sm:$0xff]   ;;  %v11174_v12 = vld [vmem:[#allocation5 + $0x9d8] sm:$0xff]  }
 0x160   :  { %v11175_v13 = vld [vmem:[#allocation5 + $0x918] sm:$0xff]   ;;  %v11178_v16 = vld [vmem:[#allocation5 + $0x9d0] sm:$0xff]  }
 0x161   :  { %10064 = vmatpush3.bf16.msra.mxu0 %v11131_v19  ;;  %v11179_v17 = vld [vmem:[#allocation5 + $0x910] sm:$0xff]   ;;  %v11181_v19 = vld [vmem:[#allocation5 + $0x948] sm:$0xff]  }
 0x162   :  { %10086 = vmatpush3.bf16.msra.mxu1 %v11132_v20  ;;  %10065 = vmatprep.subr.bf16.mxu0 %v11133_v21  ;;  %v11180_v18 = vld [vmem:[#allocation5 + $0x990] sm:$0xff]   ;;  %v11182_v20 = vld [vmem:[#allocation5 + $0x9c8] sm:$0xff]  }
 0x163   :  { %10087 = vmatprep.subr.bf16.mxu1 %v11134_v22  ;;  %v11183_v21 = vld [vmem:[#allocation5 + $0x908] sm:$0xff]  }
 0x164   :  { %v11184_v22 = vld [vmem:[#allocation5 + $0x988] sm:$0xff]  }
 0x165   :  { %10066 = vmatpush3.bf16.msra.mxu0 %v11135_v23  ;;  %v11185_v23 = vld [vmem:[#allocation5 + $0x940] sm:$0xff]  }
 0x166   :  { %10088 = vmatpush3.bf16.msra.mxu1 %v11136_v24  ;;  %10067 = vmatprep.subr.bf16.mxu0 %v11137_v25  ;;  %v11186_v24 = vld [vmem:[#allocation5 + $0x9c0] sm:$0xff]  }
 0x167   :  { %10089 = vmatprep.subr.bf16.mxu1 %v11138_v26  ;;  %v11187_v25 = vld [vmem:[#allocation5 + $0x900] sm:$0xff]  }
 0x168   :  { %v11188_v26 = vld [vmem:[#allocation5 + $0x980] sm:$0xff]  }
 0x169   :  { %10068 = vmatpush3.bf16.msra.mxu0 %v11139_v27  ;;  %v133_v27 = vld [vmem:[#allocation2 + $0x90] sm:$0xff] }
 0x16a   :  { %10090 = vmatpush3.bf16.msra.mxu1 %v11140_v28  ;;  %10069 = vmatprep.subr.bf16.mxu0 %v11141_v29  ;;  %v134_v28 = vld [vmem:[#allocation2 + $0x98] sm:$0xff] }
 0x16b   :  { %10091 = vmatprep.subr.bf16.mxu1 %v11142_v30  ;;  %v8861_v30 = vcombine.low %v133_v27, %v133_v27 }
 0x16d   :  { %10070 = vmatpush3.bf16.msra.mxu0 %v11143_v31  ;;  %v8862_v31 = vcombine.high %v133_v27, %v133_v27 }
 0x16e   :  { %10092 = vmatpush3.bf16.msra.mxu1 %v11144_v32  ;;  %10071 = vmatprep.subr.bf16.mxu0 %v11145_v33  ;;  %v8863_v32 = vcombine.low %v134_v28, %v134_v28  ;;  %v8864_v33 = vcombine.high %v134_v28, %v134_v28  ;;  %v11232_v28 = vld [vmem:[#allocation5 + $0xbb8] sm:$0xff]  }
 0x16f   :  { %10093 = vmatprep.subr.bf16.mxu1 %v11146_v34 }
 0x171   :  { %10072 = vmatpush3.bf16.msra.mxu0 %v11147_v35  ;;  %v11193_v35 = vld [vmem:[#allocation5 + $0xa78] sm:$0xff]  }
 0x172   :  { %10094 = vmatpush3.bf16.msra.mxu1 %v11148_v36  ;;  %10073 = vmatprep.subr.bf16.mxu0 %v11149_v37  ;;  %v11194_v36 = vld [vmem:[#allocation5 + $0xaf8] sm:$0xff]  }
 0x173   :  { %10095 = vmatprep.subr.bf16.mxu1 %v11150_v38  ;;  %v11195_v38 = vld [vmem:[#allocation5 + $0xa38] sm:$0xff]  }
 0x175   :  { %10074 = vmatpush3.bf16.msra.mxu0 %v11151_v39 }
 0x176   :  { %10096 = vmatpush3.bf16.msra.mxu1 %v11152_v40  ;;  %10103 = vmatprep.subr.bf16.mxu0 %v11157_v49 }
 0x177   :  { %10125 = vmatprep.subr.bf16.mxu1 %v11158_v51 }
 0x178   :  { %v9811_v42 = vpop.f32.mrf.mxu0  ;;  %7323 = vmatmul.mubr.bf16.vlgmr.msra.gmra.mxu0 %v8857_v43 }
 0x179   :  { %v9833_v46 = vpop.f32.mrf.mxu1  ;;  %7363 = vmatmul.mubr.bf16.vlgmr.msra.gmra.mxu1 %v8859_v47  ;;  %10104 = vmatpush3.bf16.msra.mxu0 %v11159_v54  ;;  %v11198_v47 = vld [vmem:[#allocation5 + $0xaf0] sm:$0xff]   ;;  %v11202_v54 = vld [vmem:[#allocation5 + $0xae8] sm:$0xff]  }
 0x17a   :  { %v9812_v50 = vpop.f32.mrf.mxu0  ;;  %10126 = vmatpush3.bf16.msra.mxu1 %v11160_v57  ;;  %10105 = vmatprep.subr.bf16.mxu0 %v11161_v60  ;;  %v11205_v57 = vld [vmem:[#allocation5 + $0xa60] sm:$0xff]  }
 0x17b   :  { %v9813_v52 = vadd.f32 %v9812_v50, %v9811_v42  ;;  %v9834_v53 = vpop.f32.mrf.mxu1  ;;  %10127 = vmatprep.subr.bf16.mxu1 %v11162_v63  ;;  %7402 = vmatprep.mubr.bf16.mxu0 %v8862_v31  ;;  %v11199_v50 = vld [vmem:[#allocation5 + $0xa30] sm:$0xff]   ;;  %v11208_v60 = vld [vmem:[#allocation5 + $0xaa0] sm:$0xff]   ;;  %v11211_v63 = vld [vmem:[#allocation5 + $0xa18] sm:$0xff]  }
 0x17c   :  { %v9835_v55 = vadd.f32 %v9834_v53, %v9833_v46  ;;  %v9814_v56 = vpop.f32.mrf.mxu0  ;;  %7442 = vmatprep.mubr.bf16.mxu1 %v8864_v33  ;;  %v11197_v46 = vld [vmem:[#allocation5 + $0xa70] sm:$0xff]   ;;  %v11201_v53 = vld [vmem:[#allocation5 + $0xa68] sm:$0xff]  }
 0x17d   :  { %v6845_v58 = vadd.f32 %v9813_v52, %v11963_v14  ;;  %v9836_v59 = vpop.f32.mrf.mxu1  ;;  %10106 = vmatpush3.bf16.msra.mxu0 %v11163_v1  ;;  %v11176_v14 = vld [vmem:[#allocation5 + $0x998] sm:$0xff]   ;;  %v11200_v52 = vld [vmem:[#allocation5 + $0xab0] sm:$0xff]   ;;  %v11204_v56 = vld [vmem:[#allocation5 + $0xaa8] sm:$0xff]  }
 0x17e   :  { %v9815_v61 = vpop.f32.mrf.mxu0  ;;  %10128 = vmatpush3.bf16.msra.mxu1 %v11164_v2  ;;  %10107 = vmatprep.subr.bf16.mxu0 %v11165_v3  ;;  %v11207_v59 = vld [vmem:[#allocation5 + $0xa20] sm:$0xff]   ;;  %v11213_v1 = vld [vmem:[#allocation5 + $0xa50] sm:$0xff]  }
 0x17f   :  { %v11966_v62 = vadd.f32 %v9835_v55, %v6845_v58  ;;  %v9837_v0 = vpop.f32.mrf.mxu1  ;;  %10129 = vmatprep.subr.bf16.mxu1 %v11166_v4  ;;  %v11203_v55 = vld [vmem:[#allocation5 + $0xa28] sm:$0xff]   ;;  %v11206_v58 = vld [vmem:[#allocation5 + $0xae0] sm:$0xff]   ;;  %v11209_v61 = vld [vmem:[#allocation5 + $0xa58] sm:$0xff]  }
 0x180   :  { %v11212_v0 = vld [vmem:[#allocation5 + $0xa98] sm:$0xff]   ;;  %v11214_v2 = vld [vmem:[#allocation5 + $0xad0] sm:$0xff]  }
 0x181   :  { %10108 = vmatpush3.bf16.msra.mxu0 %v11167_v5  ;;  %v11215_v3 = vld [vmem:[#allocation5 + $0xa10] sm:$0xff]   ;;  %v11217_v5 = vld [vmem:[#allocation5 + $0xa48] sm:$0xff]  }
 0x182   :  { %10130 = vmatpush3.bf16.msra.mxu1 %v11168_v6  ;;  %10109 = vmatprep.subr.bf16.mxu0 %v11169_v7  ;;  %v11216_v4 = vld [vmem:[#allocation5 + $0xa90] sm:$0xff]   ;;  %v11218_v6 = vld [vmem:[#allocation5 + $0xac8] sm:$0xff]  }
 0x183   :  { %10131 = vmatprep.subr.bf16.mxu1 %v11170_v8  ;;  %v11219_v7 = vld [vmem:[#allocation5 + $0xa08] sm:$0xff]   ;;  %v11234_v33 = vld [vmem:[#allocation5 + $0xbf0] sm:$0xff]  }
 0x184   :  { %v11220_v8 = vld [vmem:[#allocation5 + $0xa88] sm:$0xff]  }
 0x185   :  { %10110 = vmatpush3.bf16.msra.mxu0 %v11171_v9  ;;  %v11221_v9 = vld [vmem:[#allocation5 + $0xa40] sm:$0xff]  }
 0x186   :  { %10132 = vmatpush3.bf16.msra.mxu1 %v11172_v10  ;;  %10111 = vmatprep.subr.bf16.mxu0 %v11173_v11  ;;  %v11222_v10 = vld [vmem:[#allocation5 + $0xac0] sm:$0xff]  }
 0x187   :  { %10133 = vmatprep.subr.bf16.mxu1 %v11174_v12  ;;  %v11223_v11 = vld [vmem:[#allocation5 + $0xa00] sm:$0xff]  }
 0x188   :  { %v11224_v12 = vld [vmem:[#allocation5 + $0xa80] sm:$0xff]  }
 0x189   :  { %10112 = vmatpush3.bf16.msra.mxu0 %v11175_v13  ;;  %v135_v13 = vld [vmem:[#allocation2 + $0xa0] sm:$0xff] }
 0x18a   :  { %10134 = vmatpush3.bf16.msra.mxu1 %v11176_v14  ;;  %10113 = vmatprep.subr.bf16.mxu0 %v11177_v15  ;;  %v136_v14 = vld [vmem:[#allocation2 + $0xa8] sm:$0xff] }
 0x18b   :  { %10135 = vmatprep.subr.bf16.mxu1 %v11178_v16 }
 0x18d   :  { %10114 = vmatpush3.bf16.msra.mxu0 %v11179_v17  ;;  %v8865_v17 = vcombine.low %v135_v13, %v135_v13 }
 0x18e   :  { %10136 = vmatpush3.bf16.msra.mxu1 %v11180_v18  ;;  %10115 = vmatprep.subr.bf16.mxu0 %v11181_v19  ;;  %v8866_v18 = vcombine.high %v135_v13, %v135_v13  ;;  %v8867_v19 = vcombine.low %v136_v14, %v136_v14 }
 0x18f   :  { %10137 = vmatprep.subr.bf16.mxu1 %v11182_v20  ;;  %v11229_v20 = vld [vmem:[#allocation5 + $0xb78] sm:$0xff]  }
 0x191   :  { %10116 = vmatpush3.bf16.msra.mxu0 %v11183_v21  ;;  %v8868_v21 = vcombine.high %v136_v14, %v136_v14 }
 0x192   :  { %10138 = vmatpush3.bf16.msra.mxu1 %v11184_v22  ;;  %10117 = vmatprep.subr.bf16.mxu0 %v11185_v23  ;;  %v11230_v22 = vld [vmem:[#allocation5 + $0xbf8] sm:$0xff]  }
 0x193   :  { %10139 = vmatprep.subr.bf16.mxu1 %v11186_v24 }
 0x195   :  { %10118 = vmatpush3.bf16.msra.mxu0 %v11187_v25  ;;  %v11231_v25 = vld [vmem:[#allocation5 + $0xb38] sm:$0xff]  }
 0x196   :  { %10140 = vmatpush3.bf16.msra.mxu1 %v11188_v26  ;;  %10147 = vmatprep.subr.bf16.mxu0 %v11193_v35 }
 0x197   :  { %10169 = vmatprep.subr.bf16.mxu1 %v11194_v36 }
 0x198   :  { %v9855_v29 = vpop.f32.mrf.mxu0  ;;  %7403 = vmatmul.mubr.bf16.vlgmr.msra.gmra.mxu0 %v8861_v30 }
 0x199   :  { %v9877_v34 = vpop.f32.mrf.mxu1  ;;  %7443 = vmatmul.mubr.bf16.vlgmr.msra.gmra.mxu1 %v8863_v32  ;;  %10148 = vmatpush3.bf16.msra.mxu0 %v11195_v38  ;;  %v11233_v32 = vld [vmem:[#allocation5 + $0xb70] sm:$0xff]  }
 0x19a   :  { %v9856_v37 = vpop.f32.mrf.mxu0  ;;  %10170 = vmatpush3.bf16.msra.mxu1 %v11196_v41  ;;  %10149 = vmatprep.subr.bf16.mxu0 %v11197_v46  ;;  %v11236_v38 = vld [vmem:[#allocation5 + $0xbb0] sm:$0xff]   ;;  %v11239_v41 = vld [vmem:[#allocation5 + $0xb28] sm:$0xff]   ;;  %v11244_v46 = vld [vmem:[#allocation5 + $0xba0] sm:$0xff]  }
 0x19b   :  { %v9857_v39 = vadd.f32 %v9856_v37, %v9855_v29  ;;  %v9878_v40 = vpop.f32.mrf.mxu1  ;;  %10171 = vmatprep.subr.bf16.mxu1 %v11198_v47  ;;  %7482 = vmatprep.mubr.bf16.mxu0 %v8866_v18  ;;  %v11235_v37 = vld [vmem:[#allocation5 + $0xb30] sm:$0xff]   ;;  %v11245_v47 = vld [vmem:[#allocation5 + $0xb58] sm:$0xff]  }
 0x19c   :  { %v9879_v42 = vadd.f32 %v9878_v40, %v9877_v34  ;;  %v9858_v43 = vpop.f32.mrf.mxu0  ;;  %7522 = vmatprep.mubr.bf16.mxu1 %v8868_v21  ;;  %v11238_v40 = vld [vmem:[#allocation5 + $0xbe8] sm:$0xff]   ;;  %v11269_v18 = vld [vmem:[#allocation5 + $0xc70] sm:$0xff]  }
 0x19d   :  { %v6925_v44 = vadd.f32 %v9857_v39, %v11966_v62  ;;  %v9880_v45 = vpop.f32.mrf.mxu1  ;;  %10150 = vmatpush3.bf16.msra.mxu0 %v11199_v50  ;;  %v11210_v62 = vld [vmem:[#allocation5 + $0xad8] sm:$0xff]   ;;  %v11237_v39 = vld [vmem:[#allocation5 + $0xb68] sm:$0xff]   ;;  %v11241_v43 = vld [vmem:[#allocation5 + $0xb60] sm:$0xff]  }
 0x19e   :  { %v9859_v48 = vpop.f32.mrf.mxu0  ;;  %10172 = vmatpush3.bf16.msra.mxu1 %v11200_v52  ;;  %10151 = vmatprep.subr.bf16.mxu0 %v11201_v53  ;;  %v11243_v45 = vld [vmem:[#allocation5 + $0xb20] sm:$0xff]   ;;  %v11248_v50 = vld [vmem:[#allocation5 + $0xb98] sm:$0xff]   ;;  %v11250_v52 = vld [vmem:[#allocation5 + $0xbd0] sm:$0xff]  }
 0x19f   :  { %v11969_v49 = vadd.f32 %v9879_v42, %v6925_v44  ;;  %v9881_v51 = vpop.f32.mrf.mxu1  ;;  %10173 = vmatprep.subr.bf16.mxu1 %v11202_v54  ;;  %v11240_v42 = vld [vmem:[#allocation5 + $0xba8] sm:$0xff]   ;;  %v11242_v44 = vld [vmem:[#allocation5 + $0xbe0] sm:$0xff]   ;;  %v11246_v48 = vld [vmem:[#allocation5 + $0xbd8] sm:$0xff]  }
 0x1a0   :  { %v11249_v51 = vld [vmem:[#allocation5 + $0xb50] sm:$0xff]  }
 0x1a1   :  { %10152 = vmatpush3.bf16.msra.mxu0 %v11203_v55  ;;  %v11251_v53 = vld [vmem:[#allocation5 + $0xb10] sm:$0xff]   ;;  %v11253_v55 = vld [vmem:[#allocation5 + $0xb48] sm:$0xff]  }
 0x1a2   :  { %10174 = vmatpush3.bf16.msra.mxu1 %v11204_v56  ;;  %10153 = vmatprep.subr.bf16.mxu0 %v11205_v57  ;;  %v11252_v54 = vld [vmem:[#allocation5 + $0xb90] sm:$0xff]   ;;  %v11254_v56 = vld [vmem:[#allocation5 + $0xbc8] sm:$0xff]  }
 0x1a3   :  { %10175 = vmatprep.subr.bf16.mxu1 %v11206_v58  ;;  %v11255_v57 = vld [vmem:[#allocation5 + $0xb08] sm:$0xff]   ;;  %v11270_v21 = vld [vmem:[#allocation5 + $0xcf0] sm:$0xff]  }
 0x1a4   :  { %v11256_v58 = vld [vmem:[#allocation5 + $0xb88] sm:$0xff]  }
 0x1a5   :  { %10154 = vmatpush3.bf16.msra.mxu0 %v11207_v59  ;;  %v11257_v59 = vld [vmem:[#allocation5 + $0xb40] sm:$0xff]  }
 0x1a6   :  { %10176 = vmatpush3.bf16.msra.mxu1 %v11208_v60  ;;  %10155 = vmatprep.subr.bf16.mxu0 %v11209_v61  ;;  %v11258_v60 = vld [vmem:[#allocation5 + $0xbc0] sm:$0xff]  }
 0x1a7   :  { %10177 = vmatprep.subr.bf16.mxu1 %v11210_v62  ;;  %v11259_v61 = vld [vmem:[#allocation5 + $0xb00] sm:$0xff]  }
 0x1a8   :  { %v11260_v62 = vld [vmem:[#allocation5 + $0xb80] sm:$0xff]  }
 0x1a9   :  { %10156 = vmatpush3.bf16.msra.mxu0 %v11211_v63  ;;  %v137_v63 = vld [vmem:[#allocation2 + $0xb0] sm:$0xff] }
 0x1aa   :  { %10178 = vmatpush3.bf16.msra.mxu1 %v11212_v0  ;;  %10157 = vmatprep.subr.bf16.mxu0 %v11213_v1  ;;  %v8869_v1 = vcombine.low %v137_v63, %v137_v63 }
 0x1ab   :  { %10179 = vmatprep.subr.bf16.mxu1 %v11214_v2  ;;  %v8870_v2 = vcombine.high %v137_v63, %v137_v63  ;;  %v11304_v63 = vld [vmem:[#allocation5 + $0xdb8] sm:$0xff]  }
 0x1ad   :  { %10158 = vmatpush3.bf16.msra.mxu0 %v11215_v3  ;;  %v138_v3 = vld [vmem:[#allocation2 + $0xb8] sm:$0xff] }
 0x1ae   :  { %10180 = vmatpush3.bf16.msra.mxu1 %v11216_v4  ;;  %10159 = vmatprep.subr.bf16.mxu0 %v11217_v5  ;;  %v8871_v5 = vcombine.low %v138_v3, %v138_v3 }
 0x1af   :  { %10181 = vmatprep.subr.bf16.mxu1 %v11218_v6  ;;  %v8872_v6 = vcombine.high %v138_v3, %v138_v3 }
 0x1b1   :  { %10160 = vmatpush3.bf16.msra.mxu0 %v11219_v7  ;;  %v11265_v7 = vld [vmem:[#allocation5 + $0xc78] sm:$0xff]  }
 0x1b2   :  { %10182 = vmatpush3.bf16.msra.mxu1 %v11220_v8  ;;  %10161 = vmatprep.subr.bf16.mxu0 %v11221_v9  ;;  %v11266_v9 = vld [vmem:[#allocation5 + $0xcf8] sm:$0xff]  }
 0x1b3   :  { %10183 = vmatprep.subr.bf16.mxu1 %v11222_v10 }
 0x1b5   :  { %10162 = vmatpush3.bf16.msra.mxu0 %v11223_v11 }
 0x1b6   :  { %10184 = vmatpush3.bf16.msra.mxu1 %v11224_v12  ;;  %10191 = vmatprep.subr.bf16.mxu0 %v11229_v20  ;;  %v11267_v12 = vld [vmem:[#allocation5 + $0xc38] sm:$0xff]  }
 0x1b7   :  { %10213 = vmatprep.subr.bf16.mxu1 %v11230_v22 }
 0x1b8   :  { %v9899_v15 = vpop.f32.mrf.mxu0  ;;  %7483 = vmatmul.mubr.bf16.vlgmr.msra.gmra.mxu0 %v8865_v17 }
 0x1b9   :  { %v9921_v16 = vpop.f32.mrf.mxu1  ;;  %7523 = vmatmul.mubr.bf16.vlgmr.msra.gmra.mxu1 %v8867_v19  ;;  %10192 = vmatpush3.bf16.msra.mxu0 %v11231_v25  ;;  %v11273_v25 = vld [vmem:[#allocation5 + $0xc68] sm:$0xff]  }
 0x1ba   :  { %v9900_v23 = vpop.f32.mrf.mxu0  ;;  %10214 = vmatpush3.bf16.msra.mxu1 %v11232_v28  ;;  %10193 = vmatprep.subr.bf16.mxu0 %v11233_v32  ;;  %v11276_v28 = vld [vmem:[#allocation5 + $0xca8] sm:$0xff]   ;;  %v11280_v32 = vld [vmem:[#allocation5 + $0xca0] sm:$0xff]  }
 0x1bb   :  { %v9922_v24 = vpop.f32.mrf.mxu1  ;;  %v9901_v26 = vadd.f32 %v9900_v23, %v9899_v15  ;;  %10215 = vmatprep.subr.bf16.mxu1 %v11234_v33  ;;  %7562 = vmatprep.mubr.bf16.mxu0 %v8870_v2  ;;  %v11268_v15 = vld [vmem:[#allocation5 + $0xcb8] sm:$0xff]   ;;  %v11271_v23 = vld [vmem:[#allocation5 + $0xc30] sm:$0xff]  }
 0x1bc   :  { %v9923_v27 = vadd.f32 %v9922_v24, %v9921_v16  ;;  %v9902_v29 = vpop.f32.mrf.mxu0  ;;  %7602 = vmatprep.mubr.bf16.mxu1 %v8872_v6  ;;  %v11272_v24 = vld [vmem:[#allocation5 + $0xcb0] sm:$0xff]   ;;  %v11281_v33 = vld [vmem:[#allocation5 + $0xc58] sm:$0xff]  }
 0x1bd   :  { %v9924_v30 = vpop.f32.mrf.mxu1  ;;  %v7005_v31 = vadd.f32 %v9901_v26, %v11969_v49  ;;  %10194 = vmatpush3.bf16.msra.mxu0 %v11235_v37  ;;  %v11247_v49 = vld [vmem:[#allocation5 + $0xb18] sm:$0xff]   ;;  %v11274_v26 = vld [vmem:[#allocation5 + $0xce8] sm:$0xff]   ;;  %v11277_v29 = vld [vmem:[#allocation5 + $0xc60] sm:$0xff]  }
 0x1be   :  { %v9903_v34 = vpop.f32.mrf.mxu0  ;;  %10216 = vmatpush3.bf16.msra.mxu1 %v11236_v38  ;;  %10195 = vmatprep.subr.bf16.mxu0 %v11237_v39  ;;  %v11278_v30 = vld [vmem:[#allocation5 + $0xce0] sm:$0xff]   ;;  %v11285_v37 = vld [vmem:[#allocation5 + $0xc50] sm:$0xff]  }
 0x1bf   :  { %v9925_v35 = vpop.f32.mrf.mxu1  ;;  %v11972_v36 = vadd.f32 %v9923_v27, %v7005_v31  ;;  %10217 = vmatprep.subr.bf16.mxu1 %v11238_v40  ;;  %v11275_v27 = vld [vmem:[#allocation5 + $0xc28] sm:$0xff]   ;;  %v11279_v31 = vld [vmem:[#allocation5 + $0xc20] sm:$0xff]   ;;  %v11282_v34 = vld [vmem:[#allocation5 + $0xcd8] sm:$0xff]  }
 0x1c0   :  { %v11283_v35 = vld [vmem:[#allocation5 + $0xc18] sm:$0xff]   ;;  %v11286_v38 = vld [vmem:[#allocation5 + $0xcd0] sm:$0xff]  }
 0x1c1   :  { %10196 = vmatpush3.bf16.msra.mxu0 %v11239_v41  ;;  %v11287_v39 = vld [vmem:[#allocation5 + $0xc10] sm:$0xff]   ;;  %v11289_v41 = vld [vmem:[#allocation5 + $0xc48] sm:$0xff]  }
 0x1c2   :  { %10218 = vmatpush3.bf16.msra.mxu1 %v11240_v42  ;;  %10197 = vmatprep.subr.bf16.mxu0 %v11241_v43  ;;  %v11288_v40 = vld [vmem:[#allocation5 + $0xc90] sm:$0xff]   ;;  %v11290_v42 = vld [vmem:[#allocation5 + $0xcc8] sm:$0xff]  }
 0x1c3   :  { %10219 = vmatprep.subr.bf16.mxu1 %v11242_v44  ;;  %v11291_v43 = vld [vmem:[#allocation5 + $0xc08] sm:$0xff]  }
 0x1c4   :  { %v11292_v44 = vld [vmem:[#allocation5 + $0xc88] sm:$0xff]  }
 0x1c5   :  { %10198 = vmatpush3.bf16.msra.mxu0 %v11243_v45  ;;  %v11293_v45 = vld [vmem:[#allocation5 + $0xc40] sm:$0xff]  }
 0x1c6   :  { %10220 = vmatpush3.bf16.msra.mxu1 %v11244_v46  ;;  %10199 = vmatprep.subr.bf16.mxu0 %v11245_v47  ;;  %v11294_v46 = vld [vmem:[#allocation5 + $0xcc0] sm:$0xff]  }
 0x1c7   :  { %10221 = vmatprep.subr.bf16.mxu1 %v11246_v48  ;;  %v11295_v47 = vld [vmem:[#allocation5 + $0xc00] sm:$0xff]  }
 0x1c8   :  { %v11296_v48 = vld [vmem:[#allocation5 + $0xc80] sm:$0xff]  }
 0x1c9   :  { %10200 = vmatpush3.bf16.msra.mxu0 %v11247_v49  ;;  %v139_v49 = vld [vmem:[#allocation2 + $0xc0] sm:$0xff] }
 0x1ca   :  { %10222 = vmatpush3.bf16.msra.mxu1 %v11248_v50  ;;  %10201 = vmatprep.subr.bf16.mxu0 %v11249_v51  ;;  %v140_v50 = vld [vmem:[#allocation2 + $0xc8] sm:$0xff] }
 0x1cb   :  { %10223 = vmatprep.subr.bf16.mxu1 %v11250_v52  ;;  %v8873_v52 = vcombine.low %v139_v49, %v139_v49 }
 0x1cd   :  { %10202 = vmatpush3.bf16.msra.mxu0 %v11251_v53  ;;  %v8874_v53 = vcombine.high %v139_v49, %v139_v49  ;;  %v11340_v49 = vld [vmem:[#allocation5 + $0xeb8] sm:$0xff]  }
 0x1ce   :  { %10224 = vmatpush3.bf16.msra.mxu1 %v11252_v54  ;;  %10203 = vmatprep.subr.bf16.mxu0 %v11253_v55  ;;  %v8875_v54 = vcombine.low %v140_v50, %v140_v50  ;;  %v8876_v55 = vcombine.high %v140_v50, %v140_v50 }
 0x1cf   :  { %10225 = vmatprep.subr.bf16.mxu1 %v11254_v56 }
 0x1d1   :  { %10204 = vmatpush3.bf16.msra.mxu0 %v11255_v57  ;;  %v11301_v57 = vld [vmem:[#allocation5 + $0xd78] sm:$0xff]  }
 0x1d2   :  { %10226 = vmatpush3.bf16.msra.mxu1 %v11256_v58  ;;  %10205 = vmatprep.subr.bf16.mxu0 %v11257_v59  ;;  %v11302_v58 = vld [vmem:[#allocation5 + $0xdf8] sm:$0xff]  }
 0x1d3   :  { %10227 = vmatprep.subr.bf16.mxu1 %v11258_v60  ;;  %v11303_v60 = vld [vmem:[#allocation5 + $0xd38] sm:$0xff]  }
 0x1d5   :  { %10206 = vmatpush3.bf16.msra.mxu0 %v11259_v61 }
 0x1d6   :  { %10228 = vmatpush3.bf16.msra.mxu1 %v11260_v62  ;;  %10235 = vmatprep.subr.bf16.mxu0 %v11265_v7 }
 0x1d7   :  { %10257 = vmatprep.subr.bf16.mxu1 %v11266_v9 }
 0x1d8   :  { %v9943_v0 = vpop.f32.mrf.mxu0  ;;  %7563 = vmatmul.mubr.bf16.vlgmr.msra.gmra.mxu0 %v8869_v1 }
 0x1d9   :  { %v9965_v4 = vpop.f32.mrf.mxu1  ;;  %7603 = vmatmul.mubr.bf16.vlgmr.msra.gmra.mxu1 %v8871_v5  ;;  %10236 = vmatpush3.bf16.msra.mxu0 %v11267_v12  ;;  %v11306_v5 = vld [vmem:[#allocation5 + $0xdf0] sm:$0xff]   ;;  %v11310_v12 = vld [vmem:[#allocation5 + $0xde8] sm:$0xff]  }
 0x1da   :  { %v9944_v8 = vpop.f32.mrf.mxu0  ;;  %10258 = vmatpush3.bf16.msra.mxu1 %v11268_v15  ;;  %10237 = vmatprep.subr.bf16.mxu0 %v11269_v18  ;;  %v11313_v15 = vld [vmem:[#allocation5 + $0xd60] sm:$0xff]  }
 0x1db   :  { %v9945_v10 = vadd.f32 %v9944_v8, %v9943_v0  ;;  %v9966_v11 = vpop.f32.mrf.mxu1  ;;  %10259 = vmatprep.subr.bf16.mxu1 %v11270_v21  ;;  %7642 = vmatprep.mubr.bf16.mxu0 %v8874_v53  ;;  %v11307_v8 = vld [vmem:[#allocation5 + $0xd30] sm:$0xff]   ;;  %v11316_v18 = vld [vmem:[#allocation5 + $0xda0] sm:$0xff]   ;;  %v11319_v21 = vld [vmem:[#allocation5 + $0xd18] sm:$0xff]  }
 0x1dc   :  { %v9967_v13 = vadd.f32 %v9966_v11, %v9965_v4  ;;  %v9946_v14 = vpop.f32.mrf.mxu0  ;;  %7682 = vmatprep.mubr.bf16.mxu1 %v8876_v55  ;;  %v11305_v4 = vld [vmem:[#allocation5 + $0xd70] sm:$0xff]   ;;  %v11309_v11 = vld [vmem:[#allocation5 + $0xd68] sm:$0xff]  }
 0x1dd   :  { %v7085_v16 = vadd.f32 %v9945_v10, %v11972_v36  ;;  %v9968_v17 = vpop.f32.mrf.mxu1  ;;  %10238 = vmatpush3.bf16.msra.mxu0 %v11271_v23  ;;  %v11284_v36 = vld [vmem:[#allocation5 + $0xc98] sm:$0xff]   ;;  %v11308_v10 = vld [vmem:[#allocation5 + $0xdb0] sm:$0xff]   ;;  %v11312_v14 = vld [vmem:[#allocation5 + $0xda8] sm:$0xff]  }
 0x1de   :  { %v9947_v19 = vpop.f32.mrf.mxu0  ;;  %10260 = vmatpush3.bf16.msra.mxu1 %v11272_v24  ;;  %10239 = vmatprep.subr.bf16.mxu0 %v11273_v25  ;;  %v11315_v17 = vld [vmem:[#allocation5 + $0xd20] sm:$0xff]   ;;  %v11321_v23 = vld [vmem:[#allocation5 + $0xd50] sm:$0xff]  }
 0x1df   :  { %v11975_v20 = vadd.f32 %v9967_v13, %v7085_v16  ;;  %v9969_v22 = vpop.f32.mrf.mxu1  ;;  %10261 = vmatprep.subr.bf16.mxu1 %v11274_v26  ;;  %v11311_v13 = vld [vmem:[#allocation5 + $0xd28] sm:$0xff]   ;;  %v11314_v16 = vld [vmem:[#allocation5 + $0xde0] sm:$0xff]   ;;  %v11317_v19 = vld [vmem:[#allocation5 + $0xd58] sm:$0xff]  }
 0x1e0   :  { %v11320_v22 = vld [vmem:[#allocation5 + $0xd98] sm:$0xff]   ;;  %v11322_v24 = vld [vmem:[#allocation5 + $0xdd0] sm:$0xff]  }
 0x1e1   :  { %10240 = vmatpush3.bf16.msra.mxu0 %v11275_v27  ;;  %v11323_v25 = vld [vmem:[#allocation5 + $0xd10] sm:$0xff]   ;;  %v11325_v27 = vld [vmem:[#allocation5 + $0xd48] sm:$0xff]  }
 0x1e2   :  { %10262 = vmatpush3.bf16.msra.mxu1 %v11276_v28  ;;  %10241 = vmatprep.subr.bf16.mxu0 %v11277_v29  ;;  %v11324_v26 = vld [vmem:[#allocation5 + $0xd90] sm:$0xff]   ;;  %v11326_v28 = vld [vmem:[#allocation5 + $0xdc8] sm:$0xff]  }
 0x1e3   :  { %10263 = vmatprep.subr.bf16.mxu1 %v11278_v30  ;;  %v11327_v29 = vld [vmem:[#allocation5 + $0xd08] sm:$0xff]   ;;  %v11342_v55 = vld [vmem:[#allocation5 + $0xef0] sm:$0xff]  }
 0x1e4   :  { %v11328_v30 = vld [vmem:[#allocation5 + $0xd88] sm:$0xff]  }
 0x1e5   :  { %10242 = vmatpush3.bf16.msra.mxu0 %v11279_v31  ;;  %v11329_v31 = vld [vmem:[#allocation5 + $0xd40] sm:$0xff]  }
 0x1e6   :  { %10264 = vmatpush3.bf16.msra.mxu1 %v11280_v32  ;;  %10243 = vmatprep.subr.bf16.mxu0 %v11281_v33  ;;  %v11330_v32 = vld [vmem:[#allocation5 + $0xdc0] sm:$0xff]  }
 0x1e7   :  { %10265 = vmatprep.subr.bf16.mxu1 %v11282_v34  ;;  %v11331_v33 = vld [vmem:[#allocation5 + $0xd00] sm:$0xff]  }
 0x1e8   :  { %v11332_v34 = vld [vmem:[#allocation5 + $0xd80] sm:$0xff]  }
 0x1e9   :  { %10244 = vmatpush3.bf16.msra.mxu0 %v11283_v35  ;;  %v141_v35 = vld [vmem:[#allocation2 + $0xd0] sm:$0xff] }
 0x1ea   :  { %10266 = vmatpush3.bf16.msra.mxu1 %v11284_v36  ;;  %10245 = vmatprep.subr.bf16.mxu0 %v11285_v37  ;;  %v142_v36 = vld [vmem:[#allocation2 + $0xd8] sm:$0xff] }
 0x1eb   :  { %10267 = vmatprep.subr.bf16.mxu1 %v11286_v38  ;;  %v8877_v38 = vcombine.low %v141_v35, %v141_v35 }
 0x1ed   :  { %10246 = vmatpush3.bf16.msra.mxu0 %v11287_v39  ;;  %v8878_v39 = vcombine.high %v141_v35, %v141_v35 }
 0x1ee   :  { %10268 = vmatpush3.bf16.msra.mxu1 %v11288_v40  ;;  %10247 = vmatprep.subr.bf16.mxu0 %v11289_v41  ;;  %v8879_v40 = vcombine.low %v142_v36, %v142_v36 }
 0x1ef   :  { %10269 = vmatprep.subr.bf16.mxu1 %v11290_v42  ;;  %v11337_v42 = vld [vmem:[#allocation5 + $0xe78] sm:$0xff]  }
 0x1f1   :  { %10248 = vmatpush3.bf16.msra.mxu0 %v11291_v43  ;;  %v8880_v43 = vcombine.high %v142_v36, %v142_v36  ;;  %v11376_v36 = vld [vmem:[#allocation5 + $0xfb8] sm:$0xff]  }
 0x1f2   :  { %10270 = vmatpush3.bf16.msra.mxu1 %v11292_v44  ;;  %10249 = vmatprep.subr.bf16.mxu0 %v11293_v45  ;;  %v11338_v44 = vld [vmem:[#allocation5 + $0xef8] sm:$0xff]  }
 0x1f3   :  { %10271 = vmatprep.subr.bf16.mxu1 %v11294_v46  ;;  %v11339_v46 = vld [vmem:[#allocation5 + $0xe38] sm:$0xff]  }
 0x1f5   :  { %10250 = vmatpush3.bf16.msra.mxu0 %v11295_v47 }
 0x1f6   :  { %10272 = vmatpush3.bf16.msra.mxu1 %v11296_v48  ;;  %10279 = vmatprep.subr.bf16.mxu0 %v11301_v57 }
 0x1f7   :  { %10301 = vmatprep.subr.bf16.mxu1 %v11302_v58  ;;  %v11343_v58 = vld [vmem:[#allocation5 + $0xe30] sm:$0xff]  }
 0x1f8   :  { %v9987_v51 = vpop.f32.mrf.mxu0  ;;  %7643 = vmatmul.mubr.bf16.vlgmr.msra.gmra.mxu0 %v8873_v52 }
 0x1f9   :  { %v10009_v56 = vpop.f32.mrf.mxu1  ;;  %7683 = vmatmul.mubr.bf16.vlgmr.msra.gmra.mxu1 %v8875_v54  ;;  %10280 = vmatpush3.bf16.msra.mxu0 %v11303_v60  ;;  %v11341_v54 = vld [vmem:[#allocation5 + $0xe70] sm:$0xff]  }
 0x1fa   :  { %v9988_v59 = vpop.f32.mrf.mxu0  ;;  %10302 = vmatpush3.bf16.msra.mxu1 %v11304_v63  ;;  %10281 = vmatprep.subr.bf16.mxu0 %v11305_v4  ;;  %v11344_v60 = vld [vmem:[#allocation5 + $0xeb0] sm:$0xff]   ;;  %v11347_v63 = vld [vmem:[#allocation5 + $0xe28] sm:$0xff]   ;;  %v11352_v4 = vld [vmem:[#allocation5 + $0xea0] sm:$0xff]  }
 0x1fb   :  { %v9989_v61 = vadd.f32 %v9988_v59, %v9987_v51  ;;  %v10010_v62 = vpop.f32.mrf.mxu1  ;;  %10303 = vmatprep.subr.bf16.mxu1 %v11306_v5  ;;  %7722 = vmatprep.mubr.bf16.mxu0 %v8878_v39  ;;  %v11353_v5 = vld [vmem:[#allocation5 + $0xe58] sm:$0xff]  }
 0x1fc   :  { %v10011_v0 = vadd.f32 %v10010_v62, %v10009_v56  ;;  %v9990_v1 = vpop.f32.mrf.mxu0  ;;  %7762 = vmatprep.mubr.bf16.mxu1 %v8880_v43  ;;  %v11346_v62 = vld [vmem:[#allocation5 + $0xee8] sm:$0xff]  }
 0x1fd   :  { %v7165_v2 = vadd.f32 %v9989_v61, %v11975_v20  ;;  %v10012_v3 = vpop.f32.mrf.mxu1  ;;  %10282 = vmatpush3.bf16.msra.mxu0 %v11307_v8  ;;  %v11318_v20 = vld [vmem:[#allocation5 + $0xdd8] sm:$0xff]   ;;  %v11345_v61 = vld [vmem:[#allocation5 + $0xe68] sm:$0xff]   ;;  %v11349_v1 = vld [vmem:[#allocation5 + $0xe60] sm:$0xff]  }
 0x1fe   :  { %v9991_v6 = vpop.f32.mrf.mxu0  ;;  %10304 = vmatpush3.bf16.msra.mxu1 %v11308_v10  ;;  %10283 = vmatprep.subr.bf16.mxu0 %v11309_v11  ;;  %v11351_v3 = vld [vmem:[#allocation5 + $0xe20] sm:$0xff]   ;;  %v11356_v8 = vld [vmem:[#allocation5 + $0xe98] sm:$0xff]   ;;  %v11358_v10 = vld [vmem:[#allocation5 + $0xed0] sm:$0xff]  }
 0x1ff   :  { %v11978_v7 = vadd.f32 %v10011_v0, %v7165_v2  ;;  %v10013_v9 = vpop.f32.mrf.mxu1  ;;  %10305 = vmatprep.subr.bf16.mxu1 %v11310_v12  ;;  %v11348_v0 = vld [vmem:[#allocation5 + $0xea8] sm:$0xff]   ;;  %v11350_v2 = vld [vmem:[#allocation5 + $0xee0] sm:$0xff]   ;;  %v11354_v6 = vld [vmem:[#allocation5 + $0xed8] sm:$0xff]  }
 0x200   :  { %v11357_v9 = vld [vmem:[#allocation5 + $0xe50] sm:$0xff]  }
 0x201   :  { %10284 = vmatpush3.bf16.msra.mxu0 %v11311_v13  ;;  %v11359_v11 = vld [vmem:[#allocation5 + $0xe10] sm:$0xff]   ;;  %v11361_v13 = vld [vmem:[#allocation5 + $0xe48] sm:$0xff]  }
 0x202   :  { %10306 = vmatpush3.bf16.msra.mxu1 %v11312_v14  ;;  %10285 = vmatprep.subr.bf16.mxu0 %v11313_v15  ;;  %v11360_v12 = vld [vmem:[#allocation5 + $0xe90] sm:$0xff]   ;;  %v11362_v14 = vld [vmem:[#allocation5 + $0xec8] sm:$0xff]  }
 0x203   :  { %10307 = vmatprep.subr.bf16.mxu1 %v11314_v16  ;;  %v11363_v15 = vld [vmem:[#allocation5 + $0xe08] sm:$0xff]  }
 0x204   :  { %v11364_v16 = vld [vmem:[#allocation5 + $0xe88] sm:$0xff]  }
 0x205   :  { %10286 = vmatpush3.bf16.msra.mxu0 %v11315_v17  ;;  %v11365_v17 = vld [vmem:[#allocation5 + $0xe40] sm:$0xff]  }
 0x206   :  { %10308 = vmatpush3.bf16.msra.mxu1 %v11316_v18  ;;  %10287 = vmatprep.subr.bf16.mxu0 %v11317_v19  ;;  %v11366_v18 = vld [vmem:[#allocation5 + $0xec0] sm:$0xff]  }
 0x207   :  { %10309 = vmatprep.subr.bf16.mxu1 %v11318_v20  ;;  %v11367_v19 = vld [vmem:[#allocation5 + $0xe00] sm:$0xff]  }
 0x208   :  { %v11368_v20 = vld [vmem:[#allocation5 + $0xe80] sm:$0xff]  }
 0x209   :  { %10288 = vmatpush3.bf16.msra.mxu0 %v11319_v21  ;;  %v143_v21 = vld [vmem:[#allocation2 + $0xe0] sm:$0xff] }
 0x20a   :  { %10310 = vmatpush3.bf16.msra.mxu1 %v11320_v22  ;;  %10289 = vmatprep.subr.bf16.mxu0 %v11321_v23  ;;  %v8881_v22 = vcombine.low %v143_v21, %v143_v21  ;;  %v8882_v23 = vcombine.high %v143_v21, %v143_v21  ;;  %v11412_v21 = vld [vmem:[#allocation5 + $0x10b8] sm:$0xff]  }
 0x20b   :  { %10311 = vmatprep.subr.bf16.mxu1 %v11322_v24  ;;  %v144_v24 = vld [vmem:[#allocation2 + $0xe8] sm:$0xff] }
 0x20d   :  { %10290 = vmatpush3.bf16.msra.mxu0 %v11323_v25 }
 0x20e   :  { %10312 = vmatpush3.bf16.msra.mxu1 %v11324_v26  ;;  %10291 = vmatprep.subr.bf16.mxu0 %v11325_v27  ;;  %v8883_v27 = vcombine.low %v144_v24, %v144_v24 }
 0x20f   :  { %10313 = vmatprep.subr.bf16.mxu1 %v11326_v28  ;;  %v8884_v28 = vcombine.high %v144_v24, %v144_v24 }
 0x211   :  { %10292 = vmatpush3.bf16.msra.mxu0 %v11327_v29  ;;  %v11373_v29 = vld [vmem:[#allocation5 + $0xf78] sm:$0xff]  }
 0x212   :  { %10314 = vmatpush3.bf16.msra.mxu1 %v11328_v30  ;;  %10293 = vmatprep.subr.bf16.mxu0 %v11329_v31  ;;  %v11374_v30 = vld [vmem:[#allocation5 + $0xff8] sm:$0xff]  }
 0x213   :  { %10315 = vmatprep.subr.bf16.mxu1 %v11330_v32 }
 0x215   :  { %10294 = vmatpush3.bf16.msra.mxu0 %v11331_v33  ;;  %v11375_v33 = vld [vmem:[#allocation5 + $0xf38] sm:$0xff]  }
 0x216   :  { %10316 = vmatpush3.bf16.msra.mxu1 %v11332_v34  ;;  %10323 = vmatprep.subr.bf16.mxu0 %v11337_v42 }
 0x217   :  { %10345 = vmatprep.subr.bf16.mxu1 %v11338_v44 }
 0x218   :  { %v10031_v37 = vpop.f32.mrf.mxu0  ;;  %7723 = vmatmul.mubr.bf16.vlgmr.msra.gmra.mxu0 %v8877_v38 }
 0x219   :  { %v10053_v41 = vpop.f32.mrf.mxu1  ;;  %7763 = vmatmul.mubr.bf16.vlgmr.msra.gmra.mxu1 %v8879_v40  ;;  %10324 = vmatpush3.bf16.msra.mxu0 %v11339_v46  ;;  %v11377_v40 = vld [vmem:[#allocation5 + $0xf70] sm:$0xff]  }
 0x21a   :  { %v10032_v45 = vpop.f32.mrf.mxu0  ;;  %10346 = vmatpush3.bf16.msra.mxu1 %v11340_v49  ;;  %10325 = vmatprep.subr.bf16.mxu0 %v11341_v54  ;;  %v11380_v46 = vld [vmem:[#allocation5 + $0xfb0] sm:$0xff]   ;;  %v11383_v49 = vld [vmem:[#allocation5 + $0xf28] sm:$0xff]   ;;  %v11388_v54 = vld [vmem:[#allocation5 + $0xfa0] sm:$0xff]  }
 0x21b   :  { %v10033_v47 = vadd.f32 %v10032_v45, %v10031_v37  ;;  %v10054_v48 = vpop.f32.mrf.mxu1  ;;  %10347 = vmatprep.subr.bf16.mxu1 %v11342_v55  ;;  %7802 = vmatprep.mubr.bf16.mxu0 %v8882_v23  ;;  %v11379_v45 = vld [vmem:[#allocation5 + $0xf30] sm:$0xff]   ;;  %v11389_v55 = vld [vmem:[#allocation5 + $0xf58] sm:$0xff]  }
 0x21c   :  { %v10055_v50 = vadd.f32 %v10054_v48, %v10053_v41  ;;  %v10034_v51 = vpop.f32.mrf.mxu0  ;;  %7842 = vmatprep.mubr.bf16.mxu1 %v8884_v28  ;;  %v11378_v41 = vld [vmem:[#allocation5 + $0xff0] sm:$0xff]   ;;  %v11382_v48 = vld [vmem:[#allocation5 + $0xfe8] sm:$0xff]  }
 0x21d   :  { %v7245_v52 = vadd.f32 %v10033_v47, %v11978_v7  ;;  %v10056_v53 = vpop.f32.mrf.mxu1  ;;  %10326 = vmatpush3.bf16.msra.mxu0 %v11343_v58  ;;  %v11355_v7 = vld [vmem:[#allocation5 + $0xe18] sm:$0xff]   ;;  %v11381_v47 = vld [vmem:[#allocation5 + $0xf68] sm:$0xff]   ;;  %v11385_v51 = vld [vmem:[#allocation5 + $0xf60] sm:$0xff]  }
 0x21e   :  { %v10035_v56 = vpop.f32.mrf.mxu0  ;;  %10348 = vmatpush3.bf16.msra.mxu1 %v11344_v60  ;;  %10327 = vmatprep.subr.bf16.mxu0 %v11345_v61  ;;  %v11387_v53 = vld [vmem:[#allocation5 + $0xf20] sm:$0xff]   ;;  %v11392_v58 = vld [vmem:[#allocation5 + $0xf98] sm:$0xff]   ;;  %v11394_v60 = vld [vmem:[#allocation5 + $0xfd0] sm:$0xff]  }
 0x21f   :  { %v11981_v57 = vadd.f32 %v10055_v50, %v7245_v52  ;;  %v10057_v59 = vpop.f32.mrf.mxu1  ;;  %10349 = vmatprep.subr.bf16.mxu1 %v11346_v62  ;;  %v11384_v50 = vld [vmem:[#allocation5 + $0xfa8] sm:$0xff]   ;;  %v11386_v52 = vld [vmem:[#allocation5 + $0xfe0] sm:$0xff]   ;;  %v11390_v56 = vld [vmem:[#allocation5 + $0xfd8] sm:$0xff]  }
 0x220   :  { %v11393_v59 = vld [vmem:[#allocation5 + $0xf50] sm:$0xff]  }
 0x221   :  { %10328 = vmatpush3.bf16.msra.mxu0 %v11347_v63  ;;  %v11395_v61 = vld [vmem:[#allocation5 + $0xf10] sm:$0xff]   ;;  %v11397_v63 = vld [vmem:[#allocation5 + $0xf48] sm:$0xff]  }
 0x222   :  { %10350 = vmatpush3.bf16.msra.mxu1 %v11348_v0  ;;  %10329 = vmatprep.subr.bf16.mxu0 %v11349_v1  ;;  %v11396_v62 = vld [vmem:[#allocation5 + $0xf90] sm:$0xff]   ;;  %v11398_v0 = vld [vmem:[#allocation5 + $0xfc8] sm:$0xff]  }
 0x223   :  { %10351 = vmatprep.subr.bf16.mxu1 %v11350_v2  ;;  %v11399_v1 = vld [vmem:[#allocation5 + $0xf08] sm:$0xff]  }
 0x224   :  { %v11400_v2 = vld [vmem:[#allocation5 + $0xf88] sm:$0xff]  }
 0x225   :  { %10330 = vmatpush3.bf16.msra.mxu0 %v11351_v3  ;;  %v11401_v3 = vld [vmem:[#allocation5 + $0xf40] sm:$0xff]  }
 0x226   :  { %10352 = vmatpush3.bf16.msra.mxu1 %v11352_v4  ;;  %10331 = vmatprep.subr.bf16.mxu0 %v11353_v5  ;;  %v11402_v4 = vld [vmem:[#allocation5 + $0xfc0] sm:$0xff]  }
 0x227   :  { %10353 = vmatprep.subr.bf16.mxu1 %v11354_v6  ;;  %v11403_v5 = vld [vmem:[#allocation5 + $0xf00] sm:$0xff]  }
 0x228   :  { %v11404_v6 = vld [vmem:[#allocation5 + $0xf80] sm:$0xff]  }
 0x229   :  { %10332 = vmatpush3.bf16.msra.mxu0 %v11355_v7  ;;  %v145_v7 = vld [vmem:[#allocation2 + $0xf0] sm:$0xff] }
 0x22a   :  { %10354 = vmatpush3.bf16.msra.mxu1 %v11356_v8  ;;  %10333 = vmatprep.subr.bf16.mxu0 %v11357_v9  ;;  %v146_v8 = vld [vmem:[#allocation2 + $0xf8] sm:$0xff] }
 0x22b   :  { %10355 = vmatprep.subr.bf16.mxu1 %v11358_v10  ;;  %v8885_v10 = vcombine.low %v145_v7, %v145_v7 }
 0x22d   :  { %10334 = vmatpush3.bf16.msra.mxu0 %v11359_v11  ;;  %v8886_v11 = vcombine.high %v145_v7, %v145_v7  ;;  %v11448_v7 = vld [vmem:[#allocation5 + $0x11b8] sm:$0xff]  }
 0x22e   :  { %10356 = vmatpush3.bf16.msra.mxu1 %v11360_v12  ;;  %10335 = vmatprep.subr.bf16.mxu0 %v11361_v13  ;;  %v8887_v12 = vcombine.low %v146_v8, %v146_v8  ;;  %v8888_v13 = vcombine.high %v146_v8, %v146_v8 }
 0x22f   :  { %10357 = vmatprep.subr.bf16.mxu1 %v11362_v14 }
 0x231   :  { %10336 = vmatpush3.bf16.msra.mxu0 %v11363_v15  ;;  %v11409_v15 = vld [vmem:[#allocation5 + $0x1078] sm:$0xff]  }
 0x232   :  { %10358 = vmatpush3.bf16.msra.mxu1 %v11364_v16  ;;  %10337 = vmatprep.subr.bf16.mxu0 %v11365_v17  ;;  %v11410_v16 = vld [vmem:[#allocation5 + $0x10f8] sm:$0xff]  }
 0x233   :  { %10359 = vmatprep.subr.bf16.mxu1 %v11366_v18  ;;  %v11411_v18 = vld [vmem:[#allocation5 + $0x1038] sm:$0xff]  }
 0x235   :  { %10338 = vmatpush3.bf16.msra.mxu0 %v11367_v19 }
 0x236   :  { %10360 = vmatpush3.bf16.msra.mxu1 %v11368_v20  ;;  %10367 = vmatprep.subr.bf16.mxu0 %v11373_v29 }
 0x237   :  { %10389 = vmatprep.subr.bf16.mxu1 %v11374_v30  ;;  %v11415_v30 = vld [vmem:[#allocation5 + $0x1030] sm:$0xff]  }
 0x238   :  { %v10075_v25 = vpop.f32.mrf.mxu0  ;;  %7803 = vmatmul.mubr.bf16.vlgmr.msra.gmra.mxu0 %v8881_v22 }
 0x239   :  { %v10097_v26 = vpop.f32.mrf.mxu1  ;;  %7843 = vmatmul.mubr.bf16.vlgmr.msra.gmra.mxu1 %v8883_v27  ;;  %10368 = vmatpush3.bf16.msra.mxu0 %v11375_v33  ;;  %v11414_v27 = vld [vmem:[#allocation5 + $0x10f0] sm:$0xff]   ;;  %v11417_v33 = vld [vmem:[#allocation5 + $0x1068] sm:$0xff]  }
 0x23a   :  { %v10076_v31 = vpop.f32.mrf.mxu0  ;;  %10390 = vmatpush3.bf16.msra.mxu1 %v11376_v36  ;;  %10369 = vmatprep.subr.bf16.mxu0 %v11377_v40  ;;  %v11420_v36 = vld [vmem:[#allocation5 + $0x10a8] sm:$0xff]   ;;  %v11424_v40 = vld [vmem:[#allocation5 + $0x10a0] sm:$0xff]  }
 0x23b   :  { %v10098_v32 = vpop.f32.mrf.mxu1  ;;  %v10077_v34 = vadd.f32 %v10076_v31, %v10075_v25  ;;  %10391 = vmatprep.subr.bf16.mxu1 %v11378_v41  ;;  %7882 = vmatprep.mubr.bf16.mxu0 %v8886_v11  ;;  %v11425_v41 = vld [vmem:[#allocation5 + $0x1058] sm:$0xff]  }
 0x23c   :  { %v10099_v35 = vadd.f32 %v10098_v32, %v10097_v26  ;;  %v10078_v37 = vpop.f32.mrf.mxu0  ;;  %7922 = vmatprep.mubr.bf16.mxu1 %v8888_v13  ;;  %v11413_v26 = vld [vmem:[#allocation5 + $0x1070] sm:$0xff]  }
 0x23d   :  { %v10100_v38 = vpop.f32.mrf.mxu1  ;;  %v7325_v39 = vadd.f32 %v10077_v34, %v11981_v57  ;;  %10370 = vmatpush3.bf16.msra.mxu0 %v11379_v45  ;;  %v11391_v57 = vld [vmem:[#allocation5 + $0xf18] sm:$0xff]   ;;  %v11416_v32 = vld [vmem:[#allocation5 + $0x10b0] sm:$0xff]   ;;  %v11418_v34 = vld [vmem:[#allocation5 + $0x10e8] sm:$0xff]  }
 0x23e   :  { %v10079_v42 = vpop.f32.mrf.mxu0  ;;  %10392 = vmatpush3.bf16.msra.mxu1 %v11380_v46  ;;  %10371 = vmatprep.subr.bf16.mxu0 %v11381_v47  ;;  %v11421_v37 = vld [vmem:[#allocation5 + $0x1060] sm:$0xff]   ;;  %v11429_v45 = vld [vmem:[#allocation5 + $0x1050] sm:$0xff]  }
 0x23f   :  { %v10101_v43 = vpop.f32.mrf.mxu1  ;;  %v11984_v44 = vadd.f32 %v10099_v35, %v7325_v39  ;;  %10393 = vmatprep.subr.bf16.mxu1 %v11382_v48  ;;  %v11419_v35 = vld [vmem:[#allocation5 + $0x1028] sm:$0xff]   ;;  %v11422_v38 = vld [vmem:[#allocation5 + $0x10e0] sm:$0xff]   ;;  %v11426_v42 = vld [vmem:[#allocation5 + $0x10d8] sm:$0xff]  }
 0x240   :  { %v11423_v39 = vld [vmem:[#allocation5 + $0x1020] sm:$0xff]   ;;  %v11427_v43 = vld [vmem:[#allocation5 + $0x1018] sm:$0xff]   ;;  %v11430_v46 = vld [vmem:[#allocation5 + $0x10d0] sm:$0xff]  }
 0x241   :  { %10372 = vmatpush3.bf16.msra.mxu0 %v11383_v49  ;;  %v11431_v47 = vld [vmem:[#allocation5 + $0x1010] sm:$0xff]   ;;  %v11433_v49 = vld [vmem:[#allocation5 + $0x1048] sm:$0xff]  }
 0x242   :  { %10394 = vmatpush3.bf16.msra.mxu1 %v11384_v50  ;;  %10373 = vmatprep.subr.bf16.mxu0 %v11385_v51  ;;  %v11432_v48 = vld [vmem:[#allocation5 + $0x1090] sm:$0xff]   ;;  %v11434_v50 = vld [vmem:[#allocation5 + $0x10c8] sm:$0xff]  }
 0x243   :  { %10395 = vmatprep.subr.bf16.mxu1 %v11386_v52  ;;  %v11435_v51 = vld [vmem:[#allocation5 + $0x1008] sm:$0xff]   ;;  %v11450_v13 = vld [vmem:[#allocation5 + $0x11f0] sm:$0xff]  }
 0x244   :  { %v11436_v52 = vld [vmem:[#allocation5 + $0x1088] sm:$0xff]  }
 0x245   :  { %10374 = vmatpush3.bf16.msra.mxu0 %v11387_v53  ;;  %v11437_v53 = vld [vmem:[#allocation5 + $0x1040] sm:$0xff]  }
 0x246   :  { %10396 = vmatpush3.bf16.msra.mxu1 %v11388_v54  ;;  %10375 = vmatprep.subr.bf16.mxu0 %v11389_v55  ;;  %v11438_v54 = vld [vmem:[#allocation5 + $0x10c0] sm:$0xff]  }
 0x247   :  { %10397 = vmatprep.subr.bf16.mxu1 %v11390_v56  ;;  %v11439_v55 = vld [vmem:[#allocation5 + $0x1000] sm:$0xff]  }
 0x248   :  { %v11440_v56 = vld [vmem:[#allocation5 + $0x1080] sm:$0xff]  }
 0x249   :  { %10376 = vmatpush3.bf16.msra.mxu0 %v11391_v57  ;;  %v147_v57 = vld [vmem:[#allocation2 + $0x100] sm:$0xff] }
 0x24a   :  { %10398 = vmatpush3.bf16.msra.mxu1 %v11392_v58  ;;  %10377 = vmatprep.subr.bf16.mxu0 %v11393_v59  ;;  %v148_v58 = vld [vmem:[#allocation2 + $0x108] sm:$0xff] }
 0x24b   :  { %10399 = vmatprep.subr.bf16.mxu1 %v11394_v60  ;;  %v8889_v60 = vcombine.low %v147_v57, %v147_v57 }
 0x24d   :  { %10378 = vmatpush3.bf16.msra.mxu0 %v11395_v61  ;;  %v8890_v61 = vcombine.high %v147_v57, %v147_v57 }
 0x24e   :  { %10400 = vmatpush3.bf16.msra.mxu1 %v11396_v62  ;;  %10379 = vmatprep.subr.bf16.mxu0 %v11397_v63  ;;  %v8891_v62 = vcombine.low %v148_v58, %v148_v58 }
 0x24f   :  { %10401 = vmatprep.subr.bf16.mxu1 %v11398_v0  ;;  %v11445_v0 = vld [vmem:[#allocation5 + $0x1178] sm:$0xff]  }
 0x251   :  { %10380 = vmatpush3.bf16.msra.mxu0 %v11399_v1  ;;  %v8892_v1 = vcombine.high %v148_v58, %v148_v58  ;;  %v11484_v58 = vld [vmem:[#allocation5 + $0x12b8] sm:$0xff]  }
 0x252   :  { %10402 = vmatpush3.bf16.msra.mxu1 %v11400_v2  ;;  %10381 = vmatprep.subr.bf16.mxu0 %v11401_v3  ;;  %v11446_v2 = vld [vmem:[#allocation5 + $0x11f8] sm:$0xff]  }
 0x253   :  { %10403 = vmatprep.subr.bf16.mxu1 %v11402_v4  ;;  %v11447_v4 = vld [vmem:[#allocation5 + $0x1138] sm:$0xff]  }
 0x255   :  { %10382 = vmatpush3.bf16.msra.mxu0 %v11403_v5 }
 0x256   :  { %10404 = vmatpush3.bf16.msra.mxu1 %v11404_v6  ;;  %10411 = vmatprep.subr.bf16.mxu0 %v11409_v15 }
 0x257   :  { %10433 = vmatprep.subr.bf16.mxu1 %v11410_v16  ;;  %v11451_v16 = vld [vmem:[#allocation5 + $0x1130] sm:$0xff]  }
 0x258   :  { %v10119_v9 = vpop.f32.mrf.mxu0  ;;  %7883 = vmatmul.mubr.bf16.vlgmr.msra.gmra.mxu0 %v8885_v10 }
 0x259   :  { %v10141_v14 = vpop.f32.mrf.mxu1  ;;  %7923 = vmatmul.mubr.bf16.vlgmr.msra.gmra.mxu1 %v8887_v12  ;;  %10412 = vmatpush3.bf16.msra.mxu0 %v11411_v18  ;;  %v11449_v12 = vld [vmem:[#allocation5 + $0x1170] sm:$0xff]  }
 0x25a   :  { %v10120_v17 = vpop.f32.mrf.mxu0  ;;  %10434 = vmatpush3.bf16.msra.mxu1 %v11412_v21  ;;  %10413 = vmatprep.subr.bf16.mxu0 %v11413_v26  ;;  %v11452_v18 = vld [vmem:[#allocation5 + $0x11b0] sm:$0xff]   ;;  %v11455_v21 = vld [vmem:[#allocation5 + $0x1128] sm:$0xff]   ;;  %v11460_v26 = vld [vmem:[#allocation5 + $0x11a0] sm:$0xff]  }
 0x25b   :  { %v10121_v19 = vadd.f32 %v10120_v17, %v10119_v9  ;;  %v10142_v20 = vpop.f32.mrf.mxu1  ;;  %10435 = vmatprep.subr.bf16.mxu1 %v11414_v27  ;;  %7962 = vmatprep.mubr.bf16.mxu0 %v8890_v61  ;;  %v11461_v27 = vld [vmem:[#allocation5 + $0x1158] sm:$0xff]  }
 0x25c   :  { %v10143_v22 = vadd.f32 %v10142_v20, %v10141_v14  ;;  %v10122_v23 = vpop.f32.mrf.mxu0  ;;  %8002 = vmatprep.mubr.bf16.mxu1 %v8892_v1  ;;  %v11454_v20 = vld [vmem:[#allocation5 + $0x11e8] sm:$0xff]  }
 0x25d   :  { %v7405_v24 = vadd.f32 %v10121_v19, %v11984_v44  ;;  %v10144_v25 = vpop.f32.mrf.mxu1  ;;  %10414 = vmatpush3.bf16.msra.mxu0 %v11415_v30  ;;  %v11428_v44 = vld [vmem:[#allocation5 + $0x1098] sm:$0xff]   ;;  %v11453_v19 = vld [vmem:[#allocation5 + $0x1168] sm:$0xff]   ;;  %v11457_v23 = vld [vmem:[#allocation5 + $0x1160] sm:$0xff]  }
 0x25e   :  { %v10123_v28 = vpop.f32.mrf.mxu0  ;;  %10436 = vmatpush3.bf16.msra.mxu1 %v11416_v32  ;;  %10415 = vmatprep.subr.bf16.mxu0 %v11417_v33  ;;  %v11459_v25 = vld [vmem:[#allocation5 + $0x1120] sm:$0xff]   ;;  %v11464_v30 = vld [vmem:[#allocation5 + $0x1198] sm:$0xff]   ;;  %v11466_v32 = vld [vmem:[#allocation5 + $0x11d0] sm:$0xff]  }
 0x25f   :  { %v11987_v29 = vadd.f32 %v10143_v22, %v7405_v24  ;;  %v10145_v31 = vpop.f32.mrf.mxu1  ;;  %10437 = vmatprep.subr.bf16.mxu1 %v11418_v34  ;;  %v11456_v22 = vld [vmem:[#allocation5 + $0x11a8] sm:$0xff]   ;;  %v11458_v24 = vld [vmem:[#allocation5 + $0x11e0] sm:$0xff]   ;;  %v11462_v28 = vld [vmem:[#allocation5 + $0x11d8] sm:$0xff]  }
 0x260   :  { %v11465_v31 = vld [vmem:[#allocation5 + $0x1150] sm:$0xff]  }
 0x261   :  { %10416 = vmatpush3.bf16.msra.mxu0 %v11419_v35  ;;  %v11467_v33 = vld [vmem:[#allocation5 + $0x1110] sm:$0xff]   ;;  %v11469_v35 = vld [vmem:[#allocation5 + $0x1148] sm:$0xff]  }
 0x262   :  { %10438 = vmatpush3.bf16.msra.mxu1 %v11420_v36  ;;  %10417 = vmatprep.subr.bf16.mxu0 %v11421_v37  ;;  %v11468_v34 = vld [vmem:[#allocation5 + $0x1190] sm:$0xff]   ;;  %v11470_v36 = vld [vmem:[#allocation5 + $0x11c8] sm:$0xff]  }
 0x263   :  { %10439 = vmatprep.subr.bf16.mxu1 %v11422_v38  ;;  %v11471_v37 = vld [vmem:[#allocation5 + $0x1108] sm:$0xff]  }
 0x264   :  { %v11472_v38 = vld [vmem:[#allocation5 + $0x1188] sm:$0xff]  }
 0x265   :  { %10418 = vmatpush3.bf16.msra.mxu0 %v11423_v39  ;;  %v11473_v39 = vld [vmem:[#allocation5 + $0x1140] sm:$0xff]  }
 0x266   :  { %10440 = vmatpush3.bf16.msra.mxu1 %v11424_v40  ;;  %10419 = vmatprep.subr.bf16.mxu0 %v11425_v41  ;;  %v11474_v40 = vld [vmem:[#allocation5 + $0x11c0] sm:$0xff]  }
 0x267   :  { %10441 = vmatprep.subr.bf16.mxu1 %v11426_v42  ;;  %v11475_v41 = vld [vmem:[#allocation5 + $0x1100] sm:$0xff]  }
 0x268   :  { %v11476_v42 = vld [vmem:[#allocation5 + $0x1180] sm:$0xff]  }
 0x269   :  { %10420 = vmatpush3.bf16.msra.mxu0 %v11427_v43  ;;  %v149_v43 = vld [vmem:[#allocation2 + $0x110] sm:$0xff] }
 0x26a   :  { %10442 = vmatpush3.bf16.msra.mxu1 %v11428_v44  ;;  %10421 = vmatprep.subr.bf16.mxu0 %v11429_v45  ;;  %v8893_v44 = vcombine.low %v149_v43, %v149_v43  ;;  %v8894_v45 = vcombine.high %v149_v43, %v149_v43  ;;  %v11520_v43 = vld [vmem:[#allocation5 + $0x13b8] sm:$0xff]  }
 0x26b   :  { %10443 = vmatprep.subr.bf16.mxu1 %v11430_v46  ;;  %v150_v46 = vld [vmem:[#allocation2 + $0x118] sm:$0xff] }
 0x26d   :  { %10422 = vmatpush3.bf16.msra.mxu0 %v11431_v47 }
 0x26e   :  { %10444 = vmatpush3.bf16.msra.mxu1 %v11432_v48  ;;  %10423 = vmatprep.subr.bf16.mxu0 %v11433_v49  ;;  %v8895_v49 = vcombine.low %v150_v46, %v150_v46 }
 0x26f   :  { %10445 = vmatprep.subr.bf16.mxu1 %v11434_v50  ;;  %v8896_v50 = vcombine.high %v150_v46, %v150_v46 }
 0x271   :  { %10424 = vmatpush3.bf16.msra.mxu0 %v11435_v51  ;;  %v11481_v51 = vld [vmem:[#allocation5 + $0x1278] sm:$0xff]  }
 0x272   :  { %10446 = vmatpush3.bf16.msra.mxu1 %v11436_v52  ;;  %10425 = vmatprep.subr.bf16.mxu0 %v11437_v53  ;;  %v11482_v52 = vld [vmem:[#allocation5 + $0x12f8] sm:$0xff]  }
 0x273   :  { %10447 = vmatprep.subr.bf16.mxu1 %v11438_v54 }
 0x275   :  { %10426 = vmatpush3.bf16.msra.mxu0 %v11439_v55  ;;  %v11483_v55 = vld [vmem:[#allocation5 + $0x1238] sm:$0xff]  }
 0x276   :  { %10448 = vmatpush3.bf16.msra.mxu1 %v11440_v56  ;;  %10455 = vmatprep.subr.bf16.mxu0 %v11445_v0 }
 0x277   :  { %10477 = vmatprep.subr.bf16.mxu1 %v11446_v2 }
 0x278   :  { %v10163_v59 = vpop.f32.mrf.mxu0  ;;  %7963 = vmatmul.mubr.bf16.vlgmr.msra.gmra.mxu0 %v8889_v60 }
 0x279   :  { %v10185_v63 = vpop.f32.mrf.mxu1  ;;  %8003 = vmatmul.mubr.bf16.vlgmr.msra.gmra.mxu1 %v8891_v62  ;;  %10456 = vmatpush3.bf16.msra.mxu0 %v11447_v4  ;;  %v11485_v62 = vld [vmem:[#allocation5 + $0x1270] sm:$0xff]  }
 0x27a   :  { %v10164_v3 = vpop.f32.mrf.mxu0  ;;  %10478 = vmatpush3.bf16.msra.mxu1 %v11448_v7  ;;  %10457 = vmatprep.subr.bf16.mxu0 %v11449_v12  ;;  %v11488_v4 = vld [vmem:[#allocation5 + $0x12b0] sm:$0xff]   ;;  %v11491_v7 = vld [vmem:[#allocation5 + $0x1228] sm:$0xff]   ;;  %v11496_v12 = vld [vmem:[#allocation5 + $0x12a0] sm:$0xff]  }
 0x27b   :  { %v10165_v5 = vadd.f32 %v10164_v3, %v10163_v59  ;;  %v10186_v6 = vpop.f32.mrf.mxu1  ;;  %10479 = vmatprep.subr.bf16.mxu1 %v11450_v13  ;;  %8042 = vmatprep.mubr.bf16.mxu0 %v8894_v45  ;;  %v11487_v3 = vld [vmem:[#allocation5 + $0x1230] sm:$0xff]   ;;  %v11497_v13 = vld [vmem:[#allocation5 + $0x1258] sm:$0xff]  }
 0x27c   :  { %v10187_v8 = vadd.f32 %v10186_v6, %v10185_v63  ;;  %v10166_v9 = vpop.f32.mrf.mxu0  ;;  %8082 = vmatprep.mubr.bf16.mxu1 %v8896_v50  ;;  %v11486_v63 = vld [vmem:[#allocation5 + $0x12f0] sm:$0xff]   ;;  %v11490_v6 = vld [vmem:[#allocation5 + $0x12e8] sm:$0xff]  }
 0x27d   :  { %v7485_v10 = vadd.f32 %v10165_v5, %v11987_v29  ;;  %v10188_v11 = vpop.f32.mrf.mxu1  ;;  %10458 = vmatpush3.bf16.msra.mxu0 %v11451_v16  ;;  %v11463_v29 = vld [vmem:[#allocation5 + $0x1118] sm:$0xff]   ;;  %v11489_v5 = vld [vmem:[#allocation5 + $0x1268] sm:$0xff]   ;;  %v11493_v9 = vld [vmem:[#allocation5 + $0x1260] sm:$0xff]  }
 0x27e   :  { %v10167_v14 = vpop.f32.mrf.mxu0  ;;  %10480 = vmatpush3.bf16.msra.mxu1 %v11452_v18  ;;  %10459 = vmatprep.subr.bf16.mxu0 %v11453_v19  ;;  %v11495_v11 = vld [vmem:[#allocation5 + $0x1220] sm:$0xff]   ;;  %v11500_v16 = vld [vmem:[#allocation5 + $0x1298] sm:$0xff]   ;;  %v11502_v18 = vld [vmem:[#allocation5 + $0x12d0] sm:$0xff]  }
 0x27f   :  { %v11990_v15 = vadd.f32 %v10187_v8, %v7485_v10  ;;  %v10189_v17 = vpop.f32.mrf.mxu1  ;;  %10481 = vmatprep.subr.bf16.mxu1 %v11454_v20  ;;  %v11492_v8 = vld [vmem:[#allocation5 + $0x12a8] sm:$0xff]   ;;  %v11494_v10 = vld [vmem:[#allocation5 + $0x12e0] sm:$0xff]   ;;  %v11498_v14 = vld [vmem:[#allocation5 + $0x12d8] sm:$0xff]  }
 0x280   :  { %v11501_v17 = vld [vmem:[#allocation5 + $0x1250] sm:$0xff]  }
 0x281   :  { %10460 = vmatpush3.bf16.msra.mxu0 %v11455_v21  ;;  %v11503_v19 = vld [vmem:[#allocation5 + $0x1210] sm:$0xff]   ;;  %v11505_v21 = vld [vmem:[#allocation5 + $0x1248] sm:$0xff]  }
 0x282   :  { %10482 = vmatpush3.bf16.msra.mxu1 %v11456_v22  ;;  %10461 = vmatprep.subr.bf16.mxu0 %v11457_v23  ;;  %v11504_v20 = vld [vmem:[#allocation5 + $0x1290] sm:$0xff]   ;;  %v11506_v22 = vld [vmem:[#allocation5 + $0x12c8] sm:$0xff]  }
 0x283   :  { %10483 = vmatprep.subr.bf16.mxu1 %v11458_v24  ;;  %v11507_v23 = vld [vmem:[#allocation5 + $0x1208] sm:$0xff]  }
 0x284   :  { %v11508_v24 = vld [vmem:[#allocation5 + $0x1288] sm:$0xff]  }
 0x285   :  { %10462 = vmatpush3.bf16.msra.mxu0 %v11459_v25  ;;  %v11509_v25 = vld [vmem:[#allocation5 + $0x1240] sm:$0xff]  }
 0x286   :  { %10484 = vmatpush3.bf16.msra.mxu1 %v11460_v26  ;;  %10463 = vmatprep.subr.bf16.mxu0 %v11461_v27  ;;  %v11510_v26 = vld [vmem:[#allocation5 + $0x12c0] sm:$0xff]  }
 0x287   :  { %10485 = vmatprep.subr.bf16.mxu1 %v11462_v28  ;;  %v11511_v27 = vld [vmem:[#allocation5 + $0x1200] sm:$0xff]  }
 0x288   :  { %v11512_v28 = vld [vmem:[#allocation5 + $0x1280] sm:$0xff]  }
 0x289   :  { %10464 = vmatpush3.bf16.msra.mxu0 %v11463_v29  ;;  %v151_v29 = vld [vmem:[#allocation2 + $0x120] sm:$0xff] }
 0x28a   :  { %10486 = vmatpush3.bf16.msra.mxu1 %v11464_v30  ;;  %10465 = vmatprep.subr.bf16.mxu0 %v11465_v31  ;;  %v152_v30 = vld [vmem:[#allocation2 + $0x128] sm:$0xff] }
 0x28b   :  { %10487 = vmatprep.subr.bf16.mxu1 %v11466_v32  ;;  %v8897_v32 = vcombine.low %v151_v29, %v151_v29 }
 0x28d   :  { %10466 = vmatpush3.bf16.msra.mxu0 %v11467_v33  ;;  %v8898_v33 = vcombine.high %v151_v29, %v151_v29  ;;  %v11556_v29 = vld [vmem:[#allocation5 + $0x14b8] sm:$0xff]  }
 0x28e   :  { %10488 = vmatpush3.bf16.msra.mxu1 %v11468_v34  ;;  %10467 = vmatprep.subr.bf16.mxu0 %v11469_v35  ;;  %v8899_v34 = vcombine.low %v152_v30, %v152_v30  ;;  %v8900_v35 = vcombine.high %v152_v30, %v152_v30 }
 0x28f   :  { %10489 = vmatprep.subr.bf16.mxu1 %v11470_v36 }
 0x291   :  { %10468 = vmatpush3.bf16.msra.mxu0 %v11471_v37  ;;  %v11517_v37 = vld [vmem:[#allocation5 + $0x1378] sm:$0xff]  }
 0x292   :  { %10490 = vmatpush3.bf16.msra.mxu1 %v11472_v38  ;;  %10469 = vmatprep.subr.bf16.mxu0 %v11473_v39  ;;  %v11518_v38 = vld [vmem:[#allocation5 + $0x13f8] sm:$0xff]  }
 0x293   :  { %10491 = vmatprep.subr.bf16.mxu1 %v11474_v40  ;;  %v11519_v40 = vld [vmem:[#allocation5 + $0x1338] sm:$0xff]  }
 0x295   :  { %10470 = vmatpush3.bf16.msra.mxu0 %v11475_v41 }
 0x296   :  { %10492 = vmatpush3.bf16.msra.mxu1 %v11476_v42  ;;  %10499 = vmatprep.subr.bf16.mxu0 %v11481_v51 }
 0x297   :  { %10521 = vmatprep.subr.bf16.mxu1 %v11482_v52  ;;  %v11523_v52 = vld [vmem:[#allocation5 + $0x1330] sm:$0xff]  }
 0x298   :  { %v10207_v47 = vpop.f32.mrf.mxu0  ;;  %8043 = vmatmul.mubr.bf16.vlgmr.msra.gmra.mxu0 %v8893_v44 }
 0x299   :  { %v10229_v48 = vpop.f32.mrf.mxu1  ;;  %8083 = vmatmul.mubr.bf16.vlgmr.msra.gmra.mxu1 %v8895_v49  ;;  %10500 = vmatpush3.bf16.msra.mxu0 %v11483_v55  ;;  %v11522_v49 = vld [vmem:[#allocation5 + $0x13f0] sm:$0xff]   ;;  %v11525_v55 = vld [vmem:[#allocation5 + $0x1368] sm:$0xff]  }
 0x29a   :  { %v10208_v53 = vpop.f32.mrf.mxu0  ;;  %10522 = vmatpush3.bf16.msra.mxu1 %v11484_v58  ;;  %10501 = vmatprep.subr.bf16.mxu0 %v11485_v62  ;;  %v11528_v58 = vld [vmem:[#allocation5 + $0x13a8] sm:$0xff]   ;;  %v11532_v62 = vld [vmem:[#allocation5 + $0x13a0] sm:$0xff]  }
 0x29b   :  { %v10230_v54 = vpop.f32.mrf.mxu1  ;;  %v10209_v56 = vadd.f32 %v10208_v53, %v10207_v47  ;;  %10523 = vmatprep.subr.bf16.mxu1 %v11486_v63  ;;  %8122 = vmatprep.mubr.bf16.mxu0 %v8898_v33  ;;  %v11533_v63 = vld [vmem:[#allocation5 + $0x1358] sm:$0xff]  }
 0x29c   :  { %v10231_v57 = vadd.f32 %v10230_v54, %v10229_v48  ;;  %v10210_v59 = vpop.f32.mrf.mxu0  ;;  %8162 = vmatprep.mubr.bf16.mxu1 %v8900_v35  ;;  %v11521_v48 = vld [vmem:[#allocation5 + $0x1370] sm:$0xff]  }
 0x29d   :  { %v10232_v60 = vpop.f32.mrf.mxu1  ;;  %v7565_v61 = vadd.f32 %v10209_v56, %v11990_v15  ;;  %10502 = vmatpush3.bf16.msra.mxu0 %v11487_v3  ;;  %v11499_v15 = vld [vmem:[#allocation5 + $0x1218] sm:$0xff]   ;;  %v11524_v54 = vld [vmem:[#allocation5 + $0x13b0] sm:$0xff]   ;;  %v11526_v56 = vld [vmem:[#allocation5 + $0x13e8] sm:$0xff]  }
 0x29e   :  { %v10211_v0 = vpop.f32.mrf.mxu0  ;;  %10524 = vmatpush3.bf16.msra.mxu1 %v11488_v4  ;;  %10503 = vmatprep.subr.bf16.mxu0 %v11489_v5  ;;  %v11529_v59 = vld [vmem:[#allocation5 + $0x1360] sm:$0xff]   ;;  %v11537_v3 = vld [vmem:[#allocation5 + $0x1350] sm:$0xff]  }
 0x29f   :  { %v10233_v1 = vpop.f32.mrf.mxu1  ;;  %v11993_v2 = vadd.f32 %v10231_v57, %v7565_v61  ;;  %10525 = vmatprep.subr.bf16.mxu1 %v11490_v6  ;;  %v11527_v57 = vld [vmem:[#allocation5 + $0x1328] sm:$0xff]   ;;  %v11530_v60 = vld [vmem:[#allocation5 + $0x13e0] sm:$0xff]   ;;  %v11534_v0 = vld [vmem:[#allocation5 + $0x13d8] sm:$0xff]  }
 0x2a0   :  { %v11531_v61 = vld [vmem:[#allocation5 + $0x1320] sm:$0xff]   ;;  %v11535_v1 = vld [vmem:[#allocation5 + $0x1318] sm:$0xff]   ;;  %v11538_v4 = vld [vmem:[#allocation5 + $0x13d0] sm:$0xff]  }
 0x2a1   :  { %10504 = vmatpush3.bf16.msra.mxu0 %v11491_v7  ;;  %v11539_v5 = vld [vmem:[#allocation5 + $0x1310] sm:$0xff]   ;;  %v11541_v7 = vld [vmem:[#allocation5 + $0x1348] sm:$0xff]  }
 0x2a2   :  { %10526 = vmatpush3.bf16.msra.mxu1 %v11492_v8  ;;  %10505 = vmatprep.subr.bf16.mxu0 %v11493_v9  ;;  %v11540_v6 = vld [vmem:[#allocation5 + $0x1390] sm:$0xff]   ;;  %v11542_v8 = vld [vmem:[#allocation5 + $0x13c8] sm:$0xff]  }
 0x2a3   :  { %10527 = vmatprep.subr.bf16.mxu1 %v11494_v10  ;;  %v11543_v9 = vld [vmem:[#allocation5 + $0x1308] sm:$0xff]   ;;  %v11558_v35 = vld [vmem:[#allocation5 + $0x14f0] sm:$0xff]  }
 0x2a4   :  { %v11544_v10 = vld [vmem:[#allocation5 + $0x1388] sm:$0xff]  }
 0x2a5   :  { %10506 = vmatpush3.bf16.msra.mxu0 %v11495_v11  ;;  %v11545_v11 = vld [vmem:[#allocation5 + $0x1340] sm:$0xff]  }
 0x2a6   :  { %10528 = vmatpush3.bf16.msra.mxu1 %v11496_v12  ;;  %10507 = vmatprep.subr.bf16.mxu0 %v11497_v13  ;;  %v11546_v12 = vld [vmem:[#allocation5 + $0x13c0] sm:$0xff]  }
 0x2a7   :  { %10529 = vmatprep.subr.bf16.mxu1 %v11498_v14  ;;  %v11547_v13 = vld [vmem:[#allocation5 + $0x1300] sm:$0xff]  }
 0x2a8   :  { %v11548_v14 = vld [vmem:[#allocation5 + $0x1380] sm:$0xff]  }
 0x2a9   :  { %10508 = vmatpush3.bf16.msra.mxu0 %v11499_v15  ;;  %v153_v15 = vld [vmem:[#allocation2 + $0x130] sm:$0xff] }
 0x2aa   :  { %10530 = vmatpush3.bf16.msra.mxu1 %v11500_v16  ;;  %10509 = vmatprep.subr.bf16.mxu0 %v11501_v17  ;;  %v154_v16 = vld [vmem:[#allocation2 + $0x138] sm:$0xff] }
 0x2ab   :  { %10531 = vmatprep.subr.bf16.mxu1 %v11502_v18  ;;  %v8901_v18 = vcombine.low %v153_v15, %v153_v15 }
 0x2ad   :  { %10510 = vmatpush3.bf16.msra.mxu0 %v11503_v19  ;;  %v8902_v19 = vcombine.high %v153_v15, %v153_v15 }
 0x2ae   :  { %10532 = vmatpush3.bf16.msra.mxu1 %v11504_v20  ;;  %10511 = vmatprep.subr.bf16.mxu0 %v11505_v21  ;;  %v8903_v20 = vcombine.low %v154_v16, %v154_v16 }
 0x2af   :  { %10533 = vmatprep.subr.bf16.mxu1 %v11506_v22  ;;  %v11553_v22 = vld [vmem:[#allocation5 + $0x1478] sm:$0xff]  }
 0x2b1   :  { %10512 = vmatpush3.bf16.msra.mxu0 %v11507_v23  ;;  %v8904_v23 = vcombine.high %v154_v16, %v154_v16  ;;  %v11592_v16 = vld [vmem:[#allocation5 + $0x15b8] sm:$0xff]  }
 0x2b2   :  { %10534 = vmatpush3.bf16.msra.mxu1 %v11508_v24  ;;  %10513 = vmatprep.subr.bf16.mxu0 %v11509_v25  ;;  %v11554_v24 = vld [vmem:[#allocation5 + $0x14f8] sm:$0xff]  }
 0x2b3   :  { %10535 = vmatprep.subr.bf16.mxu1 %v11510_v26  ;;  %v11555_v26 = vld [vmem:[#allocation5 + $0x1438] sm:$0xff]  }
 0x2b5   :  { %10514 = vmatpush3.bf16.msra.mxu0 %v11511_v27 }
 0x2b6   :  { %10536 = vmatpush3.bf16.msra.mxu1 %v11512_v28  ;;  %10543 = vmatprep.subr.bf16.mxu0 %v11517_v37 }
 0x2b7   :  { %10565 = vmatprep.subr.bf16.mxu1 %v11518_v38  ;;  %v11559_v38 = vld [vmem:[#allocation5 + $0x1430] sm:$0xff]  }
 0x2b8   :  { %v10251_v31 = vpop.f32.mrf.mxu0  ;;  %8123 = vmatmul.mubr.bf16.vlgmr.msra.gmra.mxu0 %v8897_v32 }
 0x2b9   :  { %v10273_v36 = vpop.f32.mrf.mxu1  ;;  %8163 = vmatmul.mubr.bf16.vlgmr.msra.gmra.mxu1 %v8899_v34  ;;  %10544 = vmatpush3.bf16.msra.mxu0 %v11519_v40  ;;  %v11557_v34 = vld [vmem:[#allocation5 + $0x1470] sm:$0xff]  }
 0x2ba   :  { %v10252_v39 = vpop.f32.mrf.mxu0  ;;  %10566 = vmatpush3.bf16.msra.mxu1 %v11520_v43  ;;  %10545 = vmatprep.subr.bf16.mxu0 %v11521_v48  ;;  %v11560_v40 = vld [vmem:[#allocation5 + $0x14b0] sm:$0xff]   ;;  %v11563_v43 = vld [vmem:[#allocation5 + $0x1428] sm:$0xff]   ;;  %v11568_v48 = vld [vmem:[#allocation5 + $0x14a0] sm:$0xff]  }
 0x2bb   :  { %v10253_v41 = vadd.f32 %v10252_v39, %v10251_v31  ;;  %v10274_v42 = vpop.f32.mrf.mxu1  ;;  %10567 = vmatprep.subr.bf16.mxu1 %v11522_v49  ;;  %8202 = vmatprep.mubr.bf16.mxu0 %v8902_v19  ;;  %v11569_v49 = vld [vmem:[#allocation5 + $0x1458] sm:$0xff]  }
 0x2bc   :  { %v10275_v44 = vadd.f32 %v10274_v42, %v10273_v36  ;;  %v10254_v45 = vpop.f32.mrf.mxu0  ;;  %8242 = vmatprep.mubr.bf16.mxu1 %v8904_v23  ;;  %v11562_v42 = vld [vmem:[#allocation5 + $0x14e8] sm:$0xff]  }
 0x2bd   :  { %v7645_v46 = vadd.f32 %v10253_v41, %v11993_v2  ;;  %v10276_v47 = vpop.f32.mrf.mxu1  ;;  %10546 = vmatpush3.bf16.msra.mxu0 %v11523_v52  ;;  %v11536_v2 = vld [vmem:[#allocation5 + $0x1398] sm:$0xff]   ;;  %v11561_v41 = vld [vmem:[#allocation5 + $0x1468] sm:$0xff]   ;;  %v11565_v45 = vld [vmem:[#allocation5 + $0x1460] sm:$0xff]  }
 0x2be   :  { %v10255_v50 = vpop.f32.mrf.mxu0  ;;  %10568 = vmatpush3.bf16.msra.mxu1 %v11524_v54  ;;  %10547 = vmatprep.subr.bf16.mxu0 %v11525_v55  ;;  %v11567_v47 = vld [vmem:[#allocation5 + $0x1420] sm:$0xff]   ;;  %v11572_v52 = vld [vmem:[#allocation5 + $0x1498] sm:$0xff]   ;;  %v11574_v54 = vld [vmem:[#allocation5 + $0x14d0] sm:$0xff]  }
 0x2bf   :  { %v11996_v51 = vadd.f32 %v10275_v44, %v7645_v46  ;;  %v10277_v53 = vpop.f32.mrf.mxu1  ;;  %10569 = vmatprep.subr.bf16.mxu1 %v11526_v56  ;;  %v11564_v44 = vld [vmem:[#allocation5 + $0x14a8] sm:$0xff]   ;;  %v11566_v46 = vld [vmem:[#allocation5 + $0x14e0] sm:$0xff]   ;;  %v11570_v50 = vld [vmem:[#allocation5 + $0x14d8] sm:$0xff]  }
 0x2c0   :  { %v11573_v53 = vld [vmem:[#allocation5 + $0x1450] sm:$0xff]  }
 0x2c1   :  { %10548 = vmatpush3.bf16.msra.mxu0 %v11527_v57  ;;  %v11575_v55 = vld [vmem:[#allocation5 + $0x1410] sm:$0xff]   ;;  %v11577_v57 = vld [vmem:[#allocation5 + $0x1448] sm:$0xff]  }
 0x2c2   :  { %10570 = vmatpush3.bf16.msra.mxu1 %v11528_v58  ;;  %10549 = vmatprep.subr.bf16.mxu0 %v11529_v59  ;;  %v11576_v56 = vld [vmem:[#allocation5 + $0x1490] sm:$0xff]   ;;  %v11578_v58 = vld [vmem:[#allocation5 + $0x14c8] sm:$0xff]  }
 0x2c3   :  { %10571 = vmatprep.subr.bf16.mxu1 %v11530_v60  ;;  %v11579_v59 = vld [vmem:[#allocation5 + $0x1408] sm:$0xff]  }
 0x2c4   :  { %v11580_v60 = vld [vmem:[#allocation5 + $0x1488] sm:$0xff]  }
 0x2c5   :  { %10550 = vmatpush3.bf16.msra.mxu0 %v11531_v61  ;;  %v11581_v61 = vld [vmem:[#allocation5 + $0x1440] sm:$0xff]  }
 0x2c6   :  { %10572 = vmatpush3.bf16.msra.mxu1 %v11532_v62  ;;  %10551 = vmatprep.subr.bf16.mxu0 %v11533_v63  ;;  %v11582_v62 = vld [vmem:[#allocation5 + $0x14c0] sm:$0xff]  }
 0x2c7   :  { %10573 = vmatprep.subr.bf16.mxu1 %v11534_v0  ;;  %v11583_v63 = vld [vmem:[#allocation5 + $0x1400] sm:$0xff]  }
 0x2c8   :  { %v11584_v0 = vld [vmem:[#allocation5 + $0x1480] sm:$0xff]  }
 0x2c9   :  { %10552 = vmatpush3.bf16.msra.mxu0 %v11535_v1  ;;  %v155_v1 = vld [vmem:[#allocation2 + $0x140] sm:$0xff] }
 0x2ca   :  { %10574 = vmatpush3.bf16.msra.mxu1 %v11536_v2  ;;  %10553 = vmatprep.subr.bf16.mxu0 %v11537_v3  ;;  %v8905_v2 = vcombine.low %v155_v1, %v155_v1  ;;  %v8906_v3 = vcombine.high %v155_v1, %v155_v1  ;;  %v11628_v1 = vld [vmem:[#allocation5 + $0x16b8] sm:$0xff]  }
 0x2cb   :  { %10575 = vmatprep.subr.bf16.mxu1 %v11538_v4  ;;  %v156_v4 = vld [vmem:[#allocation2 + $0x148] sm:$0xff] }
 0x2cd   :  { %10554 = vmatpush3.bf16.msra.mxu0 %v11539_v5 }
 0x2ce   :  { %10576 = vmatpush3.bf16.msra.mxu1 %v11540_v6  ;;  %10555 = vmatprep.subr.bf16.mxu0 %v11541_v7  ;;  %v8907_v7 = vcombine.low %v156_v4, %v156_v4 }
 0x2cf   :  { %10577 = vmatprep.subr.bf16.mxu1 %v11542_v8  ;;  %v8908_v8 = vcombine.high %v156_v4, %v156_v4 }
 0x2d1   :  { %10556 = vmatpush3.bf16.msra.mxu0 %v11543_v9  ;;  %v11589_v9 = vld [vmem:[#allocation5 + $0x1578] sm:$0xff]  }
 0x2d2   :  { %10578 = vmatpush3.bf16.msra.mxu1 %v11544_v10  ;;  %10557 = vmatprep.subr.bf16.mxu0 %v11545_v11  ;;  %v11590_v10 = vld [vmem:[#allocation5 + $0x15f8] sm:$0xff]  }
 0x2d3   :  { %10579 = vmatprep.subr.bf16.mxu1 %v11546_v12 }
 0x2d5   :  { %10558 = vmatpush3.bf16.msra.mxu0 %v11547_v13  ;;  %v11591_v13 = vld [vmem:[#allocation5 + $0x1538] sm:$0xff]  }
 0x2d6   :  { %10580 = vmatpush3.bf16.msra.mxu1 %v11548_v14  ;;  %10587 = vmatprep.subr.bf16.mxu0 %v11553_v22 }
 0x2d7   :  { %10609 = vmatprep.subr.bf16.mxu1 %v11554_v24 }
 0x2d8   :  { %v10295_v17 = vpop.f32.mrf.mxu0  ;;  %8203 = vmatmul.mubr.bf16.vlgmr.msra.gmra.mxu0 %v8901_v18 }
 0x2d9   :  { %v10317_v21 = vpop.f32.mrf.mxu1  ;;  %8243 = vmatmul.mubr.bf16.vlgmr.msra.gmra.mxu1 %v8903_v20  ;;  %10588 = vmatpush3.bf16.msra.mxu0 %v11555_v26  ;;  %v11593_v20 = vld [vmem:[#allocation5 + $0x1570] sm:$0xff]  }
 0x2da   :  { %v10296_v25 = vpop.f32.mrf.mxu0  ;;  %10610 = vmatpush3.bf16.msra.mxu1 %v11556_v29  ;;  %10589 = vmatprep.subr.bf16.mxu0 %v11557_v34  ;;  %v11596_v26 = vld [vmem:[#allocation5 + $0x15b0] sm:$0xff]   ;;  %v11599_v29 = vld [vmem:[#allocation5 + $0x1528] sm:$0xff]   ;;  %v11604_v34 = vld [vmem:[#allocation5 + $0x15a0] sm:$0xff]  }
 0x2db   :  { %v10297_v27 = vadd.f32 %v10296_v25, %v10295_v17  ;;  %v10318_v28 = vpop.f32.mrf.mxu1  ;;  %10611 = vmatprep.subr.bf16.mxu1 %v11558_v35  ;;  %8282 = vmatprep.mubr.bf16.mxu0 %v8906_v3  ;;  %v11595_v25 = vld [vmem:[#allocation5 + $0x1530] sm:$0xff]   ;;  %v11605_v35 = vld [vmem:[#allocation5 + $0x1558] sm:$0xff]  }
 0x2dc   :  { %v10319_v30 = vadd.f32 %v10318_v28, %v10317_v21  ;;  %v10298_v31 = vpop.f32.mrf.mxu0  ;;  %8322 = vmatprep.mubr.bf16.mxu1 %v8908_v8  ;;  %v11594_v21 = vld [vmem:[#allocation5 + $0x15f0] sm:$0xff]   ;;  %v11598_v28 = vld [vmem:[#allocation5 + $0x15e8] sm:$0xff]  }
 0x2dd   :  { %v7725_v32 = vadd.f32 %v10297_v27, %v11996_v51  ;;  %v10320_v33 = vpop.f32.mrf.mxu1  ;;  %10590 = vmatpush3.bf16.msra.mxu0 %v11559_v38  ;;  %v11571_v51 = vld [vmem:[#allocation5 + $0x1418] sm:$0xff]   ;;  %v11597_v27 = vld [vmem:[#allocation5 + $0x1568] sm:$0xff]   ;;  %v11601_v31 = vld [vmem:[#allocation5 + $0x1560] sm:$0xff]  }
 0x2de   :  { %v10299_v36 = vpop.f32.mrf.mxu0  ;;  %10612 = vmatpush3.bf16.msra.mxu1 %v11560_v40  ;;  %10591 = vmatprep.subr.bf16.mxu0 %v11561_v41  ;;  %v11603_v33 = vld [vmem:[#allocation5 + $0x1520] sm:$0xff]   ;;  %v11608_v38 = vld [vmem:[#allocation5 + $0x1598] sm:$0xff]   ;;  %v11610_v40 = vld [vmem:[#allocation5 + $0x15d0] sm:$0xff]  }
 0x2df   :  { %v11999_v37 = vadd.f32 %v10319_v30, %v7725_v32  ;;  %v10321_v39 = vpop.f32.mrf.mxu1  ;;  %10613 = vmatprep.subr.bf16.mxu1 %v11562_v42  ;;  %v11600_v30 = vld [vmem:[#allocation5 + $0x15a8] sm:$0xff]   ;;  %v11602_v32 = vld [vmem:[#allocation5 + $0x15e0] sm:$0xff]   ;;  %v11606_v36 = vld [vmem:[#allocation5 + $0x15d8] sm:$0xff]  }
 0x2e0   :  { %v11609_v39 = vld [vmem:[#allocation5 + $0x1550] sm:$0xff]  }
 0x2e1   :  { %10592 = vmatpush3.bf16.msra.mxu0 %v11563_v43  ;;  %v11611_v41 = vld [vmem:[#allocation5 + $0x1510] sm:$0xff]   ;;  %v11613_v43 = vld [vmem:[#allocation5 + $0x1548] sm:$0xff]  }
 0x2e2   :  { %10614 = vmatpush3.bf16.msra.mxu1 %v11564_v44  ;;  %10593 = vmatprep.subr.bf16.mxu0 %v11565_v45  ;;  %v11612_v42 = vld [vmem:[#allocation5 + $0x1590] sm:$0xff]   ;;  %v11614_v44 = vld [vmem:[#allocation5 + $0x15c8] sm:$0xff]  }
 0x2e3   :  { %10615 = vmatprep.subr.bf16.mxu1 %v11566_v46  ;;  %v11615_v45 = vld [vmem:[#allocation5 + $0x1508] sm:$0xff]  }
 0x2e4   :  { %v11616_v46 = vld [vmem:[#allocation5 + $0x1588] sm:$0xff]  }
 0x2e5   :  { %10594 = vmatpush3.bf16.msra.mxu0 %v11567_v47  ;;  %v11617_v47 = vld [vmem:[#allocation5 + $0x1540] sm:$0xff]  }
 0x2e6   :  { %10616 = vmatpush3.bf16.msra.mxu1 %v11568_v48  ;;  %10595 = vmatprep.subr.bf16.mxu0 %v11569_v49  ;;  %v11618_v48 = vld [vmem:[#allocation5 + $0x15c0] sm:$0xff]  }
 0x2e7   :  { %10617 = vmatprep.subr.bf16.mxu1 %v11570_v50  ;;  %v11619_v49 = vld [vmem:[#allocation5 + $0x1500] sm:$0xff]  }
 0x2e8   :  { %v11620_v50 = vld [vmem:[#allocation5 + $0x1580] sm:$0xff]  }
 0x2e9   :  { %10596 = vmatpush3.bf16.msra.mxu0 %v11571_v51  ;;  %v157_v51 = vld [vmem:[#allocation2 + $0x150] sm:$0xff] }
 0x2ea   :  { %10618 = vmatpush3.bf16.msra.mxu1 %v11572_v52  ;;  %10597 = vmatprep.subr.bf16.mxu0 %v11573_v53  ;;  %v158_v52 = vld [vmem:[#allocation2 + $0x158] sm:$0xff] }
 0x2eb   :  { %10619 = vmatprep.subr.bf16.mxu1 %v11574_v54  ;;  %v8909_v54 = vcombine.low %v157_v51, %v157_v51 }
 0x2ed   :  { %10598 = vmatpush3.bf16.msra.mxu0 %v11575_v55  ;;  %v8910_v55 = vcombine.high %v157_v51, %v157_v51  ;;  %v11664_v51 = vld [vmem:[#allocation5 + $0x17b8] sm:$0xff]  }
 0x2ee   :  { %10620 = vmatpush3.bf16.msra.mxu1 %v11576_v56  ;;  %10599 = vmatprep.subr.bf16.mxu0 %v11577_v57  ;;  %v8911_v56 = vcombine.low %v158_v52, %v158_v52  ;;  %v8912_v57 = vcombine.high %v158_v52, %v158_v52 }
 0x2ef   :  { %10621 = vmatprep.subr.bf16.mxu1 %v11578_v58 }
 0x2f1   :  { %10600 = vmatpush3.bf16.msra.mxu0 %v11579_v59  ;;  %v11625_v59 = vld [vmem:[#allocation5 + $0x1678] sm:$0xff]  }
 0x2f2   :  { %10622 = vmatpush3.bf16.msra.mxu1 %v11580_v60  ;;  %10601 = vmatprep.subr.bf16.mxu0 %v11581_v61  ;;  %v11626_v60 = vld [vmem:[#allocation5 + $0x16f8] sm:$0xff]  }
 0x2f3   :  { %10623 = vmatprep.subr.bf16.mxu1 %v11582_v62  ;;  %v11627_v62 = vld [vmem:[#allocation5 + $0x1638] sm:$0xff]  }
 0x2f5   :  { %10602 = vmatpush3.bf16.msra.mxu0 %v11583_v63 }
 0x2f6   :  { %10624 = vmatpush3.bf16.msra.mxu1 %v11584_v0  ;;  %10631 = vmatprep.subr.bf16.mxu0 %v11589_v9 }
 0x2f7   :  { %10653 = vmatprep.subr.bf16.mxu1 %v11590_v10  ;;  %v11631_v10 = vld [vmem:[#allocation5 + $0x1630] sm:$0xff]  }
 0x2f8   :  { %v10339_v5 = vpop.f32.mrf.mxu0  ;;  %8283 = vmatmul.mubr.bf16.vlgmr.msra.gmra.mxu0 %v8905_v2 }
 0x2f9   :  { %v10361_v6 = vpop.f32.mrf.mxu1  ;;  %8323 = vmatmul.mubr.bf16.vlgmr.msra.gmra.mxu1 %v8907_v7  ;;  %10632 = vmatpush3.bf16.msra.mxu0 %v11591_v13  ;;  %v11630_v7 = vld [vmem:[#allocation5 + $0x16f0] sm:$0xff]   ;;  %v11633_v13 = vld [vmem:[#allocation5 + $0x1668] sm:$0xff]  }
 0x2fa   :  { %v10340_v11 = vpop.f32.mrf.mxu0  ;;  %10654 = vmatpush3.bf16.msra.mxu1 %v11592_v16  ;;  %10633 = vmatprep.subr.bf16.mxu0 %v11593_v20  ;;  %v11636_v16 = vld [vmem:[#allocation5 + $0x16a8] sm:$0xff]   ;;  %v11640_v20 = vld [vmem:[#allocation5 + $0x16a0] sm:$0xff]  }
 0x2fb   :  { %v10362_v12 = vpop.f32.mrf.mxu1  ;;  %v10341_v14 = vadd.f32 %v10340_v11, %v10339_v5  ;;  %10655 = vmatprep.subr.bf16.mxu1 %v11594_v21  ;;  %8362 = vmatprep.mubr.bf16.mxu0 %v8910_v55  ;;  %v11641_v21 = vld [vmem:[#allocation5 + $0x1658] sm:$0xff]  }
 0x2fc   :  { %v10363_v15 = vadd.f32 %v10362_v12, %v10361_v6  ;;  %v10342_v17 = vpop.f32.mrf.mxu0  ;;  %8402 = vmatprep.mubr.bf16.mxu1 %v8912_v57  ;;  %v11629_v6 = vld [vmem:[#allocation5 + $0x1670] sm:$0xff]  }
 0x2fd   :  { %v10364_v18 = vpop.f32.mrf.mxu1  ;;  %v7805_v19 = vadd.f32 %v10341_v14, %v11999_v37  ;;  %10634 = vmatpush3.bf16.msra.mxu0 %v11595_v25  ;;  %v11607_v37 = vld [vmem:[#allocation5 + $0x1518] sm:$0xff]   ;;  %v11632_v12 = vld [vmem:[#allocation5 + $0x16b0] sm:$0xff]   ;;  %v11634_v14 = vld [vmem:[#allocation5 + $0x16e8] sm:$0xff]  }
 0x2fe   :  { %v10343_v22 = vpop.f32.mrf.mxu0  ;;  %10656 = vmatpush3.bf16.msra.mxu1 %v11596_v26  ;;  %10635 = vmatprep.subr.bf16.mxu0 %v11597_v27  ;;  %v11637_v17 = vld [vmem:[#allocation5 + $0x1660] sm:$0xff]   ;;  %v11645_v25 = vld [vmem:[#allocation5 + $0x1650] sm:$0xff]  }
 0x2ff   :  { %v10365_v23 = vpop.f32.mrf.mxu1  ;;  %v12002_v24 = vadd.f32 %v10363_v15, %v7805_v19  ;;  %10657 = vmatprep.subr.bf16.mxu1 %v11598_v28  ;;  %v11635_v15 = vld [vmem:[#allocation5 + $0x1628] sm:$0xff]   ;;  %v11638_v18 = vld [vmem:[#allocation5 + $0x16e0] sm:$0xff]   ;;  %v11642_v22 = vld [vmem:[#allocation5 + $0x16d8] sm:$0xff]  }
 0x300   :  { %v11639_v19 = vld [vmem:[#allocation5 + $0x1620] sm:$0xff]   ;;  %v11643_v23 = vld [vmem:[#allocation5 + $0x1618] sm:$0xff]   ;;  %v11646_v26 = vld [vmem:[#allocation5 + $0x16d0] sm:$0xff]  }
 0x301   :  { %10636 = vmatpush3.bf16.msra.mxu0 %v11599_v29  ;;  %v11647_v27 = vld [vmem:[#allocation5 + $0x1610] sm:$0xff]   ;;  %v11649_v29 = vld [vmem:[#allocation5 + $0x1648] sm:$0xff]  }
 0x302   :  { %10658 = vmatpush3.bf16.msra.mxu1 %v11600_v30  ;;  %10637 = vmatprep.subr.bf16.mxu0 %v11601_v31  ;;  %v11648_v28 = vld [vmem:[#allocation5 + $0x1690] sm:$0xff]   ;;  %v11650_v30 = vld [vmem:[#allocation5 + $0x16c8] sm:$0xff]  }
 0x303   :  { %10659 = vmatprep.subr.bf16.mxu1 %v11602_v32  ;;  %v11651_v31 = vld [vmem:[#allocation5 + $0x1608] sm:$0xff]   ;;  %v11666_v57 = vld [vmem:[#allocation5 + $0x17f0] sm:$0xff]  }
 0x304   :  { %v11652_v32 = vld [vmem:[#allocation5 + $0x1688] sm:$0xff]  }
 0x305   :  { %10638 = vmatpush3.bf16.msra.mxu0 %v11603_v33  ;;  %v11653_v33 = vld [vmem:[#allocation5 + $0x1640] sm:$0xff]  }
 0x306   :  { %10660 = vmatpush3.bf16.msra.mxu1 %v11604_v34  ;;  %10639 = vmatprep.subr.bf16.mxu0 %v11605_v35  ;;  %v11654_v34 = vld [vmem:[#allocation5 + $0x16c0] sm:$0xff]  }
 0x307   :  { %10661 = vmatprep.subr.bf16.mxu1 %v11606_v36  ;;  %v11655_v35 = vld [vmem:[#allocation5 + $0x1600] sm:$0xff]  }
 0x308   :  { %v11656_v36 = vld [vmem:[#allocation5 + $0x1680] sm:$0xff]  }
 0x309   :  { %10640 = vmatpush3.bf16.msra.mxu0 %v11607_v37  ;;  %v159_v37 = vld [vmem:[#allocation2 + $0x160] sm:$0xff] }
 0x30a   :  { %10662 = vmatpush3.bf16.msra.mxu1 %v11608_v38  ;;  %10641 = vmatprep.subr.bf16.mxu0 %v11609_v39  ;;  %v160_v38 = vld [vmem:[#allocation2 + $0x168] sm:$0xff] }
 0x30b   :  { %10663 = vmatprep.subr.bf16.mxu1 %v11610_v40  ;;  %v8913_v40 = vcombine.low %v159_v37, %v159_v37 }
 0x30d   :  { %10642 = vmatpush3.bf16.msra.mxu0 %v11611_v41  ;;  %v8914_v41 = vcombine.high %v159_v37, %v159_v37 }
 0x30e   :  { %10664 = vmatpush3.bf16.msra.mxu1 %v11612_v42  ;;  %10643 = vmatprep.subr.bf16.mxu0 %v11613_v43  ;;  %v8915_v42 = vcombine.low %v160_v38, %v160_v38 }
 0x30f   :  { %10665 = vmatprep.subr.bf16.mxu1 %v11614_v44  ;;  %v11661_v44 = vld [vmem:[#allocation5 + $0x1778] sm:$0xff]  }
 0x311   :  { %10644 = vmatpush3.bf16.msra.mxu0 %v11615_v45  ;;  %v8916_v45 = vcombine.high %v160_v38, %v160_v38 }
 0x312   :  { %10666 = vmatpush3.bf16.msra.mxu1 %v11616_v46  ;;  %10645 = vmatprep.subr.bf16.mxu0 %v11617_v47  ;;  %v11662_v46 = vld [vmem:[#allocation5 + $0x17f8] sm:$0xff]  }
 0x313   :  { %10667 = vmatprep.subr.bf16.mxu1 %v11618_v48  ;;  %v11663_v48 = vld [vmem:[#allocation5 + $0x1738] sm:$0xff]  }
 0x315   :  { %10646 = vmatpush3.bf16.msra.mxu0 %v11619_v49 }
 0x316   :  { %10668 = vmatpush3.bf16.msra.mxu1 %v11620_v50  ;;  %10675 = vmatprep.subr.bf16.mxu0 %v11625_v59 }
 0x317   :  { %10697 = vmatprep.subr.bf16.mxu1 %v11626_v60  ;;  %v11667_v60 = vld [vmem:[#allocation5 + $0x1730] sm:$0xff]  }
 0x318   :  { %v10383_v53 = vpop.f32.mrf.mxu0  ;;  %8363 = vmatmul.mubr.bf16.vlgmr.msra.gmra.mxu0 %v8909_v54 }
 0x319   :  { %v10405_v58 = vpop.f32.mrf.mxu1  ;;  %8403 = vmatmul.mubr.bf16.vlgmr.msra.gmra.mxu1 %v8911_v56  ;;  %10676 = vmatpush3.bf16.msra.mxu0 %v11627_v62  ;;  %v11665_v56 = vld [vmem:[#allocation5 + $0x1770] sm:$0xff]  }
 0x31a   :  { %v10384_v61 = vpop.f32.mrf.mxu0  ;;  %10698 = vmatpush3.bf16.msra.mxu1 %v11628_v1  ;;  %10677 = vmatprep.subr.bf16.mxu0 %v11629_v6  ;;  %v11668_v62 = vld [vmem:[#allocation5 + $0x17b0] sm:$0xff]   ;;  %v11671_v1 = vld [vmem:[#allocation5 + $0x1728] sm:$0xff]   ;;  %v11676_v6 = vld [vmem:[#allocation5 + $0x17a0] sm:$0xff]  }
 0x31b   :  { %v10385_v63 = vadd.f32 %v10384_v61, %v10383_v53  ;;  %v10406_v0 = vpop.f32.mrf.mxu1  ;;  %10699 = vmatprep.subr.bf16.mxu1 %v11630_v7  ;;  %8442 = vmatprep.mubr.bf16.mxu0 %v8914_v41  ;;  %v11677_v7 = vld [vmem:[#allocation5 + $0x1758] sm:$0xff]  }
 0x31c   :  { %v10407_v2 = vadd.f32 %v10406_v0, %v10405_v58  ;;  %v10386_v3 = vpop.f32.mrf.mxu0  ;;  %8482 = vmatprep.mubr.bf16.mxu1 %v8916_v45  ;;  %v11670_v0 = vld [vmem:[#allocation5 + $0x17e8] sm:$0xff]  }
 0x31d   :  { %v7885_v4 = vadd.f32 %v10385_v63, %v12002_v24  ;;  %v10408_v5 = vpop.f32.mrf.mxu1  ;;  %10678 = vmatpush3.bf16.msra.mxu0 %v11631_v10  ;;  %v11644_v24 = vld [vmem:[#allocation5 + $0x1698] sm:$0xff]   ;;  %v11669_v63 = vld [vmem:[#allocation5 + $0x1768] sm:$0xff]   ;;  %v11673_v3 = vld [vmem:[#allocation5 + $0x1760] sm:$0xff]  }
 0x31e   :  { %v10387_v8 = vpop.f32.mrf.mxu0  ;;  %10700 = vmatpush3.bf16.msra.mxu1 %v11632_v12  ;;  %10679 = vmatprep.subr.bf16.mxu0 %v11633_v13  ;;  %v11675_v5 = vld [vmem:[#allocation5 + $0x1720] sm:$0xff]   ;;  %v11680_v10 = vld [vmem:[#allocation5 + $0x1798] sm:$0xff]   ;;  %v11682_v12 = vld [vmem:[#allocation5 + $0x17d0] sm:$0xff]  }
 0x31f   :  { %v12005_v9 = vadd.f32 %v10407_v2, %v7885_v4  ;;  %v10409_v11 = vpop.f32.mrf.mxu1  ;;  %10701 = vmatprep.subr.bf16.mxu1 %v11634_v14  ;;  %v11672_v2 = vld [vmem:[#allocation5 + $0x17a8] sm:$0xff]   ;;  %v11674_v4 = vld [vmem:[#allocation5 + $0x17e0] sm:$0xff]   ;;  %v11678_v8 = vld [vmem:[#allocation5 + $0x17d8] sm:$0xff]  }
 0x320   :  { %v11681_v11 = vld [vmem:[#allocation5 + $0x1750] sm:$0xff]  }
 0x321   :  { %10680 = vmatpush3.bf16.msra.mxu0 %v11635_v15  ;;  %v11683_v13 = vld [vmem:[#allocation5 + $0x1710] sm:$0xff]   ;;  %v11685_v15 = vld [vmem:[#allocation5 + $0x1748] sm:$0xff]  }
 0x322   :  { %10702 = vmatpush3.bf16.msra.mxu1 %v11636_v16  ;;  %10681 = vmatprep.subr.bf16.mxu0 %v11637_v17  ;;  %v11684_v14 = vld [vmem:[#allocation5 + $0x1790] sm:$0xff]   ;;  %v11686_v16 = vld [vmem:[#allocation5 + $0x17c8] sm:$0xff]  }
 0x323   :  { %10703 = vmatprep.subr.bf16.mxu1 %v11638_v18  ;;  %v11687_v17 = vld [vmem:[#allocation5 + $0x1708] sm:$0xff]  }
 0x324   :  { %v11688_v18 = vld [vmem:[#allocation5 + $0x1788] sm:$0xff]  }
 0x325   :  { %10682 = vmatpush3.bf16.msra.mxu0 %v11639_v19  ;;  %v11689_v19 = vld [vmem:[#allocation5 + $0x1740] sm:$0xff]  }
 0x326   :  { %10704 = vmatpush3.bf16.msra.mxu1 %v11640_v20  ;;  %10683 = vmatprep.subr.bf16.mxu0 %v11641_v21  ;;  %v11690_v20 = vld [vmem:[#allocation5 + $0x17c0] sm:$0xff]  }
 0x327   :  { %10705 = vmatprep.subr.bf16.mxu1 %v11642_v22  ;;  %v11691_v21 = vld [vmem:[#allocation5 + $0x1700] sm:$0xff]  }
 0x328   :  { %v11692_v22 = vld [vmem:[#allocation5 + $0x1780] sm:$0xff]  }
 0x329   :  { %10684 = vmatpush3.bf16.msra.mxu0 %v11643_v23  ;;  %v161_v23 = vld [vmem:[#allocation2 + $0x170] sm:$0xff] }
 0x32a   :  { %10706 = vmatpush3.bf16.msra.mxu1 %v11644_v24  ;;  %10685 = vmatprep.subr.bf16.mxu0 %v11645_v25  ;;  %v8917_v24 = vcombine.low %v161_v23, %v161_v23  ;;  %v8918_v25 = vcombine.high %v161_v23, %v161_v23 }
 0x32b   :  { %10707 = vmatprep.subr.bf16.mxu1 %v11646_v26  ;;  %v162_v26 = vld [vmem:[#allocation2 + $0x178] sm:$0xff] }
 0x32d   :  { %10686 = vmatpush3.bf16.msra.mxu0 %v11647_v27 }
 0x32e   :  { %10708 = vmatpush3.bf16.msra.mxu1 %v11648_v28  ;;  %10687 = vmatprep.subr.bf16.mxu0 %v11649_v29  ;;  %v8919_v29 = vcombine.low %v162_v26, %v162_v26 }
 0x32f   :  { %10709 = vmatprep.subr.bf16.mxu1 %v11650_v30  ;;  %v8920_v30 = vcombine.high %v162_v26, %v162_v26 }
 0x331   :  { %10688 = vmatpush3.bf16.msra.mxu0 %v11651_v31 }
 0x332   :  { %10710 = vmatpush3.bf16.msra.mxu1 %v11652_v32  ;;  %10689 = vmatprep.subr.bf16.mxu0 %v11653_v33 }
 0x333   :  { %10711 = vmatprep.subr.bf16.mxu1 %v11654_v34 }
 0x335   :  { %10690 = vmatpush3.bf16.msra.mxu0 %v11655_v35 }
 0x336   :  { %10712 = vmatpush3.bf16.msra.mxu1 %v11656_v36  ;;  %10719 = vmatprep.subr.bf16.mxu0 %v11661_v44 }
 0x337   :  { %10741 = vmatprep.subr.bf16.mxu1 %v11662_v46 }
 0x338   :  { %v10427_v39 = vpop.f32.mrf.mxu0  ;;  %8443 = vmatmul.mubr.bf16.vlgmr.msra.gmra.mxu0 %v8913_v40 }
 0x339   :  { %v10449_v43 = vpop.f32.mrf.mxu1  ;;  %8483 = vmatmul.mubr.bf16.vlgmr.msra.gmra.mxu1 %v8915_v42  ;;  %10720 = vmatpush3.bf16.msra.mxu0 %v11663_v48 }
 0x33a   :  { %v10428_v47 = vpop.f32.mrf.mxu0  ;;  %10742 = vmatpush3.bf16.msra.mxu1 %v11664_v51  ;;  %10721 = vmatprep.subr.bf16.mxu0 %v11665_v56  ;;  %v11699_v56 = vld [vmem:[#allocation8 + $0x28] sm:$0xff]  }
 0x33b   :  { %v10429_v49 = vadd.f32 %v10428_v47, %v10427_v39  ;;  %v10450_v50 = vpop.f32.mrf.mxu1  ;;  %10743 = vmatprep.subr.bf16.mxu1 %v11666_v57  ;;  %8522 = vmatprep.mubr.bf16.mxu0 %v8918_v25  ;;  %v11700_v57 = vld [vmem:[#allocation8 + $0x20] sm:$0xff]  }
 0x33c   :  { %v10451_v52 = vadd.f32 %v10450_v50, %v10449_v43  ;;  %v10430_v53 = vpop.f32.mrf.mxu0  ;;  %8562 = vmatprep.mubr.bf16.mxu1 %v8920_v30 }
 0x33d   :  { %v7965_v54 = vadd.f32 %v10429_v49, %v12005_v9  ;;  %v10452_v55 = vpop.f32.mrf.mxu1  ;;  %10722 = vmatpush3.bf16.msra.mxu0 %v11667_v60  ;;  %v11679_v9 = vld [vmem:[#allocation5 + $0x1718] sm:$0xff]  }
 0x33e   :  { %v10431_v58 = vpop.f32.mrf.mxu0  ;;  %10744 = vmatpush3.bf16.msra.mxu1 %v11668_v62  ;;  %10723 = vmatprep.subr.bf16.mxu0 %v11669_v63  ;;  %v11697_v53 = vld [vmem:[#allocation8 + $0x38] sm:$0xff]   ;;  %v11698_v55 = vld [vmem:[#allocation8 + $0x30] sm:$0xff]  }
 0x33f   :  { %v12008_v59 = vadd.f32 %v10451_v52, %v7965_v54  ;;  %v10453_v61 = vpop.f32.mrf.mxu1  ;;  %10745 = vmatprep.subr.bf16.mxu1 %v11670_v0  ;;  %v11896_v54 = vmov 0.0   ;;  %v11701_v58 = vld [vmem:[#allocation8 + $0x18] sm:$0xff]   ;;  %v11702_v0 = vld [vmem:[#allocation8 + $0x10] sm:$0xff]  }
 0x341   :  { %10724 = vmatpush3.bf16.msra.mxu0 %v11671_v1 }
 0x342   :  { %10746 = vmatpush3.bf16.msra.mxu1 %v11672_v2  ;;  %10725 = vmatprep.subr.bf16.mxu0 %v11673_v3 }
 0x343   :  { %10747 = vmatprep.subr.bf16.mxu1 %v11674_v4 }
 0x345   :  { %10726 = vmatpush3.bf16.msra.mxu0 %v11675_v5 }
 0x346   :  { %10748 = vmatpush3.bf16.msra.mxu1 %v11676_v6  ;;  %10727 = vmatprep.subr.bf16.mxu0 %v11677_v7 }
 0x347   :  { %10749 = vmatprep.subr.bf16.mxu1 %v11678_v8  ;;  %v11703_v8 = vld [vmem:[#allocation8 + $0x8] sm:$0xff]  }
 0x349   :  { %10728 = vmatpush3.bf16.msra.mxu0 %v11679_v9  ;;  %v11704_v9 = vld [vmem:[#allocation8] sm:$0xff]  }
 0x34a   :  { %10750 = vmatpush3.bf16.msra.mxu1 %v11680_v10  ;;  %10729 = vmatprep.subr.bf16.mxu0 %v11681_v11  ;;  %v11705_v10 = vld [vmem:[#allocation11 + $0x38] sm:$0xff]   ;;  %v11706_v11 = vld [vmem:[#allocation11 + $0x30] sm:$0xff]  }
 0x34b   :  { %10751 = vmatprep.subr.bf16.mxu1 %v11682_v12  ;;  %v11707_v12 = vld [vmem:[#allocation11 + $0x28] sm:$0xff]  }
 0x34d   :  { %10730 = vmatpush3.bf16.msra.mxu0 %v11683_v13  ;;  %v11708_v13 = vld [vmem:[#allocation11 + $0x20] sm:$0xff]  }
 0x34e   :  { %10752 = vmatpush3.bf16.msra.mxu1 %v11684_v14  ;;  %10731 = vmatprep.subr.bf16.mxu0 %v11685_v15  ;;  %v11709_v14 = vld [vmem:[#allocation11 + $0x18] sm:$0xff]  }
 0x34f   :  { %10753 = vmatprep.subr.bf16.mxu1 %v11686_v16 }
 0x351   :  { %10732 = vmatpush3.bf16.msra.mxu0 %v11687_v17  ;;  %v11710_v17 = vld [vmem:[#allocation11 + $0x10] sm:$0xff]  }
 0x352   :  { %10754 = vmatpush3.bf16.msra.mxu1 %v11688_v18  ;;  %10733 = vmatprep.subr.bf16.mxu0 %v11689_v19 }
 0x353   :  { %10755 = vmatprep.subr.bf16.mxu1 %v11690_v20 }
 0x355   :  { %10734 = vmatpush3.bf16.msra.mxu0 %v11691_v21 }
 0x356   :  { %10756 = vmatpush3.bf16.msra.mxu1 %v11692_v22  ;;  %10781 = vmatprep.subr.bf16.mxu0 %v11896_v54 }
 0x357   :  { %10801 = vmatprep.subr.bf16.mxu1 %v11896_v54 }
 0x358   :  { %v10471_v27 = vpop.f32.mrf.mxu0  ;;  %8523 = vmatmul.mubr.bf16.vlgmr.msra.gmra.mxu0 %v8917_v24 }
 0x359   :  { %v10493_v28 = vpop.f32.mrf.mxu1  ;;  %8563 = vmatmul.mubr.bf16.vlgmr.msra.gmra.mxu1 %v8919_v29  ;;  %10782 = vmatpush3.bf16.msra.mxu0 %v11697_v53 }
 0x35a   :  { %v10472_v31 = vpop.f32.mrf.mxu0  ;;  %10783 = vmatprep.subr.bf16.mxu0 %v11896_v54  ;;  %10797 = vmatprep.mubr.msk.bf16.mxu0 %vm11897_vm0, %v11896_v54 }
 0x35b   :  { %v10494_v32 = vpop.f32.mrf.mxu1  ;;  %v10473_v33 = vadd.f32 %v10472_v31, %v10471_v27  ;;  %10817 = vmatprep.mubr.msk.bf16.mxu1 %vm11897_vm0, %v11896_v54  ;;  %10802 = vmatpush3.bf16.msra.mxu1 %v11705_v10 }
 0x35c   :  { %v10495_v34 = vadd.f32 %v10494_v32, %v10493_v28  ;;  %v10474_v35 = vpop.f32.mrf.mxu0  ;;  %10803 = vmatprep.subr.bf16.mxu1 %v11896_v54 }
 0x35d   :  { %v10496_v36 = vpop.f32.mrf.mxu1  ;;  %v8045_v37 = vadd.f32 %v10473_v33, %v12008_v59  ;;  %10784 = vmatpush3.bf16.msra.mxu0 %v11698_v55 }
 0x35e   :  { %v10475_v38 = vpop.f32.mrf.mxu0  ;;  %10785 = vmatprep.subr.bf16.mxu0 %v11896_v54 }
 0x35f   :  { %v10497_v39 = vpop.f32.mrf.mxu1  ;;  %v8085_v40 = vadd.f32 %v10495_v34, %v8045_v37  ;;  %10804 = vmatpush3.bf16.msra.mxu1 %v11706_v11 }
 0x360   :  { %10805 = vmatprep.subr.bf16.mxu1 %v11896_v54 }
 0x361   :  { %10786 = vmatpush3.bf16.msra.mxu0 %v11699_v56 }
 0x362   :  { %10787 = vmatprep.subr.bf16.mxu0 %v11896_v54 }
 0x363   :  { %10806 = vmatpush3.bf16.msra.mxu1 %v11707_v12 }
 0x364   :  { %10807 = vmatprep.subr.bf16.mxu1 %v11896_v54 }
 0x365   :  { %10788 = vmatpush3.bf16.msra.mxu0 %v11700_v57 }
 0x366   :  { %10789 = vmatprep.subr.bf16.mxu0 %v11896_v54 }
 0x367   :  { %10808 = vmatpush3.bf16.msra.mxu1 %v11708_v13  ;;  %v9698_v13 = vld [vmem:[#allocation13] ss:$0 sm:$0xff] }
 0x368   :  { %10809 = vmatprep.subr.bf16.mxu1 %v11896_v54 }
 0x369   :  { %10790 = vmatpush3.bf16.msra.mxu0 %v11701_v58 }
 0x36a   :  { %10791 = vmatprep.subr.bf16.mxu0 %v11896_v54 }
 0x36b   :  { %10810 = vmatpush3.bf16.msra.mxu1 %v11709_v14 }
 0x36c   :  { %10811 = vmatprep.subr.bf16.mxu1 %v11896_v54 }
 0x36d   :  { %10792 = vmatpush3.bf16.msra.mxu0 %v11702_v0 }
 0x36e   :  { %10793 = vmatprep.subr.bf16.mxu0 %v11896_v54 }
 0x36f   :  { %10812 = vmatpush3.bf16.msra.mxu1 %v11710_v17 }
 0x370   :  { %10813 = vmatprep.subr.bf16.mxu1 %v11896_v54 }
 0x371   :  { %10794 = vmatpush3.bf16.msra.mxu0 %v11703_v8 }
 0x372   :  { %10795 = vmatprep.subr.bf16.mxu0 %v11896_v54 }
 0x375   :  { %10796 = vmatpush3.bf16.msra.mxu0 %v11704_v9 }
 0x378   :  { %v10515_v41 = vpop.f32.mrf.mxu0 }
 0x379   :  { %v10537_v42 = vpop.f32.mrf.mxu1 }
 0x37a   :  { %v10516_v43 = vpop.f32.mrf.mxu0 }
 0x37b   :  { %v10517_v44 = vadd.f32 %v10516_v43, %v10515_v41  ;;  %v10538_v45 = vpop.f32.mrf.mxu1 }
 0x37c   :  { %v10539_v46 = vadd.f32 %v10538_v45, %v10537_v42  ;;  %v10518_v47 = vpop.f32.mrf.mxu0 }
 0x37d   :  { %v8125_v48 = vadd.f32 %v10517_v44, %v8085_v40  ;;  %v10540_v49 = vpop.f32.mrf.mxu1 }
 0x37e   :  { %v10519_v50 = vpop.f32.mrf.mxu0 }
 0x37f   :  { %v8165_v51 = vadd.f32 %v10539_v46, %v8125_v48  ;;  %v10541_v52 = vpop.f32.mrf.mxu1 }
 0x398   :  { %v10559_v59 = vpop.f32.mrf.mxu0 }
 0x399   :  { %v10581_v60 = vpop.f32.mrf.mxu1 }
 0x39a   :  { %v10560_v61 = vpop.f32.mrf.mxu0 }
 0x39b   :  { %v10561_v62 = vadd.f32 %v10560_v61, %v10559_v59  ;;  %v10582_v63 = vpop.f32.mrf.mxu1 }
 0x39c   :  { %v10583_v1 = vadd.f32 %v10582_v63, %v10581_v60  ;;  %v10562_v2 = vpop.f32.mrf.mxu0 }
 0x39d   :  { %v8205_v3 = vadd.f32 %v10561_v62, %v8165_v51  ;;  %v10584_v4 = vpop.f32.mrf.mxu1 }
 0x39e   :  { %v10563_v5 = vpop.f32.mrf.mxu0  ;;  %v11712_v4 = vld [vmem:[#allocation11] sm:$0xff]  }
 0x39f   :  { %v8245_v6 = vadd.f32 %v10583_v1, %v8205_v3  ;;  %v10585_v7 = vpop.f32.mrf.mxu1  ;;  %v11711_v3 = vld [vmem:[#allocation11 + $0x8] sm:$0xff]   ;;  %v9689_v5 = vld [vmem:[#allocation10] ss:$0 sm:$0xff] }
 0x3a0   :  { %10814 = vmatpush3.bf16.msra.mxu1 %v11711_v3 }
 0x3a1   :  { %10815 = vmatprep.subr.bf16.mxu1 %v11896_v54 }
 0x3a4   :  { %10816 = vmatpush3.bf16.msra.mxu1 %v11712_v4 }
 0x3b8   :  { %v10603_v15 = vpop.f32.mrf.mxu0 }
 0x3b9   :  { %v10625_v16 = vpop.f32.mrf.mxu1 }
 0x3ba   :  { %v10604_v18 = vpop.f32.mrf.mxu0 }
 0x3bb   :  { %v10626_v19 = vpop.f32.mrf.mxu1  ;;  %v10605_v20 = vadd.f32 %v10604_v18, %v10603_v15 }
 0x3bc   :  { %v10627_v21 = vadd.f32 %v10626_v19, %v10625_v16  ;;  %v10606_v22 = vpop.f32.mrf.mxu0 }
 0x3bd   :  { %v10628_v23 = vpop.f32.mrf.mxu1  ;;  %v8285_v24 = vadd.f32 %v10605_v20, %v8245_v6 }
 0x3be   :  { %v10607_v25 = vpop.f32.mrf.mxu0 }
 0x3bf   :  { %v10629_v26 = vpop.f32.mrf.mxu1  ;;  %v8325_v27 = vadd.f32 %v10627_v21, %v8285_v24 }
 0x3d8   :  { %v10647_v28 = vpop.f32.mrf.mxu0 }
 0x3d9   :  { %v10669_v29 = vpop.f32.mrf.mxu1 }
 0x3da   :  { %v10648_v30 = vpop.f32.mrf.mxu0 }
 0x3db   :  { %v10670_v31 = vpop.f32.mrf.mxu1  ;;  %v10649_v44 = vadd.f32 %v10648_v30, %v10647_v28 }
 0x3dc   :  { %v10650_v32 = vpop.f32.mrf.mxu0  ;;  %v10671_v46 = vadd.f32 %v10670_v31, %v10669_v29 }
 0x3dd   :  { %v10672_v33 = vpop.f32.mrf.mxu1  ;;  %v8365_v45 = vadd.f32 %v10649_v44, %v8325_v27 }
 0x3de   :  { %v10651_v34 = vpop.f32.mrf.mxu0 }
 0x3df   :  { %v10673_v35 = vpop.f32.mrf.mxu1  ;;  %v8405_v48 = vadd.f32 %v10671_v46, %v8365_v45 }
 0x3f8   :  { %v10691_v36 = vpop.f32.mrf.mxu0 }
 0x3f9   :  { %v10713_v37 = vpop.f32.mrf.mxu1 }
 0x3fa   :  { %v10692_v38 = vpop.f32.mrf.mxu0 }
 0x3fb   :  { %v10714_v39 = vpop.f32.mrf.mxu1  ;;  %v10693_v47 = vadd.f32 %v10692_v38, %v10691_v36 }
 0x3fc   :  { %v10694_v40 = vpop.f32.mrf.mxu0  ;;  %v10715_v50 = vadd.f32 %v10714_v39, %v10713_v37 }
 0x3fd   :  { %v10716_v41 = vpop.f32.mrf.mxu1  ;;  %v8445_v49 = vadd.f32 %v10693_v47, %v8405_v48 }
 0x3fe   :  { %v10695_v42 = vpop.f32.mrf.mxu0 }
 0x3ff   :  { %v10717_v43 = vpop.f32.mrf.mxu1  ;;  %v8485_v56 = vadd.f32 %v10715_v50, %v8445_v49 }
 0x418   :  { %v10735_v51 = vpop.f32.mrf.mxu0 }
 0x419   :  { %v10757_v52 = vpop.f32.mrf.mxu1 }
 0x41a   :  { %v10736_v53 = vpop.f32.mrf.mxu0 }
 0x41b   :  { %v10758_v55 = vpop.f32.mrf.mxu1  ;;  %v10737_v57 = vadd.f32 %v10736_v53, %v10735_v51 }
 0x41c   :  { %v10738_v58 = vpop.f32.mrf.mxu0  ;;  %v10759_v61 = vadd.f32 %v10758_v55, %v10757_v52 }
 0x41d   :  { %v10760_v59 = vpop.f32.mrf.mxu1  ;;  %v8525_v60 = vadd.f32 %v10737_v57, %v8485_v56 }
 0x41e   :  { %v10739_v62 = vpop.f32.mrf.mxu0 }
 0x41f   :  { %v10761_v63 = vpop.f32.mrf.mxu1  ;;  %v8565_v0 = vadd.f32 %v10759_v61, %v8525_v60 }
 0x421   :  { %v8570_v1 = vmax.f32 %v8565_v0, 0.0 }
 0x423   :  { %v8571_v2 = vpack.c.bf16 %v8570_v1, %v8570_v1 }
 0x425   :  { %10798 = vmatmul.mubr.bf16.vlgmr.msra.gmra.mxu0 %v8571_v2 }
 0x4e5   :  { %v8677_v6 = vpop.f32.mrf.mxu0 }
 0x4e6   :  { %v8678_v7 = vadd.f32 %v9689_v5, %v8677_v6 }
 0x4e7   :  { %v10799_v8 = vpop.f32.mrf.mxu0 }
 0x4e8   :  { %v8683_v9 = vmax.f32 %v8678_v7, 0.0 }
 0x4e9   :  { %v8680_v10 = vpop.f32.mrf.mxu0 }
 0x4ea   :  { %v8684_v11 = vpack.c.bf16 %v8683_v9, %v8683_v9 }
 0x4eb   :  { %v10800_v12 = vpop.f32.mrf.mxu0 }
 0x4ec   :  { %10818 = vmatmul.mubr.bf16.vlgmr.msra.gmra.mxu1 %v8684_v11 }
 0x5ac   :  { %v8790_v14 = vpop.f32.mrf.mxu1 }
 0x5ad   :  { %v8791_v15 = vadd.f32 %v9698_v13, %v8790_v14 }
 0x5ae   :  { %v10819_v16 = vpop.f32.mrf.mxu1 }
 0x5af   :  { %8796 = vmax.xlane.f32.xlu0 %v8791_v15 }
 0x5b0   :  { %v8793_v17 = vpop.f32.mrf.mxu1 }
 0x5b2   :  { %v10820_v18 = vpop.f32.mrf.mxu1 }
 0x638   :  { %v8797_v19 = vpop.xlane.xlu0 %8796 }
 0x639   :  { %v8798_v54 = vsub.f32 %v8791_v15, %v8797_v19 }
 0x63b   :  { %v8799_v20 = vmul.f32 1.442695, %v8798_v54 }
 0x63d   :  { %11713 = vpow2.f32 %v8799_v20 }
 0x64a   :  { %v11714_v21 = vpop.eup %11713 }
 0x64b   :  { %8801 = vadd.xlane.f32.xlu0 %v11714_v21 }
 0x6d4   :  { %v8802_v22 = vpop.xlane.xlu0 %8801 }
 0x6d5   :  { %11715 = vrcp.f32 %v8802_v22 }
 0x6e2   :  { %v11716_v23 = vpop.eup %11715 }
 0x6e3   :  { %v8804_v24 = vmul.f32 %v11716_v23, %v11714_v21 }
 0x6e5   :  { %8805 = vst [vmem:[#allocation14] sm:$0xff] %v8804_v24 }
 0x6e6   :  { %11868 = shalt.err (!%p11865_p11)
}
 0x6e7   :  { %8815 = dma.vmem_to_hbm [thread:$0]  %s8813_s6, 128, %s12039_s7, [#allocation4]  }
 0x6e8   :  { %11885 = dma.done.wait [#allocation4], 128  }
 0x6e9   :  { %11886 = vsyncadd [#allocation4], 4294967168 }
 0x6ea   :  { %8819 = vsyncpa [#allocation3], 1 }
 0x6eb   :  { %8820 = vsyncpa [#allocation6], 1 }
 0x6ec   :  { %8821 = vsyncpa [#allocation9], 1 }
 0x6ed   :  { %8822 = vsyncpa [#allocation12], 1 }
 0x6ee   :  { %8823 = vsyncpa [#allocation4], 1 }

</bundles_post_ra>
